<compile_context>
chip_gen: v7x
topology: tpu7x:2x2x1
jax: 0.10.0
libtpu: 0.0.40
codegen_flags: <defaults>
</compile_context>

<pallas_src>
import functools

import jax
import jax.numpy as jnp
from jax.experimental import pallas as pl
from jax.experimental.pallas import tpu as pltpu

# ---------------------------------------------------------------------------
# MANO constants
# ---------------------------------------------------------------------------
NV = 778            # MANO mesh vertices
NVP = 896           # padded vertex count (7 * 128) -> lane-dense layouts
NJ = 16             # MANO kinematic joints
NCOMPS = 15         # PCA pose components predicted by the branch
NPOSE = NCOMPS + 3  # pose_reg output size (use_pca=True)
NBETA = 10          # shape_reg output size
CENTER_IDX = 9
TIP_IDS = (745, 317, 444, 556, 673)
JOINT_REORDER = (0, 13, 14, 15, 16, 1, 2, 3, 17, 4, 5, 6, 18,
                 10, 11, 12, 19, 7, 8, 9, 20)
PARENTS = (-1, 0, 1, 2, 0, 4, 5, 0, 7, 8, 0, 10, 11, 0, 13, 14)
CENTER_JOINT = JOINT_REORDER[CENTER_IDX]   # == 4, a skeleton joint -> centering in-kernel

D_FEAT = 128        # base_neurons = [128, 128, 128]

# fused-head / small-slab column layout (lane-dense, 128 wide)
_OFF_POSE = 0
_OFF_SHAPE = NPOSE                      # 18
_OFF_FP = NPOSE + NBETA                 # 28   full_pose, coordinate-major [x16|y16|z16]
_OFF_JR = _OFF_FP + 3 * NJ              # 76   rest joints, coordinate-major
_HEAD_W = _OFF_JR + 3 * NJ              # 124
_SMALL = 128


def _round_up(n, m):
    return ((n + m - 1) // m) * m


def _batch_tiling(b):
    bt = min(128, _round_up(b, 8))      # sublane-aligned batch tile
    bp = _round_up(b, bt)
    return bp, bt, (bp // bt,)


# ---------------------------------------------------------------------------
# Kernel 1: MLP + fused heads (pose, shape, PCA-decoded full pose, rest joints)
# ---------------------------------------------------------------------------
def _head_kernel(x_ref, w1_ref, b1_ref, w2_ref, b2_ref, whead_ref, bhead_ref,
                 small_ref):
    f32, bf16 = jnp.float32, jnp.bfloat16
    x = x_ref[...].astype(bf16)
    h = jnp.maximum(jnp.dot(x, w1_ref[...], preferred_element_type=f32)
                    + b1_ref[...], 0.0)
    h = jnp.maximum(jnp.dot(h.astype(bf16), w2_ref[...], preferred_element_type=f32)
                    + b2_ref[...], 0.0)
    # single fused head: [pose | shape | full_pose_cm | jrest_cm | pad] -> (B, 128)
    small_ref[...] = (jnp.dot(h.astype(bf16), whead_ref[...],
                              preferred_element_type=f32) + bhead_ref[...])


def _call_head(x, p, bt, grid):
    bp = x.shape[0]

    def const(arr):
        return pl.BlockSpec(arr.shape, lambda i: (0, 0))

    return pl.pallas_call(
        _head_kernel,
        out_shape=jax.ShapeDtypeStruct((bp, _SMALL), jnp.float32),
        grid=grid,
        in_specs=[pl.BlockSpec((bt, D_FEAT), lambda i: (i, 0)),
                  const(p["w1"]), const(p["b1"]),
                  const(p["w2"]), const(p["b2"]),
                  const(p["whead"]), const(p["bhead"])],
        out_specs=pl.BlockSpec((bt, _SMALL), lambda i: (i, 0)),
        compiler_params=pltpu.CompilerParams(dimension_semantics=("parallel",)),
    )(x, p["w1"], p["b1"], p["w2"], p["b2"], p["whead"], p["bhead"])


# ---------------------------------------------------------------------------
# Kernel 2: fused blendshapes + lane-vectorized FK + stacked LBS + centering
# ---------------------------------------------------------------------------
def _geom_kernel(small_ref, rot_ref, ident_ref, vtempl_ref, blenddirs_ref,
                 lbsT_ref, masks_ref, jpost_ref, verts_ref):
    f32, bf16 = jnp.float32, jnp.bfloat16
    B = rot_ref.shape[0]

    shape = small_ref[:, _OFF_SHAPE:_OFF_SHAPE + NBETA]        # (B, 10)
    jr = small_ref[:, _OFF_JR:_OFF_JR + 3 * NJ]                # (B, 48) coord-major
    jx, jy, jz = jr[:, 0:NJ], jr[:, NJ:2 * NJ], jr[:, 2 * NJ:3 * NJ]

    rot = rot_ref[...]                                         # (B,144) col = (3r+c)*16 + j
    L = [[rot[:, (3 * r + c) * NJ:(3 * r + c + 1) * NJ] for c in range(3)]
         for r in range(3)]

    # --- shape + pose blendshapes: one fused (B,154)@(154, 3*NVP) bf16 matmul ---
    pose_feat = rot - ident_ref[...]                           # (R - I), zero rows for joint 0
    blend_in = jnp.concatenate([shape, pose_feat], axis=1).astype(bf16)   # (B, 154)
    v_posed = vtempl_ref[...] + jnp.dot(blend_in, blenddirs_ref[...],
                                        preferred_element_type=f32)       # (B, 3*NVP)

    # --- forward kinematics, lane-vectorized over the 16-joint axis -------------
    masks = masks_ref[...]                                     # (3, 16) level masks
    m1 = jnp.broadcast_to(masks[0:1, :], (B, NJ))
    m2 = jnp.broadcast_to(masks[1:2, :], (B, NJ))
    m3 = jnp.broadcast_to(masks[2:3, :], (B, NJ))
    m23 = m2 + m3

    def bcast0(a):        # broadcast the root lane across all joint lanes
        return jnp.broadcast_to(a[:, 0:1], (B, NJ))

    def shift1(a):        # parent gather for levels 2/3: out[:, j] = a[:, j-1]
        return jnp.concatenate([a[:, 0:1], a[:, 0:NJ - 1]], axis=1)

    # rest-pose offsets to parent (root keeps its absolute rest position)
    dx = jx - (m1 * bcast0(jx) + m23 * shift1(jx))
    dy = jy - (m1 * bcast0(jy) + m23 * shift1(jy))
    dz = jz - (m1 * bcast0(jz) + m23 * shift1(jz))
    d = (dx, dy, dz)

    Gr = [[L[r][c] for c in range(3)] for r in range(3)]       # global rotations (B,16)
    Gt = [dx, dy, dz]                                          # global translations (B,16)

    for level, m in ((1, m1), (2, m2), (3, m3)):
        if level == 1:     # parents of level-1 joints are all the root (lane 0)
            Pr = [[bcast0(Gr[r][c]) for c in range(3)] for r in range(3)]
            Pt = [bcast0(Gt[r]) for r in range(3)]
        else:              # parents of level-2/3 joints are always joint j-1
            Pr = [[shift1(Gr[r][c]) for c in range(3)] for r in range(3)]
            Pt = [shift1(Gt[r]) for r in range(3)]
        nGr = [[Pr[r][0] * L[0][c] + Pr[r][1] * L[1][c] + Pr[r][2] * L[2][c]
                for c in range(3)] for r in range(3)]
        nGt = [Pr[r][0] * d[0] + Pr[r][1] * d[1] + Pr[r][2] * d[2] + Pt[r]
               for r in range(3)]
        Gr = [[Gr[r][c] + m * (nGr[r][c] - Gr[r][c]) for c in range(3)]
              for r in range(3)]
        Gt = [Gt[r] + m * (nGt[r] - Gt[r]) for r in range(3)]

    # --- LBS: rest-pose correction + ONE stacked (12B,16)@(16,NVP) bf16 matmul ---
    A = []
    for r in range(3):
        A += [Gr[r][0], Gr[r][1], Gr[r][2],
              Gt[r] - (Gr[r][0] * jx + Gr[r][1] * jy + Gr[r][2] * jz)]
    A_stack = jnp.concatenate(A, axis=0).astype(bf16)                      # (12B, 16)
    bigT = jnp.dot(A_stack, lbsT_ref[...], preferred_element_type=f32)     # (12B, NVP)
    T = [bigT[e * B:(e + 1) * B, :] for e in range(12)]                    # sublane-aligned

    vx = v_posed[:, 0:NVP]
    vy = v_posed[:, NVP:2 * NVP]
    vz = v_posed[:, 2 * NVP:3 * NVP]

    # center on MANO joint 4 (== reordered joint CENTER_IDX) inside the kernel
    cx = Gt[0][:, CENTER_JOINT:CENTER_JOINT + 1]
    cy = Gt[1][:, CENTER_JOINT:CENTER_JOINT + 1]
    cz = Gt[2][:, CENTER_JOINT:CENTER_JOINT + 1]

    verts_ref[:, 0:NVP] = T[0] * vx + T[1] * vy + T[2] * vz + T[3] - cx
    verts_ref[:, NVP:2 * NVP] = T[4] * vx + T[5] * vy + T[6] * vz + T[7] - cy
    verts_ref[:, 2 * NVP:3 * NVP] = T[8] * vx + T[9] * vy + T[10] * vz + T[11] - cz

    pad = jnp.zeros((B, _SMALL - 3 * NJ), f32)
    jpost_ref[...] = jnp.concatenate([Gt[0] - cx, Gt[1] - cy, Gt[2] - cz, pad], axis=1)


def _call_geom(small, rot, p, bt, grid):
    bp = small.shape[0]

    def const(arr):
        return pl.BlockSpec(arr.shape, lambda i: (0, 0))

    out_shape = (jax.ShapeDtypeStruct((bp, _SMALL), jnp.float32),
                 jax.ShapeDtypeStruct((bp, 3 * NVP), jnp.float32))
    return pl.pallas_call(
        _geom_kernel,
        out_shape=out_shape,
        grid=grid,
        in_specs=[pl.BlockSpec((bt, _SMALL), lambda i: (i, 0)),
                  pl.BlockSpec((bt, 9 * NJ), lambda i: (i, 0)),
                  const(p["ident144"]), const(p["v_template_cm"]),
                  const(p["blenddirs"]), const(p["lbsT"]), const(p["masks"])],
        out_specs=(pl.BlockSpec((bt, _SMALL), lambda i: (i, 0)),
                   pl.BlockSpec((bt, 3 * NVP), lambda i: (i, 0))),
        compiler_params=pltpu.CompilerParams(dimension_semantics=("parallel",)),
    )(small, rot, p["ident144"], p["v_template_cm"], p["blenddirs"],
      p["lbsT"], p["masks"])


# ---------------------------------------------------------------------------
# Plain-JAX glue: Rodrigues (needs sin/cos) on (B,16) lane arrays
# ---------------------------------------------------------------------------
def _rodrigues_lanes(fp_cm):
    """(B,48) coordinate-major axis-angle -> (B,144) rotation entries, col=(3r+c)*16+j."""
    ax, ay, az = fp_cm[:, 0:NJ], fp_cm[:, NJ:2 * NJ], fp_cm[:, 2 * NJ:3 * NJ]
    eps = 1e-8
    axe, aye, aze = ax + eps, ay + eps, az + eps
    angle = jnp.sqrt(axe * axe + aye * aye + aze * aze)
    half = 0.5 * angle
    sw = jnp.sin(half) / angle
    qw, qx, qy, qz = jnp.cos(half), sw * ax, sw * ay, sw * az
    qn = jax.lax.rsqrt(qw * qw + qx * qx + qy * qy + qz * qz)
    qw, qx, qy, qz = qw * qn, qx * qn, qy * qn, qz * qn
    ww, xx, yy, zz = qw * qw, qx * qx, qy * qy, qz * qz
    wx, wy, wz = qw * qx, qw * qy, qw * qz
    xy, xz, yz = qx * qy, qx * qz, qy * qz
    return jnp.concatenate([
        ww + xx - yy - zz, 2 * (xy - wz), 2 * (xz + wy),
        2 * (xy + wz), ww - xx + yy - zz, 2 * (yz - wx),
        2 * (xz - wy), 2 * (yz + wx), ww - xx - yy + zz], axis=1)


# ---------------------------------------------------------------------------
# Forward
# ---------------------------------------------------------------------------
def mano_branch_forward(inp, params):
    B = inp.shape[0]
    Bp, bt, grid = _batch_tiling(B)
    x = inp if Bp == B else jnp.pad(inp, ((0, Bp - B), (0, 0)))

    # Stage 1: MLP + fused heads
    small = _call_head(x, params, bt, grid)                      # (Bp, 128)

    # TODO(synk): Rodrigues (sin/cos) stays in plain JAX between the two kernels;
    #             Mosaic trig lowering is not assumed.  Traffic is only (Bp,128+144) f32.
    rot = _rodrigues_lanes(small[:, _OFF_FP:_OFF_FP + 3 * NJ])   # (Bp, 144)

    # Stage 2: blendshapes + FK + LBS (+ centering), all in one kernel
    jpost, verts_cm = _call_geom(small, rot, params, bt, grid)

    small, jpost, verts_cm = small[:B], jpost[:B], verts_cm[:B]
    pose = small[:, _OFF_POSE:_OFF_POSE + NPOSE]
    shape = small[:, _OFF_SHAPE:_OFF_SHAPE + NBETA]
    full_pose = (small[:, _OFF_FP:_OFF_FP + 3 * NJ]
                 .reshape(B, 3, NJ).transpose(0, 2, 1).reshape(B, 3 * NJ))
    joints16 = jpost[:, 0:3 * NJ].reshape(B, 3, NJ).transpose(0, 2, 1)     # centered
    verts = verts_cm.reshape(B, 3, NVP).transpose(0, 2, 1)[:, :NV, :]      # centered

    # Fingertips, joint reorder (tiny gathers, plain JAX); already centered in-kernel
    tips = verts[:, list(TIP_IDS)]
    joints21 = jnp.concatenate([joints16, tips], axis=1)[:, list(JOINT_REORDER)]
    return {"shape": shape, "pose": pose, "verts3d": verts,
            "joints3d": joints21, "full_pose": full_pose}


# ---------------------------------------------------------------------------
# Deterministic parameter synthesis + derived (folded/fused) kernel weights
# ---------------------------------------------------------------------------
def init_params(key):
    ks = jax.random.split(key, 16)

    def nrm(k, shape, s=0.05):
        return s * jax.random.normal(k, shape, dtype=jnp.float32)

    # --- raw module parameters ------------------------------------------------
    w1 = nrm(ks[0], (D_FEAT, D_FEAT)); b1 = nrm(ks[1], (1, D_FEAT))
    w2 = nrm(ks[2], (D_FEAT, D_FEAT)); b2 = nrm(ks[3], (1, D_FEAT))
    wp = nrm(ks[4], (D_FEAT, NPOSE)); bp = nrm(ks[5], (1, NPOSE))
    ws = nrm(ks[6], (D_FEAT, NBETA)); bs = nrm(ks[7], (1, NBETA))
    comps = nrm(ks[8], (NCOMPS, 45), 0.5)
    hands_mean = nrm(ks[9], (1, 45), 0.1)
    v_template = nrm(ks[10], (NV, 3), 0.1)
    shapedirs = nrm(ks[11], (NV, 3, NBETA), 0.01)
    posedirs = nrm(ks[12], (NV, 3, (NJ - 1) * 9), 0.01)
    jreg = jnp.abs(nrm(ks[13], (NJ, NV), 1.0)) + 1e-4
    jreg = jreg / jnp.sum(jreg, axis=1, keepdims=True)
    lbs_w = jax.nn.softmax(jax.random.normal(ks[14], (NV, NJ), jnp.float32), axis=1)

    p = {"w1": w1.astype(jnp.bfloat16), "b1": b1,
         "w2": w2.astype(jnp.bfloat16), "b2": b2}

    # --- PCA pose decode folded into the pose head -----------------------------
    comps_full = jnp.zeros((NPOSE, 48), jnp.float32)
    comps_full = comps_full.at[0:3, 0:3].set(jnp.eye(3, dtype=jnp.float32))
    comps_full = comps_full.at[3:, 3:].set(comps)
    mean_full = jnp.concatenate([jnp.zeros((1, 3), jnp.float32), hands_mean], axis=1)

    def to_cm48(a):   # (K, 48 joint-major) -> (K, 48 coordinate-major [x16|y16|z16])
        return a.reshape(a.shape[0], NJ, 3).transpose(0, 2, 1).reshape(a.shape[0], 48)

    w_fp = to_cm48(wp @ comps_full)                      # (128, 48)
    b_fp = to_cm48(bp @ comps_full + mean_full)          # (1, 48)

    # --- rest-joint regression folded into the shape head ----------------------
    jr_w = jnp.einsum('vck,jv->kcj', shapedirs, jreg).reshape(NBETA, 48)   # (10, 48) cm
    jr_b = jnp.einsum('vc,jv->cj', v_template, jreg).reshape(1, 48)        # (1, 48) cm
    w_jr = ws @ jr_w
    b_jr = bs @ jr_w + jr_b

    whead = jnp.concatenate([wp, ws, w_fp, w_jr], axis=1)                  # (128, 124)
    bhead = jnp.concatenate([bp, bs, b_fp, b_jr], axis=1)                  # (1, 124)
    p["whead"] = jnp.pad(whead, ((0, 0), (0, _SMALL - _HEAD_W))).astype(jnp.bfloat16)
    p["bhead"] = jnp.pad(bhead, ((0, 0), (0, _SMALL - _HEAD_W)))

    # --- fused shape+pose blendshape matrix, coordinate-major, lane-padded -----
    def to_cm_verts(a):   # (K, NV, 3) -> (K, 3*NVP): col = c*NVP + v, zero padded
        a = jnp.transpose(a, (0, 2, 1))
        a = jnp.pad(a, ((0, 0), (0, 0), (0, NVP - NV)))
        return a.reshape(a.shape[0], 3 * NVP)

    sd = to_cm_verts(jnp.transpose(shapedirs, (2, 0, 1)))                  # (10, 3*NVP)
    pd = to_cm_verts(jnp.transpose(posedirs, (2, 0, 1)))                   # (135, 3*NVP)
    pd = pd.reshape(NJ - 1, 9, 3 * NVP).transpose(1, 0, 2)                 # (9, 15, :)
    pd = jnp.concatenate([jnp.zeros((9, 1, 3 * NVP), jnp.float32), pd], axis=1)
    pd = pd.reshape(9 * NJ, 3 * NVP)                                       # row = e*16 + j
    p["blenddirs"] = jnp.concatenate([sd, pd], axis=0).astype(jnp.bfloat16)  # (154, 3*NVP)

    p["v_template_cm"] = to_cm_verts(v_template[None])                     # (1, 3*NVP) f32
    p["lbsT"] = jnp.pad(lbs_w.T, ((0, 0), (0, NVP - NV))).astype(jnp.bfloat16)  # (16, NVP)

    e_idx = jnp.arange(9 * NJ) // NJ
    p["ident144"] = jnp.where((e_idx == 0) | (e_idx == 4) | (e_idx == 8),
                              1.0, 0.0).astype(jnp.float32).reshape(1, 9 * NJ)

    # FK tree levels: level-1 joints hang off the root, and level-2/3 joints
    # always have parent j-1 -> parent gather = root-lane broadcast / shift-by-1
    level = [0] * NJ
    for j in range(1, NJ):
        level[j] = level[PARENTS[j]] + 1
        assert PARENTS[j] == (0 if level[j] == 1 else j - 1)
    p["masks"] = jnp.array([[1.0 if level[j] == l else 0.0 for j in range(NJ)]
                            for l in (1, 2, 3)], dtype=jnp.float32)        # (3, 16)
    return p


if __name__ == "__main__":
    key = jax.random.PRNGKey(0)
    pkey, xkey = jax.random.split(key)
    params = init_params(pkey)
    inp = jax.random.normal(xkey, (2, D_FEAT), dtype=jnp.float32)

    fwd = jax.jit(functools.partial(mano_branch_forward, params=params))
    out = fwd(inp)
    jax.block_until_ready(out)

    assert out["pose"].shape == (2, NPOSE)
    assert out["shape"].shape == (2, NBETA)
    assert out["full_pose"].shape == (2, 48)
    assert out["verts3d"].shape == (2, NV, 3)
    assert out["joints3d"].shape == (2, 21, 3)
    assert all(bool(jnp.all(jnp.isfinite(v))) for v in out.values())
    print("KERNEL_OK")
</pallas_src>

<mosaic_0001>
module attributes {stable_mosaic.version = 11 : i64} {
  func.func @_head_kernel(%arg0: i32, %arg1: memref<8x128xf32, #tpu.memory_space<vmem>>, %arg2: memref<128x128xbf16, #tpu.memory_space<vmem>>, %arg3: memref<1x128xf32, #tpu.memory_space<vmem>>, %arg4: memref<128x128xbf16, #tpu.memory_space<vmem>>, %arg5: memref<1x128xf32, #tpu.memory_space<vmem>>, %arg6: memref<128x128xbf16, #tpu.memory_space<vmem>>, %arg7: memref<1x128xf32, #tpu.memory_space<vmem>>, %arg8: memref<8x128xf32, #tpu.memory_space<vmem>>) attributes {dimension_semantics = [#tpu.dimension_semantics<parallel>], iteration_bounds = array<i64: 1>, scalar_prefetch = 0 : i64, scratch_operands = 0 : i64, tpu.core_type = #tpu.core_type<tc>, window_params = [{transform_indices = @transform_0, window_bounds = array<i64: 8, 128>}, {pipeline_mode = #tpu.pipeline_mode<synchronous>, transform_indices = @transform_1, window_bounds = array<i64: 128, 128>}, {pipeline_mode = #tpu.pipeline_mode<synchronous>, transform_indices = @transform_2, window_bounds = array<i64: 1, 128>}, {pipeline_mode = #tpu.pipeline_mode<synchronous>, transform_indices = @transform_3, window_bounds = array<i64: 128, 128>}, {pipeline_mode = #tpu.pipeline_mode<synchronous>, transform_indices = @transform_4, window_bounds = array<i64: 1, 128>}, {pipeline_mode = #tpu.pipeline_mode<synchronous>, transform_indices = @transform_5, window_bounds = array<i64: 128, 128>}, {pipeline_mode = #tpu.pipeline_mode<synchronous>, transform_indices = @transform_6, window_bounds = array<i64: 1, 128>}, {transform_indices = @transform_7, window_bounds = array<i64: 8, 128>}]} {
    %c0 = arith.constant 0 : index
    %c0_0 = arith.constant 0 : index
    %0 = vector.load %arg1[%c0, %c0_0] : memref<8x128xf32, #tpu.memory_space<vmem>>, vector<8x128xf32>
    %1 = arith.truncf %0 : vector<8x128xf32> to vector<8x128xbf16>
    %c0_1 = arith.constant 0 : index
    %c0_2 = arith.constant 0 : index
    %2 = vector.load %arg2[%c0_1, %c0_2] : memref<128x128xbf16, #tpu.memory_space<vmem>>, vector<128x128xbf16>
    %cst = arith.constant dense<0.000000e+00> : vector<8x128xf32>
    %3 = tpu.matmul %1, %2, %cst {dimension_numbers = #tpu.dot_dimension_numbers<[1], [0], [0], [1], [0, 0, 1, 1], [], []>} : vector<8x128xbf16>, vector<128x128xbf16>, vector<8x128xf32> -> vector<8x128xf32>
    %c0_3 = arith.constant 0 : index
    %c0_4 = arith.constant 0 : index
    %4 = vector.load %arg3[%c0_3, %c0_4] : memref<1x128xf32, #tpu.memory_space<vmem>>, vector<1x128xf32>
    %5 = vector.broadcast %4 : vector<1x128xf32> to vector<8x128xf32>
    %6 = arith.addf %3, %5 : vector<8x128xf32>
    %cst_5 = arith.constant 0.000000e+00 : f32
    %7 = vector.broadcast %cst_5 : f32 to vector<8x128xf32>
    %8 = arith.maximumf %6, %7 : vector<8x128xf32>
    %9 = arith.truncf %8 : vector<8x128xf32> to vector<8x128xbf16>
    %c0_6 = arith.constant 0 : index
    %c0_7 = arith.constant 0 : index
    %10 = vector.load %arg4[%c0_6, %c0_7] : memref<128x128xbf16, #tpu.memory_space<vmem>>, vector<128x128xbf16>
    %cst_8 = arith.constant dense<0.000000e+00> : vector<8x128xf32>
    %11 = tpu.matmul %9, %10, %cst_8 {dimension_numbers = #tpu.dot_dimension_numbers<[1], [0], [0], [1], [0, 0, 1, 1], [], []>} : vector<8x128xbf16>, vector<128x128xbf16>, vector<8x128xf32> -> vector<8x128xf32>
    %c0_9 = arith.constant 0 : index
    %c0_10 = arith.constant 0 : index
    %12 = vector.load %arg5[%c0_9, %c0_10] : memref<1x128xf32, #tpu.memory_space<vmem>>, vector<1x128xf32>
    %13 = vector.broadcast %12 : vector<1x128xf32> to vector<8x128xf32>
    %14 = arith.addf %11, %13 : vector<8x128xf32>
    %cst_11 = arith.constant 0.000000e+00 : f32
    %15 = vector.broadcast %cst_11 : f32 to vector<8x128xf32>
    %16 = arith.maximumf %14, %15 : vector<8x128xf32>
    %17 = arith.truncf %16 : vector<8x128xf32> to vector<8x128xbf16>
    %c0_12 = arith.constant 0 : index
    %c0_13 = arith.constant 0 : index
    %18 = vector.load %arg6[%c0_12, %c0_13] : memref<128x128xbf16, #tpu.memory_space<vmem>>, vector<128x128xbf16>
    %cst_14 = arith.constant dense<0.000000e+00> : vector<8x128xf32>
    %19 = tpu.matmul %17, %18, %cst_14 {dimension_numbers = #tpu.dot_dimension_numbers<[1], [0], [0], [1], [0, 0, 1, 1], [], []>} : vector<8x128xbf16>, vector<128x128xbf16>, vector<8x128xf32> -> vector<8x128xf32>
    %c0_15 = arith.constant 0 : index
    %c0_16 = arith.constant 0 : index
    %20 = vector.load %arg7[%c0_15, %c0_16] : memref<1x128xf32, #tpu.memory_space<vmem>>, vector<1x128xf32>
    %21 = vector.broadcast %20 : vector<1x128xf32> to vector<8x128xf32>
    %22 = arith.addf %19, %21 : vector<8x128xf32>
    %c0_17 = arith.constant 0 : index
    %c0_18 = arith.constant 0 : index
    %23 = vector.load %arg8[%c0_17, %c0_18] : memref<8x128xf32, #tpu.memory_space<vmem>>, vector<8x128xf32>
    tpu.vector_store %arg8[%c0_17, %c0_18], %22 {strides = array<i32>} : memref<8x128xf32, #tpu.memory_space<vmem>>, vector<8x128xf32>,
    return
  }
  func.func @transform_0(%arg0: i32) -> (i32, i32) {
    %c0_i32 = arith.constant 0 : i32
    %c0_i32_0 = arith.constant 0 : i32
    return %arg0, %c0_i32 : i32, i32
  }
  func.func @transform_1(%arg0: i32) -> (i32, i32) {
    %c0_i32 = arith.constant 0 : i32
    %c0_i32_0 = arith.constant 0 : i32
    %c0_i32_1 = arith.constant 0 : i32
    return %c0_i32, %c0_i32_0 : i32, i32
  }
  func.func @transform_2(%arg0: i32) -> (i32, i32) {
    %c0_i32 = arith.constant 0 : i32
    %c0_i32_0 = arith.constant 0 : i32
    %c0_i32_1 = arith.constant 0 : i32
    return %c0_i32, %c0_i32_0 : i32, i32
  }
  func.func @transform_3(%arg0: i32) -> (i32, i32) {
    %c0_i32 = arith.constant 0 : i32
    %c0_i32_0 = arith.constant 0 : i32
    %c0_i32_1 = arith.constant 0 : i32
    return %c0_i32, %c0_i32_0 : i32, i32
  }
  func.func @transform_4(%arg0: i32) -> (i32, i32) {
    %c0_i32 = arith.constant 0 : i32
    %c0_i32_0 = arith.constant 0 : i32
    %c0_i32_1 = arith.constant 0 : i32
    return %c0_i32, %c0_i32_0 : i32, i32
  }
  func.func @transform_5(%arg0: i32) -> (i32, i32) {
    %c0_i32 = arith.constant 0 : i32
    %c0_i32_0 = arith.constant 0 : i32
    %c0_i32_1 = arith.constant 0 : i32
    return %c0_i32, %c0_i32_0 : i32, i32
  }
  func.func @transform_6(%arg0: i32) -> (i32, i32) {
    %c0_i32 = arith.constant 0 : i32
    %c0_i32_0 = arith.constant 0 : i32
    %c0_i32_1 = arith.constant 0 : i32
    return %c0_i32, %c0_i32_0 : i32, i32
  }
  func.func @transform_7(%arg0: i32) -> (i32, i32) {
    %c0_i32 = arith.constant 0 : i32
    %c0_i32_0 = arith.constant 0 : i32
    return %arg0, %c0_i32 : i32, i32
  }
}

module attributes {stable_mosaic.version = 11 : i64} {
  func.func @_geom_kernel(%arg0: i32, %arg1: memref<8x128xf32, #tpu.memory_space<vmem>>, %arg2: memref<8x144xf32, #tpu.memory_space<vmem>>, %arg3: memref<1x144xf32, #tpu.memory_space<vmem>>, %arg4: memref<1x2688xf32, #tpu.memory_space<vmem>>, %arg5: memref<154x2688xbf16, #tpu.memory_space<vmem>>, %arg6: memref<16x896xbf16, #tpu.memory_space<vmem>>, %arg7: memref<3x16xf32, #tpu.memory_space<vmem>>, %arg8: memref<8x128xf32, #tpu.memory_space<vmem>>, %arg9: memref<8x2688xf32, #tpu.memory_space<vmem>>) attributes {dimension_semantics = [#tpu.dimension_semantics<parallel>], iteration_bounds = array<i64: 1>, scalar_prefetch = 0 : i64, scratch_operands = 0 : i64, tpu.core_type = #tpu.core_type<tc>, window_params = [{transform_indices = @transform_0, window_bounds = array<i64: 8, 128>}, {transform_indices = @transform_1, window_bounds = array<i64: 8, 144>}, {pipeline_mode = #tpu.pipeline_mode<synchronous>, transform_indices = @transform_2, window_bounds = array<i64: 1, 144>}, {pipeline_mode = #tpu.pipeline_mode<synchronous>, transform_indices = @transform_3, window_bounds = array<i64: 1, 2688>}, {pipeline_mode = #tpu.pipeline_mode<synchronous>, transform_indices = @transform_4, window_bounds = array<i64: 154, 2688>}, {pipeline_mode = #tpu.pipeline_mode<synchronous>, transform_indices = @transform_5, window_bounds = array<i64: 16, 896>}, {pipeline_mode = #tpu.pipeline_mode<synchronous>, transform_indices = @transform_6, window_bounds = array<i64: 3, 16>}, {transform_indices = @transform_7, window_bounds = array<i64: 8, 128>}, {transform_indices = @transform_8, window_bounds = array<i64: 8, 2688>}]} {
    %c0 = arith.constant 0 : index
    %c18 = arith.constant 18 : index
    %0 = vector.load %arg1[%c0, %c18] : memref<8x128xf32, #tpu.memory_space<vmem>>, vector<8x10xf32>
    %c0_0 = arith.constant 0 : index
    %c76 = arith.constant 76 : index
    %1 = vector.load %arg1[%c0_0, %c76] : memref<8x128xf32, #tpu.memory_space<vmem>>, vector<8x48xf32>
    %2 = vector.extract_strided_slice %1 {offsets = [0, 0], sizes = [8, 16], strides = [1, 1]} : vector<8x48xf32> to vector<8x16xf32>
    %3 = vector.extract_strided_slice %1 {offsets = [0, 16], sizes = [8, 16], strides = [1, 1]} : vector<8x48xf32> to vector<8x16xf32>
    %4 = vector.extract_strided_slice %1 {offsets = [0, 32], sizes = [8, 16], strides = [1, 1]} : vector<8x48xf32> to vector<8x16xf32>
    %c0_1 = arith.constant 0 : index
    %c0_2 = arith.constant 0 : index
    %5 = vector.load %arg2[%c0_1, %c0_2] : memref<8x144xf32, #tpu.memory_space<vmem>>, vector<8x144xf32>
    %6 = vector.extract_strided_slice %5 {offsets = [0, 0], sizes = [8, 16], strides = [1, 1]} : vector<8x144xf32> to vector<8x16xf32>
    %7 = vector.extract_strided_slice %5 {offsets = [0, 16], sizes = [8, 16], strides = [1, 1]} : vector<8x144xf32> to vector<8x16xf32>
    %8 = vector.extract_strided_slice %5 {offsets = [0, 32], sizes = [8, 16], strides = [1, 1]} : vector<8x144xf32> to vector<8x16xf32>
    %9 = vector.extract_strided_slice %5 {offsets = [0, 48], sizes = [8, 16], strides = [1, 1]} : vector<8x144xf32> to vector<8x16xf32>
    %10 = vector.extract_strided_slice %5 {offsets = [0, 64], sizes = [8, 16], strides = [1, 1]} : vector<8x144xf32> to vector<8x16xf32>
    %11 = vector.extract_strided_slice %5 {offsets = [0, 80], sizes = [8, 16], strides = [1, 1]} : vector<8x144xf32> to vector<8x16xf32>
    %12 = vector.extract_strided_slice %5 {offsets = [0, 96], sizes = [8, 16], strides = [1, 1]} : vector<8x144xf32> to vector<8x16xf32>
    %13 = vector.extract_strided_slice %5 {offsets = [0, 112], sizes = [8, 16], strides = [1, 1]} : vector<8x144xf32> to vector<8x16xf32>
    %14 = vector.extract_strided_slice %5 {offsets = [0, 128], sizes = [8, 16], strides = [1, 1]} : vector<8x144xf32> to vector<8x16xf32>
    %c0_3 = arith.constant 0 : index
    %c0_4 = arith.constant 0 : index
    %15 = vector.load %arg3[%c0_3, %c0_4] : memref<1x144xf32, #tpu.memory_space<vmem>>, vector<1x144xf32>
    %16 = vector.broadcast %15 : vector<1x144xf32> to vector<8x144xf32>
    %17 = arith.subf %5, %16 : vector<8x144xf32>
    %18 = tpu.concatenate %0, %17 in 1 : vector<8x10xf32>, vector<8x144xf32> -> vector<8x154xf32>
    %19 = arith.truncf %18 : vector<8x154xf32> to vector<8x154xbf16>
    %c0_5 = arith.constant 0 : index
    %c0_6 = arith.constant 0 : index
    %20 = vector.load %arg4[%c0_5, %c0_6] : memref<1x2688xf32, #tpu.memory_space<vmem>>, vector<1x2688xf32>
    %c0_7 = arith.constant 0 : index
    %c0_8 = arith.constant 0 : index
    %21 = vector.load %arg5[%c0_7, %c0_8] : memref<154x2688xbf16, #tpu.memory_space<vmem>>, vector<154x2688xbf16>
    %cst = arith.constant dense<0.000000e+00> : vector<8x2688xf32>
    %22 = tpu.matmul %19, %21, %cst {dimension_numbers = #tpu.dot_dimension_numbers<[1], [0], [0], [1], [0, 0, 1, 1], [], []>} : vector<8x154xbf16>, vector<154x2688xbf16>, vector<8x2688xf32> -> vector<8x2688xf32>
    %23 = vector.broadcast %20 : vector<1x2688xf32> to vector<8x2688xf32>
    %24 = arith.addf %23, %22 : vector<8x2688xf32>
    %c0_9 = arith.constant 0 : index
    %c0_10 = arith.constant 0 : index
    %25 = vector.load %arg7[%c0_9, %c0_10] : memref<3x16xf32, #tpu.memory_space<vmem>>, vector<3x16xf32>
    %26 = vector.extract_strided_slice %25 {offsets = [0, 0], sizes = [1, 16], strides = [1, 1]} : vector<3x16xf32> to vector<1x16xf32>
    %27 = vector.shape_cast %26 : vector<1x16xf32> to vector<1x16xf32>
    %28 = vector.broadcast %27 : vector<1x16xf32> to vector<8x16xf32>
    %29 = vector.extract_strided_slice %25 {offsets = [1, 0], sizes = [1, 16], strides = [1, 1]} : vector<3x16xf32> to vector<1x16xf32>
    %30 = vector.shape_cast %29 : vector<1x16xf32> to vector<1x16xf32>
    %31 = vector.broadcast %30 : vector<1x16xf32> to vector<8x16xf32>
    %32 = vector.extract_strided_slice %25 {offsets = [2, 0], sizes = [1, 16], strides = [1, 1]} : vector<3x16xf32> to vector<1x16xf32>
    %33 = vector.shape_cast %32 : vector<1x16xf32> to vector<1x16xf32>
    %34 = vector.broadcast %33 : vector<1x16xf32> to vector<8x16xf32>
    %35 = arith.addf %31, %34 : vector<8x16xf32>
    %36 = vector.extract_strided_slice %2 {offsets = [0, 0], sizes = [8, 1], strides = [1, 1]} : vector<8x16xf32> to vector<8x1xf32>
    %37 = vector.shape_cast %36 : vector<8x1xf32> to vector<8x1xf32>
    %38 = vector.broadcast %37 : vector<8x1xf32> to vector<8x16xf32>
    %39 = arith.mulf %28, %38 : vector<8x16xf32>
    %40 = vector.extract_strided_slice %2 {offsets = [0, 0], sizes = [8, 1], strides = [1, 1]} : vector<8x16xf32> to vector<8x1xf32>
    %41 = vector.extract_strided_slice %2 {offsets = [0, 0], sizes = [8, 15], strides = [1, 1]} : vector<8x16xf32> to vector<8x15xf32>
    %42 = tpu.concatenate %40, %41 in 1 : vector<8x1xf32>, vector<8x15xf32> -> vector<8x16xf32>
    %43 = arith.mulf %35, %42 : vector<8x16xf32>
    %44 = arith.addf %39, %43 : vector<8x16xf32>
    %45 = arith.subf %2, %44 : vector<8x16xf32>
    %46 = vector.extract_strided_slice %3 {offsets = [0, 0], sizes = [8, 1], strides = [1, 1]} : vector<8x16xf32> to vector<8x1xf32>
    %47 = vector.shape_cast %46 : vector<8x1xf32> to vector<8x1xf32>
    %48 = vector.broadcast %47 : vector<8x1xf32> to vector<8x16xf32>
    %49 = arith.mulf %28, %48 : vector<8x16xf32>
    %50 = vector.extract_strided_slice %3 {offsets = [0, 0], sizes = [8, 1], strides = [1, 1]} : vector<8x16xf32> to vector<8x1xf32>
    %51 = vector.extract_strided_slice %3 {offsets = [0, 0], sizes = [8, 15], strides = [1, 1]} : vector<8x16xf32> to vector<8x15xf32>
    %52 = tpu.concatenate %50, %51 in 1 : vector<8x1xf32>, vector<8x15xf32> -> vector<8x16xf32>
    %53 = arith.mulf %35, %52 : vector<8x16xf32>
    %54 = arith.addf %49, %53 : vector<8x16xf32>
    %55 = arith.subf %3, %54 : vector<8x16xf32>
    %56 = vector.extract_strided_slice %4 {offsets = [0, 0], sizes = [8, 1], strides = [1, 1]} : vector<8x16xf32> to vector<8x1xf32>
    %57 = vector.shape_cast %56 : vector<8x1xf32> to vector<8x1xf32>
    %58 = vector.broadcast %57 : vector<8x1xf32> to vector<8x16xf32>
    %59 = arith.mulf %28, %58 : vector<8x16xf32>
    %60 = vector.extract_strided_slice %4 {offsets = [0, 0], sizes = [8, 1], strides = [1, 1]} : vector<8x16xf32> to vector<8x1xf32>
    %61 = vector.extract_strided_slice %4 {offsets = [0, 0], sizes = [8, 15], strides = [1, 1]} : vector<8x16xf32> to vector<8x15xf32>
    %62 = tpu.concatenate %60, %61 in 1 : vector<8x1xf32>, vector<8x15xf32> -> vector<8x16xf32>
    %63 = arith.mulf %35, %62 : vector<8x16xf32>
    %64 = arith.addf %59, %63 : vector<8x16xf32>
    %65 = arith.subf %4, %64 : vector<8x16xf32>
    %66 = vector.extract_strided_slice %6 {offsets = [0, 0], sizes = [8, 1], strides = [1, 1]} : vector<8x16xf32> to vector<8x1xf32>
    %67 = vector.shape_cast %66 : vector<8x1xf32> to vector<8x1xf32>
    %68 = vector.broadcast %67 : vector<8x1xf32> to vector<8x16xf32>
    %69 = vector.extract_strided_slice %7 {offsets = [0, 0], sizes = [8, 1], strides = [1, 1]} : vector<8x16xf32> to vector<8x1xf32>
    %70 = vector.shape_cast %69 : vector<8x1xf32> to vector<8x1xf32>
    %71 = vector.broadcast %70 : vector<8x1xf32> to vector<8x16xf32>
    %72 = vector.extract_strided_slice %8 {offsets = [0, 0], sizes = [8, 1], strides = [1, 1]} : vector<8x16xf32> to vector<8x1xf32>
    %73 = vector.shape_cast %72 : vector<8x1xf32> to vector<8x1xf32>
    %74 = vector.broadcast %73 : vector<8x1xf32> to vector<8x16xf32>
    %75 = vector.extract_strided_slice %9 {offsets = [0, 0], sizes = [8, 1], strides = [1, 1]} : vector<8x16xf32> to vector<8x1xf32>
    %76 = vector.shape_cast %75 : vector<8x1xf32> to vector<8x1xf32>
    %77 = vector.broadcast %76 : vector<8x1xf32> to vector<8x16xf32>
    %78 = vector.extract_strided_slice %10 {offsets = [0, 0], sizes = [8, 1], strides = [1, 1]} : vector<8x16xf32> to vector<8x1xf32>
    %79 = vector.shape_cast %78 : vector<8x1xf32> to vector<8x1xf32>
    %80 = vector.broadcast %79 : vector<8x1xf32> to vector<8x16xf32>
    %81 = vector.extract_strided_slice %11 {offsets = [0, 0], sizes = [8, 1], strides = [1, 1]} : vector<8x16xf32> to vector<8x1xf32>
    %82 = vector.shape_cast %81 : vector<8x1xf32> to vector<8x1xf32>
    %83 = vector.broadcast %82 : vector<8x1xf32> to vector<8x16xf32>
    %84 = vector.extract_strided_slice %12 {offsets = [0, 0], sizes = [8, 1], strides = [1, 1]} : vector<8x16xf32> to vector<8x1xf32>
    %85 = vector.shape_cast %84 : vector<8x1xf32> to vector<8x1xf32>
    %86 = vector.broadcast %85 : vector<8x1xf32> to vector<8x16xf32>
    %87 = vector.extract_strided_slice %13 {offsets = [0, 0], sizes = [8, 1], strides = [1, 1]} : vector<8x16xf32> to vector<8x1xf32>
    %88 = vector.shape_cast %87 : vector<8x1xf32> to vector<8x1xf32>
    %89 = vector.broadcast %88 : vector<8x1xf32> to vector<8x16xf32>
    %90 = vector.extract_strided_slice %14 {offsets = [0, 0], sizes = [8, 1], strides = [1, 1]} : vector<8x16xf32> to vector<8x1xf32>
    %91 = vector.shape_cast %90 : vector<8x1xf32> to vector<8x1xf32>
    %92 = vector.broadcast %91 : vector<8x1xf32> to vector<8x16xf32>
    %93 = vector.extract_strided_slice %45 {offsets = [0, 0], sizes = [8, 1], strides = [1, 1]} : vector<8x16xf32> to vector<8x1xf32>
    %94 = vector.shape_cast %93 : vector<8x1xf32> to vector<8x1xf32>
    %95 = vector.broadcast %94 : vector<8x1xf32> to vector<8x16xf32>
    %96 = vector.extract_strided_slice %55 {offsets = [0, 0], sizes = [8, 1], strides = [1, 1]} : vector<8x16xf32> to vector<8x1xf32>
    %97 = vector.shape_cast %96 : vector<8x1xf32> to vector<8x1xf32>
    %98 = vector.broadcast %97 : vector<8x1xf32> to vector<8x16xf32>
    %99 = vector.extract_strided_slice %65 {offsets = [0, 0], sizes = [8, 1], strides = [1, 1]} : vector<8x16xf32> to vector<8x1xf32>
    %100 = vector.shape_cast %99 : vector<8x1xf32> to vector<8x1xf32>
    %101 = vector.broadcast %100 : vector<8x1xf32> to vector<8x16xf32>
    %102 = arith.mulf %68, %6 : vector<8x16xf32>
    %103 = arith.mulf %71, %9 : vector<8x16xf32>
    %104 = arith.addf %102, %103 : vector<8x16xf32>
    %105 = arith.mulf %74, %12 : vector<8x16xf32>
    %106 = arith.addf %104, %105 : vector<8x16xf32>
    %107 = arith.mulf %68, %7 : vector<8x16xf32>
    %108 = arith.mulf %71, %10 : vector<8x16xf32>
    %109 = arith.addf %107, %108 : vector<8x16xf32>
    %110 = arith.mulf %74, %13 : vector<8x16xf32>
    %111 = arith.addf %109, %110 : vector<8x16xf32>
    %112 = arith.mulf %68, %8 : vector<8x16xf32>
    %113 = arith.mulf %71, %11 : vector<8x16xf32>
    %114 = arith.addf %112, %113 : vector<8x16xf32>
    %115 = arith.mulf %74, %14 : vector<8x16xf32>
    %116 = arith.addf %114, %115 : vector<8x16xf32>
    %117 = arith.mulf %77, %6 : vector<8x16xf32>
    %118 = arith.mulf %80, %9 : vector<8x16xf32>
    %119 = arith.addf %117, %118 : vector<8x16xf32>
    %120 = arith.mulf %83, %12 : vector<8x16xf32>
    %121 = arith.addf %119, %120 : vector<8x16xf32>
    %122 = arith.mulf %77, %7 : vector<8x16xf32>
    %123 = arith.mulf %80, %10 : vector<8x16xf32>
    %124 = arith.addf %122, %123 : vector<8x16xf32>
    %125 = arith.mulf %83, %13 : vector<8x16xf32>
    %126 = arith.addf %124, %125 : vector<8x16xf32>
    %127 = arith.mulf %77, %8 : vector<8x16xf32>
    %128 = arith.mulf %80, %11 : vector<8x16xf32>
    %129 = arith.addf %127, %128 : vector<8x16xf32>
    %130 = arith.mulf %83, %14 : vector<8x16xf32>
    %131 = arith.addf %129, %130 : vector<8x16xf32>
    %132 = arith.mulf %86, %6 : vector<8x16xf32>
    %133 = arith.mulf %89, %9 : vector<8x16xf32>
    %134 = arith.addf %132, %133 : vector<8x16xf32>
    %135 = arith.mulf %92, %12 : vector<8x16xf32>
    %136 = arith.addf %134, %135 : vector<8x16xf32>
    %137 = arith.mulf %86, %7 : vector<8x16xf32>
    %138 = arith.mulf %89, %10 : vector<8x16xf32>
    %139 = arith.addf %137, %138 : vector<8x16xf32>
    %140 = arith.mulf %92, %13 : vector<8x16xf32>
    %141 = arith.addf %139, %140 : vector<8x16xf32>
    %142 = arith.mulf %86, %8 : vector<8x16xf32>
    %143 = arith.mulf %89, %11 : vector<8x16xf32>
    %144 = arith.addf %142, %143 : vector<8x16xf32>
    %145 = arith.mulf %92, %14 : vector<8x16xf32>
    %146 = arith.addf %144, %145 : vector<8x16xf32>
    %147 = arith.mulf %68, %45 : vector<8x16xf32>
    %148 = arith.mulf %71, %55 : vector<8x16xf32>
    %149 = arith.addf %147, %148 : vector<8x16xf32>
    %150 = arith.mulf %74, %65 : vector<8x16xf32>
    %151 = arith.addf %149, %150 : vector<8x16xf32>
    %152 = arith.addf %151, %95 : vector<8x16xf32>
    %153 = arith.mulf %77, %45 : vector<8x16xf32>
    %154 = arith.mulf %80, %55 : vector<8x16xf32>
    %155 = arith.addf %153, %154 : vector<8x16xf32>
    %156 = arith.mulf %83, %65 : vector<8x16xf32>
    %157 = arith.addf %155, %156 : vector<8x16xf32>
    %158 = arith.addf %157, %98 : vector<8x16xf32>
    %159 = arith.mulf %86, %45 : vector<8x16xf32>
    %160 = arith.mulf %89, %55 : vector<8x16xf32>
    %161 = arith.addf %159, %160 : vector<8x16xf32>
    %162 = arith.mulf %92, %65 : vector<8x16xf32>
    %163 = arith.addf %161, %162 : vector<8x16xf32>
    %164 = arith.addf %163, %101 : vector<8x16xf32>
    %165 = arith.subf %106, %6 : vector<8x16xf32>
    %166 = arith.mulf %28, %165 : vector<8x16xf32>
    %167 = arith.addf %6, %166 : vector<8x16xf32>
    %168 = arith.subf %111, %7 : vector<8x16xf32>
    %169 = arith.mulf %28, %168 : vector<8x16xf32>
    %170 = arith.addf %7, %169 : vector<8x16xf32>
    %171 = arith.subf %116, %8 : vector<8x16xf32>
    %172 = arith.mulf %28, %171 : vector<8x16xf32>
    %173 = arith.addf %8, %172 : vector<8x16xf32>
    %174 = arith.subf %121, %9 : vector<8x16xf32>
    %175 = arith.mulf %28, %174 : vector<8x16xf32>
    %176 = arith.addf %9, %175 : vector<8x16xf32>
    %177 = arith.subf %126, %10 : vector<8x16xf32>
    %178 = arith.mulf %28, %177 : vector<8x16xf32>
    %179 = arith.addf %10, %178 : vector<8x16xf32>
    %180 = arith.subf %131, %11 : vector<8x16xf32>
    %181 = arith.mulf %28, %180 : vector<8x16xf32>
    %182 = arith.addf %11, %181 : vector<8x16xf32>
    %183 = arith.subf %136, %12 : vector<8x16xf32>
    %184 = arith.mulf %28, %183 : vector<8x16xf32>
    %185 = arith.addf %12, %184 : vector<8x16xf32>
    %186 = arith.subf %141, %13 : vector<8x16xf32>
    %187 = arith.mulf %28, %186 : vector<8x16xf32>
    %188 = arith.addf %13, %187 : vector<8x16xf32>
    %189 = arith.subf %146, %14 : vector<8x16xf32>
    %190 = arith.mulf %28, %189 : vector<8x16xf32>
    %191 = arith.addf %14, %190 : vector<8x16xf32>
    %192 = arith.subf %152, %45 : vector<8x16xf32>
    %193 = arith.mulf %28, %192 : vector<8x16xf32>
    %194 = arith.addf %45, %193 : vector<8x16xf32>
    %195 = arith.subf %158, %55 : vector<8x16xf32>
    %196 = arith.mulf %28, %195 : vector<8x16xf32>
    %197 = arith.addf %55, %196 : vector<8x16xf32>
    %198 = arith.subf %164, %65 : vector<8x16xf32>
    %199 = arith.mulf %28, %198 : vector<8x16xf32>
    %200 = arith.addf %65, %199 : vector<8x16xf32>
    %201 = vector.extract_strided_slice %167 {offsets = [0, 0], sizes = [8, 1], strides = [1, 1]} : vector<8x16xf32> to vector<8x1xf32>
    %202 = vector.extract_strided_slice %167 {offsets = [0, 0], sizes = [8, 15], strides = [1, 1]} : vector<8x16xf32> to vector<8x15xf32>
    %203 = tpu.concatenate %201, %202 in 1 : vector<8x1xf32>, vector<8x15xf32> -> vector<8x16xf32>
    %204 = vector.extract_strided_slice %170 {offsets = [0, 0], sizes = [8, 1], strides = [1, 1]} : vector<8x16xf32> to vector<8x1xf32>
    %205 = vector.extract_strided_slice %170 {offsets = [0, 0], sizes = [8, 15], strides = [1, 1]} : vector<8x16xf32> to vector<8x15xf32>
    %206 = tpu.concatenate %204, %205 in 1 : vector<8x1xf32>, vector<8x15xf32> -> vector<8x16xf32>
    %207 = vector.extract_strided_slice %173 {offsets = [0, 0], sizes = [8, 1], strides = [1, 1]} : vector<8x16xf32> to vector<8x1xf32>
    %208 = vector.extract_strided_slice %173 {offsets = [0, 0], sizes = [8, 15], strides = [1, 1]} : vector<8x16xf32> to vector<8x15xf32>
    %209 = tpu.concatenate %207, %208 in 1 : vector<8x1xf32>, vector<8x15xf32> -> vector<8x16xf32>
    %210 = vector.extract_strided_slice %176 {offsets = [0, 0], sizes = [8, 1], strides = [1, 1]} : vector<8x16xf32> to vector<8x1xf32>
    %211 = vector.extract_strided_slice %176 {offsets = [0, 0], sizes = [8, 15], strides = [1, 1]} : vector<8x16xf32> to vector<8x15xf32>
    %212 = tpu.concatenate %210, %211 in 1 : vector<8x1xf32>, vector<8x15xf32> -> vector<8x16xf32>
    %213 = vector.extract_strided_slice %179 {offsets = [0, 0], sizes = [8, 1], strides = [1, 1]} : vector<8x16xf32> to vector<8x1xf32>
    %214 = vector.extract_strided_slice %179 {offsets = [0, 0], sizes = [8, 15], strides = [1, 1]} : vector<8x16xf32> to vector<8x15xf32>
    %215 = tpu.concatenate %213, %214 in 1 : vector<8x1xf32>, vector<8x15xf32> -> vector<8x16xf32>
    %216 = vector.extract_strided_slice %182 {offsets = [0, 0], sizes = [8, 1], strides = [1, 1]} : vector<8x16xf32> to vector<8x1xf32>
    %217 = vector.extract_strided_slice %182 {offsets = [0, 0], sizes = [8, 15], strides = [1, 1]} : vector<8x16xf32> to vector<8x15xf32>
    %218 = tpu.concatenate %216, %217 in 1 : vector<8x1xf32>, vector<8x15xf32> -> vector<8x16xf32>
    %219 = vector.extract_strided_slice %185 {offsets = [0, 0], sizes = [8, 1], strides = [1, 1]} : vector<8x16xf32> to vector<8x1xf32>
    %220 = vector.extract_strided_slice %185 {offsets = [0, 0], sizes = [8, 15], strides = [1, 1]} : vector<8x16xf32> to vector<8x15xf32>
    %221 = tpu.concatenate %219, %220 in 1 : vector<8x1xf32>, vector<8x15xf32> -> vector<8x16xf32>
    %222 = vector.extract_strided_slice %188 {offsets = [0, 0], sizes = [8, 1], strides = [1, 1]} : vector<8x16xf32> to vector<8x1xf32>
    %223 = vector.extract_strided_slice %188 {offsets = [0, 0], sizes = [8, 15], strides = [1, 1]} : vector<8x16xf32> to vector<8x15xf32>
    %224 = tpu.concatenate %222, %223 in 1 : vector<8x1xf32>, vector<8x15xf32> -> vector<8x16xf32>
    %225 = vector.extract_strided_slice %191 {offsets = [0, 0], sizes = [8, 1], strides = [1, 1]} : vector<8x16xf32> to vector<8x1xf32>
    %226 = vector.extract_strided_slice %191 {offsets = [0, 0], sizes = [8, 15], strides = [1, 1]} : vector<8x16xf32> to vector<8x15xf32>
    %227 = tpu.concatenate %225, %226 in 1 : vector<8x1xf32>, vector<8x15xf32> -> vector<8x16xf32>
    %228 = vector.extract_strided_slice %194 {offsets = [0, 0], sizes = [8, 1], strides = [1, 1]} : vector<8x16xf32> to vector<8x1xf32>
    %229 = vector.extract_strided_slice %194 {offsets = [0, 0], sizes = [8, 15], strides = [1, 1]} : vector<8x16xf32> to vector<8x15xf32>
    %230 = tpu.concatenate %228, %229 in 1 : vector<8x1xf32>, vector<8x15xf32> -> vector<8x16xf32>
    %231 = vector.extract_strided_slice %197 {offsets = [0, 0], sizes = [8, 1], strides = [1, 1]} : vector<8x16xf32> to vector<8x1xf32>
    %232 = vector.extract_strided_slice %197 {offsets = [0, 0], sizes = [8, 15], strides = [1, 1]} : vector<8x16xf32> to vector<8x15xf32>
    %233 = tpu.concatenate %231, %232 in 1 : vector<8x1xf32>, vector<8x15xf32> -> vector<8x16xf32>
    %234 = vector.extract_strided_slice %200 {offsets = [0, 0], sizes = [8, 1], strides = [1, 1]} : vector<8x16xf32> to vector<8x1xf32>
    %235 = vector.extract_strided_slice %200 {offsets = [0, 0], sizes = [8, 15], strides = [1, 1]} : vector<8x16xf32> to vector<8x15xf32>
    %236 = tpu.concatenate %234, %235 in 1 : vector<8x1xf32>, vector<8x15xf32> -> vector<8x16xf32>
    %237 = arith.mulf %203, %6 : vector<8x16xf32>
    %238 = arith.mulf %206, %9 : vector<8x16xf32>
    %239 = arith.addf %237, %238 : vector<8x16xf32>
    %240 = arith.mulf %209, %12 : vector<8x16xf32>
    %241 = arith.addf %239, %240 : vector<8x16xf32>
    %242 = arith.mulf %203, %7 : vector<8x16xf32>
    %243 = arith.mulf %206, %10 : vector<8x16xf32>
    %244 = arith.addf %242, %243 : vector<8x16xf32>
    %245 = arith.mulf %209, %13 : vector<8x16xf32>
    %246 = arith.addf %244, %245 : vector<8x16xf32>
    %247 = arith.mulf %203, %8 : vector<8x16xf32>
    %248 = arith.mulf %206, %11 : vector<8x16xf32>
    %249 = arith.addf %247, %248 : vector<8x16xf32>
    %250 = arith.mulf %209, %14 : vector<8x16xf32>
    %251 = arith.addf %249, %250 : vector<8x16xf32>
    %252 = arith.mulf %212, %6 : vector<8x16xf32>
    %253 = arith.mulf %215, %9 : vector<8x16xf32>
    %254 = arith.addf %252, %253 : vector<8x16xf32>
    %255 = arith.mulf %218, %12 : vector<8x16xf32>
    %256 = arith.addf %254, %255 : vector<8x16xf32>
    %257 = arith.mulf %212, %7 : vector<8x16xf32>
    %258 = arith.mulf %215, %10 : vector<8x16xf32>
    %259 = arith.addf %257, %258 : vector<8x16xf32>
    %260 = arith.mulf %218, %13 : vector<8x16xf32>
    %261 = arith.addf %259, %260 : vector<8x16xf32>
    %262 = arith.mulf %212, %8 : vector<8x16xf32>
    %263 = arith.mulf %215, %11 : vector<8x16xf32>
    %264 = arith.addf %262, %263 : vector<8x16xf32>
    %265 = arith.mulf %218, %14 : vector<8x16xf32>
    %266 = arith.addf %264, %265 : vector<8x16xf32>
    %267 = arith.mulf %221, %6 : vector<8x16xf32>
    %268 = arith.mulf %224, %9 : vector<8x16xf32>
    %269 = arith.addf %267, %268 : vector<8x16xf32>
    %270 = arith.mulf %227, %12 : vector<8x16xf32>
    %271 = arith.addf %269, %270 : vector<8x16xf32>
    %272 = arith.mulf %221, %7 : vector<8x16xf32>
    %273 = arith.mulf %224, %10 : vector<8x16xf32>
    %274 = arith.addf %272, %273 : vector<8x16xf32>
    %275 = arith.mulf %227, %13 : vector<8x16xf32>
    %276 = arith.addf %274, %275 : vector<8x16xf32>
    %277 = arith.mulf %221, %8 : vector<8x16xf32>
    %278 = arith.mulf %224, %11 : vector<8x16xf32>
    %279 = arith.addf %277, %278 : vector<8x16xf32>
    %280 = arith.mulf %227, %14 : vector<8x16xf32>
    %281 = arith.addf %279, %280 : vector<8x16xf32>
    %282 = arith.mulf %203, %45 : vector<8x16xf32>
    %283 = arith.mulf %206, %55 : vector<8x16xf32>
    %284 = arith.addf %282, %283 : vector<8x16xf32>
    %285 = arith.mulf %209, %65 : vector<8x16xf32>
    %286 = arith.addf %284, %285 : vector<8x16xf32>
    %287 = arith.addf %286, %230 : vector<8x16xf32>
    %288 = arith.mulf %212, %45 : vector<8x16xf32>
    %289 = arith.mulf %215, %55 : vector<8x16xf32>
    %290 = arith.addf %288, %289 : vector<8x16xf32>
    %291 = arith.mulf %218, %65 : vector<8x16xf32>
    %292 = arith.addf %290, %291 : vector<8x16xf32>
    %293 = arith.addf %292, %233 : vector<8x16xf32>
    %294 = arith.mulf %221, %45 : vector<8x16xf32>
    %295 = arith.mulf %224, %55 : vector<8x16xf32>
    %296 = arith.addf %294, %295 : vector<8x16xf32>
    %297 = arith.mulf %227, %65 : vector<8x16xf32>
    %298 = arith.addf %296, %297 : vector<8x16xf32>
    %299 = arith.addf %298, %236 : vector<8x16xf32>
    %300 = arith.subf %241, %167 : vector<8x16xf32>
    %301 = arith.mulf %31, %300 : vector<8x16xf32>
    %302 = arith.addf %167, %301 : vector<8x16xf32>
    %303 = arith.subf %246, %170 : vector<8x16xf32>
    %304 = arith.mulf %31, %303 : vector<8x16xf32>
    %305 = arith.addf %170, %304 : vector<8x16xf32>
    %306 = arith.subf %251, %173 : vector<8x16xf32>
    %307 = arith.mulf %31, %306 : vector<8x16xf32>
    %308 = arith.addf %173, %307 : vector<8x16xf32>
    %309 = arith.subf %256, %176 : vector<8x16xf32>
    %310 = arith.mulf %31, %309 : vector<8x16xf32>
    %311 = arith.addf %176, %310 : vector<8x16xf32>
    %312 = arith.subf %261, %179 : vector<8x16xf32>
    %313 = arith.mulf %31, %312 : vector<8x16xf32>
    %314 = arith.addf %179, %313 : vector<8x16xf32>
    %315 = arith.subf %266, %182 : vector<8x16xf32>
    %316 = arith.mulf %31, %315 : vector<8x16xf32>
    %317 = arith.addf %182, %316 : vector<8x16xf32>
    %318 = arith.subf %271, %185 : vector<8x16xf32>
    %319 = arith.mulf %31, %318 : vector<8x16xf32>
    %320 = arith.addf %185, %319 : vector<8x16xf32>
    %321 = arith.subf %276, %188 : vector<8x16xf32>
    %322 = arith.mulf %31, %321 : vector<8x16xf32>
    %323 = arith.addf %188, %322 : vector<8x16xf32>
    %324 = arith.subf %281, %191 : vector<8x16xf32>
    %325 = arith.mulf %31, %324 : vector<8x16xf32>
    %326 = arith.addf %191, %325 : vector<8x16xf32>
    %327 = arith.subf %287, %194 : vector<8x16xf32>
    %328 = arith.mulf %31, %327 : vector<8x16xf32>
    %329 = arith.addf %194, %328 : vector<8x16xf32>
    %330 = arith.subf %293, %197 : vector<8x16xf32>
    %331 = arith.mulf %31, %330 : vector<8x16xf32>
    %332 = arith.addf %197, %331 : vector<8x16xf32>
    %333 = arith.subf %299, %200 : vector<8x16xf32>
    %334 = arith.mulf %31, %333 : vector<8x16xf32>
    %335 = arith.addf %200, %334 : vector<8x16xf32>
    %336 = vector.extract_strided_slice %302 {offsets = [0, 0], sizes = [8, 1], strides = [1, 1]} : vector<8x16xf32> to vector<8x1xf32>
    %337 = vector.extract_strided_slice %302 {offsets = [0, 0], sizes = [8, 15], strides = [1, 1]} : vector<8x16xf32> to vector<8x15xf32>
    %338 = tpu.concatenate %336, %337 in 1 : vector<8x1xf32>, vector<8x15xf32> -> vector<8x16xf32>
    %339 = vector.extract_strided_slice %305 {offsets = [0, 0], sizes = [8, 1], strides = [1, 1]} : vector<8x16xf32> to vector<8x1xf32>
    %340 = vector.extract_strided_slice %305 {offsets = [0, 0], sizes = [8, 15], strides = [1, 1]} : vector<8x16xf32> to vector<8x15xf32>
    %341 = tpu.concatenate %339, %340 in 1 : vector<8x1xf32>, vector<8x15xf32> -> vector<8x16xf32>
    %342 = vector.extract_strided_slice %308 {offsets = [0, 0], sizes = [8, 1], strides = [1, 1]} : vector<8x16xf32> to vector<8x1xf32>
    %343 = vector.extract_strided_slice %308 {offsets = [0, 0], sizes = [8, 15], strides = [1, 1]} : vector<8x16xf32> to vector<8x15xf32>
    %344 = tpu.concatenate %342, %343 in 1 : vector<8x1xf32>, vector<8x15xf32> -> vector<8x16xf32>
    %345 = vector.extract_strided_slice %311 {offsets = [0, 0], sizes = [8, 1], strides = [1, 1]} : vector<8x16xf32> to vector<8x1xf32>
    %346 = vector.extract_strided_slice %311 {offsets = [0, 0], sizes = [8, 15], strides = [1, 1]} : vector<8x16xf32> to vector<8x15xf32>
    %347 = tpu.concatenate %345, %346 in 1 : vector<8x1xf32>, vector<8x15xf32> -> vector<8x16xf32>
    %348 = vector.extract_strided_slice %314 {offsets = [0, 0], sizes = [8, 1], strides = [1, 1]} : vector<8x16xf32> to vector<8x1xf32>
    %349 = vector.extract_strided_slice %314 {offsets = [0, 0], sizes = [8, 15], strides = [1, 1]} : vector<8x16xf32> to vector<8x15xf32>
    %350 = tpu.concatenate %348, %349 in 1 : vector<8x1xf32>, vector<8x15xf32> -> vector<8x16xf32>
    %351 = vector.extract_strided_slice %317 {offsets = [0, 0], sizes = [8, 1], strides = [1, 1]} : vector<8x16xf32> to vector<8x1xf32>
    %352 = vector.extract_strided_slice %317 {offsets = [0, 0], sizes = [8, 15], strides = [1, 1]} : vector<8x16xf32> to vector<8x15xf32>
    %353 = tpu.concatenate %351, %352 in 1 : vector<8x1xf32>, vector<8x15xf32> -> vector<8x16xf32>
    %354 = vector.extract_strided_slice %320 {offsets = [0, 0], sizes = [8, 1], strides = [1, 1]} : vector<8x16xf32> to vector<8x1xf32>
    %355 = vector.extract_strided_slice %320 {offsets = [0, 0], sizes = [8, 15], strides = [1, 1]} : vector<8x16xf32> to vector<8x15xf32>
    %356 = tpu.concatenate %354, %355 in 1 : vector<8x1xf32>, vector<8x15xf32> -> vector<8x16xf32>
    %357 = vector.extract_strided_slice %323 {offsets = [0, 0], sizes = [8, 1], strides = [1, 1]} : vector<8x16xf32> to vector<8x1xf32>
    %358 = vector.extract_strided_slice %323 {offsets = [0, 0], sizes = [8, 15], strides = [1, 1]} : vector<8x16xf32> to vector<8x15xf32>
    %359 = tpu.concatenate %357, %358 in 1 : vector<8x1xf32>, vector<8x15xf32> -> vector<8x16xf32>
    %360 = vector.extract_strided_slice %326 {offsets = [0, 0], sizes = [8, 1], strides = [1, 1]} : vector<8x16xf32> to vector<8x1xf32>
    %361 = vector.extract_strided_slice %326 {offsets = [0, 0], sizes = [8, 15], strides = [1, 1]} : vector<8x16xf32> to vector<8x15xf32>
    %362 = tpu.concatenate %360, %361 in 1 : vector<8x1xf32>, vector<8x15xf32> -> vector<8x16xf32>
    %363 = vector.extract_strided_slice %329 {offsets = [0, 0], sizes = [8, 1], strides = [1, 1]} : vector<8x16xf32> to vector<8x1xf32>
    %364 = vector.extract_strided_slice %329 {offsets = [0, 0], sizes = [8, 15], strides = [1, 1]} : vector<8x16xf32> to vector<8x15xf32>
    %365 = tpu.concatenate %363, %364 in 1 : vector<8x1xf32>, vector<8x15xf32> -> vector<8x16xf32>
    %366 = vector.extract_strided_slice %332 {offsets = [0, 0], sizes = [8, 1], strides = [1, 1]} : vector<8x16xf32> to vector<8x1xf32>
    %367 = vector.extract_strided_slice %332 {offsets = [0, 0], sizes = [8, 15], strides = [1, 1]} : vector<8x16xf32> to vector<8x15xf32>
    %368 = tpu.concatenate %366, %367 in 1 : vector<8x1xf32>, vector<8x15xf32> -> vector<8x16xf32>
    %369 = vector.extract_strided_slice %335 {offsets = [0, 0], sizes = [8, 1], strides = [1, 1]} : vector<8x16xf32> to vector<8x1xf32>
    %370 = vector.extract_strided_slice %335 {offsets = [0, 0], sizes = [8, 15], strides = [1, 1]} : vector<8x16xf32> to vector<8x15xf32>
    %371 = tpu.concatenate %369, %370 in 1 : vector<8x1xf32>, vector<8x15xf32> -> vector<8x16xf32>
    %372 = arith.mulf %338, %6 : vector<8x16xf32>
    %373 = arith.mulf %341, %9 : vector<8x16xf32>
    %374 = arith.addf %372, %373 : vector<8x16xf32>
    %375 = arith.mulf %344, %12 : vector<8x16xf32>
    %376 = arith.addf %374, %375 : vector<8x16xf32>
    %377 = arith.mulf %338, %7 : vector<8x16xf32>
    %378 = arith.mulf %341, %10 : vector<8x16xf32>
    %379 = arith.addf %377, %378 : vector<8x16xf32>
    %380 = arith.mulf %344, %13 : vector<8x16xf32>
    %381 = arith.addf %379, %380 : vector<8x16xf32>
    %382 = arith.mulf %338, %8 : vector<8x16xf32>
    %383 = arith.mulf %341, %11 : vector<8x16xf32>
    %384 = arith.addf %382, %383 : vector<8x16xf32>
    %385 = arith.mulf %344, %14 : vector<8x16xf32>
    %386 = arith.addf %384, %385 : vector<8x16xf32>
    %387 = arith.mulf %347, %6 : vector<8x16xf32>
    %388 = arith.mulf %350, %9 : vector<8x16xf32>
    %389 = arith.addf %387, %388 : vector<8x16xf32>
    %390 = arith.mulf %353, %12 : vector<8x16xf32>
    %391 = arith.addf %389, %390 : vector<8x16xf32>
    %392 = arith.mulf %347, %7 : vector<8x16xf32>
    %393 = arith.mulf %350, %10 : vector<8x16xf32>
    %394 = arith.addf %392, %393 : vector<8x16xf32>
    %395 = arith.mulf %353, %13 : vector<8x16xf32>
    %396 = arith.addf %394, %395 : vector<8x16xf32>
    %397 = arith.mulf %347, %8 : vector<8x16xf32>
    %398 = arith.mulf %350, %11 : vector<8x16xf32>
    %399 = arith.addf %397, %398 : vector<8x16xf32>
    %400 = arith.mulf %353, %14 : vector<8x16xf32>
    %401 = arith.addf %399, %400 : vector<8x16xf32>
    %402 = arith.mulf %356, %6 : vector<8x16xf32>
    %403 = arith.mulf %359, %9 : vector<8x16xf32>
    %404 = arith.addf %402, %403 : vector<8x16xf32>
    %405 = arith.mulf %362, %12 : vector<8x16xf32>
    %406 = arith.addf %404, %405 : vector<8x16xf32>
    %407 = arith.mulf %356, %7 : vector<8x16xf32>
    %408 = arith.mulf %359, %10 : vector<8x16xf32>
    %409 = arith.addf %407, %408 : vector<8x16xf32>
    %410 = arith.mulf %362, %13 : vector<8x16xf32>
    %411 = arith.addf %409, %410 : vector<8x16xf32>
    %412 = arith.mulf %356, %8 : vector<8x16xf32>
    %413 = arith.mulf %359, %11 : vector<8x16xf32>
    %414 = arith.addf %412, %413 : vector<8x16xf32>
    %415 = arith.mulf %362, %14 : vector<8x16xf32>
    %416 = arith.addf %414, %415 : vector<8x16xf32>
    %417 = arith.mulf %338, %45 : vector<8x16xf32>
    %418 = arith.mulf %341, %55 : vector<8x16xf32>
    %419 = arith.addf %417, %418 : vector<8x16xf32>
    %420 = arith.mulf %344, %65 : vector<8x16xf32>
    %421 = arith.addf %419, %420 : vector<8x16xf32>
    %422 = arith.addf %421, %365 : vector<8x16xf32>
    %423 = arith.mulf %347, %45 : vector<8x16xf32>
    %424 = arith.mulf %350, %55 : vector<8x16xf32>
    %425 = arith.addf %423, %424 : vector<8x16xf32>
    %426 = arith.mulf %353, %65 : vector<8x16xf32>
    %427 = arith.addf %425, %426 : vector<8x16xf32>
    %428 = arith.addf %427, %368 : vector<8x16xf32>
    %429 = arith.mulf %356, %45 : vector<8x16xf32>
    %430 = arith.mulf %359, %55 : vector<8x16xf32>
    %431 = arith.addf %429, %430 : vector<8x16xf32>
    %432 = arith.mulf %362, %65 : vector<8x16xf32>
    %433 = arith.addf %431, %432 : vector<8x16xf32>
    %434 = arith.addf %433, %371 : vector<8x16xf32>
    %435 = arith.subf %376, %302 : vector<8x16xf32>
    %436 = arith.mulf %34, %435 : vector<8x16xf32>
    %437 = arith.addf %302, %436 : vector<8x16xf32>
    %438 = arith.subf %381, %305 : vector<8x16xf32>
    %439 = arith.mulf %34, %438 : vector<8x16xf32>
    %440 = arith.addf %305, %439 : vector<8x16xf32>
    %441 = arith.subf %386, %308 : vector<8x16xf32>
    %442 = arith.mulf %34, %441 : vector<8x16xf32>
    %443 = arith.addf %308, %442 : vector<8x16xf32>
    %444 = arith.subf %391, %311 : vector<8x16xf32>
    %445 = arith.mulf %34, %444 : vector<8x16xf32>
    %446 = arith.addf %311, %445 : vector<8x16xf32>
    %447 = arith.subf %396, %314 : vector<8x16xf32>
    %448 = arith.mulf %34, %447 : vector<8x16xf32>
    %449 = arith.addf %314, %448 : vector<8x16xf32>
    %450 = arith.subf %401, %317 : vector<8x16xf32>
    %451 = arith.mulf %34, %450 : vector<8x16xf32>
    %452 = arith.addf %317, %451 : vector<8x16xf32>
    %453 = arith.subf %406, %320 : vector<8x16xf32>
    %454 = arith.mulf %34, %453 : vector<8x16xf32>
    %455 = arith.addf %320, %454 : vector<8x16xf32>
    %456 = arith.subf %411, %323 : vector<8x16xf32>
    %457 = arith.mulf %34, %456 : vector<8x16xf32>
    %458 = arith.addf %323, %457 : vector<8x16xf32>
    %459 = arith.subf %416, %326 : vector<8x16xf32>
    %460 = arith.mulf %34, %459 : vector<8x16xf32>
    %461 = arith.addf %326, %460 : vector<8x16xf32>
    %462 = arith.subf %422, %329 : vector<8x16xf32>
    %463 = arith.mulf %34, %462 : vector<8x16xf32>
    %464 = arith.addf %329, %463 : vector<8x16xf32>
    %465 = arith.subf %428, %332 : vector<8x16xf32>
    %466 = arith.mulf %34, %465 : vector<8x16xf32>
    %467 = arith.addf %332, %466 : vector<8x16xf32>
    %468 = arith.subf %434, %335 : vector<8x16xf32>
    %469 = arith.mulf %34, %468 : vector<8x16xf32>
    %470 = arith.addf %335, %469 : vector<8x16xf32>
    %471 = arith.mulf %437, %2 : vector<8x16xf32>
    %472 = arith.mulf %440, %3 : vector<8x16xf32>
    %473 = arith.addf %471, %472 : vector<8x16xf32>
    %474 = arith.mulf %443, %4 : vector<8x16xf32>
    %475 = arith.addf %473, %474 : vector<8x16xf32>
    %476 = arith.subf %464, %475 : vector<8x16xf32>
    %477 = arith.mulf %446, %2 : vector<8x16xf32>
    %478 = arith.mulf %449, %3 : vector<8x16xf32>
    %479 = arith.addf %477, %478 : vector<8x16xf32>
    %480 = arith.mulf %452, %4 : vector<8x16xf32>
    %481 = arith.addf %479, %480 : vector<8x16xf32>
    %482 = arith.subf %467, %481 : vector<8x16xf32>
    %483 = arith.mulf %455, %2 : vector<8x16xf32>
    %484 = arith.mulf %458, %3 : vector<8x16xf32>
    %485 = arith.addf %483, %484 : vector<8x16xf32>
    %486 = arith.mulf %461, %4 : vector<8x16xf32>
    %487 = arith.addf %485, %486 : vector<8x16xf32>
    %488 = arith.subf %470, %487 : vector<8x16xf32>
    %489 = tpu.concatenate %437, %440, %443, %476, %446, %449, %452, %482, %455, %458, %461, %488 in 0 : vector<8x16xf32>, vector<8x16xf32>, vector<8x16xf32>, vector<8x16xf32>, vector<8x16xf32>, vector<8x16xf32>, vector<8x16xf32>, vector<8x16xf32>, vector<8x16xf32>, vector<8x16xf32>, vector<8x16xf32>, vector<8x16xf32> -> vector<96x16xf32>
    %490 = arith.truncf %489 : vector<96x16xf32> to vector<96x16xbf16>
    %c0_11 = arith.constant 0 : index
    %c0_12 = arith.constant 0 : index
    %491 = vector.load %arg6[%c0_11, %c0_12] : memref<16x896xbf16, #tpu.memory_space<vmem>>, vector<16x896xbf16>
    %cst_13 = arith.constant dense<0.000000e+00> : vector<96x896xf32>
    %492 = tpu.matmul %490, %491, %cst_13 {dimension_numbers = #tpu.dot_dimension_numbers<[1], [0], [0], [1], [0, 0, 1, 1], [], []>} : vector<96x16xbf16>, vector<16x896xbf16>, vector<96x896xf32> -> vector<96x896xf32>
    %493 = vector.extract_strided_slice %492 {offsets = [0, 0], sizes = [8, 896], strides = [1, 1]} : vector<96x896xf32> to vector<8x896xf32>
    %494 = vector.extract_strided_slice %492 {offsets = [8, 0], sizes = [8, 896], strides = [1, 1]} : vector<96x896xf32> to vector<8x896xf32>
    %495 = vector.extract_strided_slice %492 {offsets = [16, 0], sizes = [8, 896], strides = [1, 1]} : vector<96x896xf32> to vector<8x896xf32>
    %496 = vector.extract_strided_slice %492 {offsets = [24, 0], sizes = [8, 896], strides = [1, 1]} : vector<96x896xf32> to vector<8x896xf32>
    %497 = vector.extract_strided_slice %492 {offsets = [32, 0], sizes = [8, 896], strides = [1, 1]} : vector<96x896xf32> to vector<8x896xf32>
    %498 = vector.extract_strided_slice %492 {offsets = [40, 0], sizes = [8, 896], strides = [1, 1]} : vector<96x896xf32> to vector<8x896xf32>
    %499 = vector.extract_strided_slice %492 {offsets = [48, 0], sizes = [8, 896], strides = [1, 1]} : vector<96x896xf32> to vector<8x896xf32>
    %500 = vector.extract_strided_slice %492 {offsets = [56, 0], sizes = [8, 896], strides = [1, 1]} : vector<96x896xf32> to vector<8x896xf32>
    %501 = vector.extract_strided_slice %492 {offsets = [64, 0], sizes = [8, 896], strides = [1, 1]} : vector<96x896xf32> to vector<8x896xf32>
    %502 = vector.extract_strided_slice %492 {offsets = [72, 0], sizes = [8, 896], strides = [1, 1]} : vector<96x896xf32> to vector<8x896xf32>
    %503 = vector.extract_strided_slice %492 {offsets = [80, 0], sizes = [8, 896], strides = [1, 1]} : vector<96x896xf32> to vector<8x896xf32>
    %504 = vector.extract_strided_slice %492 {offsets = [88, 0], sizes = [8, 896], strides = [1, 1]} : vector<96x896xf32> to vector<8x896xf32>
    %505 = vector.extract_strided_slice %24 {offsets = [0, 0], sizes = [8, 896], strides = [1, 1]} : vector<8x2688xf32> to vector<8x896xf32>
    %506 = vector.extract_strided_slice %24 {offsets = [0, 896], sizes = [8, 896], strides = [1, 1]} : vector<8x2688xf32> to vector<8x896xf32>
    %507 = vector.extract_strided_slice %24 {offsets = [0, 1792], sizes = [8, 896], strides = [1, 1]} : vector<8x2688xf32> to vector<8x896xf32>
    %508 = vector.extract_strided_slice %464 {offsets = [0, 4], sizes = [8, 1], strides = [1, 1]} : vector<8x16xf32> to vector<8x1xf32>
    %509 = vector.extract_strided_slice %467 {offsets = [0, 4], sizes = [8, 1], strides = [1, 1]} : vector<8x16xf32> to vector<8x1xf32>
    %510 = vector.extract_strided_slice %470 {offsets = [0, 4], sizes = [8, 1], strides = [1, 1]} : vector<8x16xf32> to vector<8x1xf32>
    %511 = arith.mulf %493, %505 : vector<8x896xf32>
    %512 = arith.mulf %494, %506 : vector<8x896xf32>
    %513 = arith.addf %511, %512 : vector<8x896xf32>
    %514 = arith.mulf %495, %507 : vector<8x896xf32>
    %515 = arith.addf %513, %514 : vector<8x896xf32>
    %516 = arith.addf %515, %496 : vector<8x896xf32>
    %517 = vector.broadcast %508 : vector<8x1xf32> to vector<8x896xf32>
    %518 = arith.subf %516, %517 : vector<8x896xf32>
    %c0_14 = arith.constant 0 : index
    %c0_15 = arith.constant 0 : index
    %519 = vector.load %arg9[%c0_14, %c0_15] : memref<8x2688xf32, #tpu.memory_space<vmem>>, vector<8x896xf32>
    tpu.vector_store %arg9[%c0_14, %c0_15], %518 {strides = array<i32>} : memref<8x2688xf32, #tpu.memory_space<vmem>>, vector<8x896xf32>,
    %520 = arith.mulf %497, %505 : vector<8x896xf32>
    %521 = arith.mulf %498, %506 : vector<8x896xf32>
    %522 = arith.addf %520, %521 : vector<8x896xf32>
    %523 = arith.mulf %499, %507 : vector<8x896xf32>
    %524 = arith.addf %522, %523 : vector<8x896xf32>
    %525 = arith.addf %524, %500 : vector<8x896xf32>
    %526 = vector.broadcast %509 : vector<8x1xf32> to vector<8x896xf32>
    %527 = arith.subf %525, %526 : vector<8x896xf32>
    %c0_16 = arith.constant 0 : index
    %c896 = arith.constant 896 : index
    %528 = vector.load %arg9[%c0_16, %c896] : memref<8x2688xf32, #tpu.memory_space<vmem>>, vector<8x896xf32>
    tpu.vector_store %arg9[%c0_16, %c896], %527 {strides = array<i32>} : memref<8x2688xf32, #tpu.memory_space<vmem>>, vector<8x896xf32>,
    %529 = arith.mulf %501, %505 : vector<8x896xf32>
    %530 = arith.mulf %502, %506 : vector<8x896xf32>
    %531 = arith.addf %529, %530 : vector<8x896xf32>
    %532 = arith.mulf %503, %507 : vector<8x896xf32>
    %533 = arith.addf %531, %532 : vector<8x896xf32>
    %534 = arith.addf %533, %504 : vector<8x896xf32>
    %535 = vector.broadcast %510 : vector<8x1xf32> to vector<8x896xf32>
    %536 = arith.subf %534, %535 : vector<8x896xf32>
    %c0_17 = arith.constant 0 : index
    %c1792 = arith.constant 1792 : index
    %537 = vector.load %arg9[%c0_17, %c1792] : memref<8x2688xf32, #tpu.memory_space<vmem>>, vector<8x896xf32>
    tpu.vector_store %arg9[%c0_17, %c1792], %536 {strides = array<i32>} : memref<8x2688xf32, #tpu.memory_space<vmem>>, vector<8x896xf32>,
    %cst_18 = arith.constant 0.000000e+00 : f32
    %538 = vector.broadcast %cst_18 : f32 to vector<8x80xf32>
    %539 = vector.broadcast %508 : vector<8x1xf32> to vector<8x16xf32>
    %540 = arith.subf %464, %539 : vector<8x16xf32>
    %541 = vector.broadcast %509 : vector<8x1xf32> to vector<8x16xf32>
    %542 = arith.subf %467, %541 : vector<8x16xf32>
    %543 = vector.broadcast %510 : vector<8x1xf32> to vector<8x16xf32>
    %544 = arith.subf %470, %543 : vector<8x16xf32>
    %545 = tpu.concatenate %540, %542, %544, %538 in 1 : vector<8x16xf32>, vector<8x16xf32>, vector<8x16xf32>, vector<8x80xf32> -> vector<8x128xf32>
    %c0_19 = arith.constant 0 : index
    %c0_20 = arith.constant 0 : index
    %546 = vector.load %arg8[%c0_19, %c0_20] : memref<8x128xf32, #tpu.memory_space<vmem>>, vector<8x128xf32>
    tpu.vector_store %arg8[%c0_19, %c0_20], %545 {strides = array<i32>} : memref<8x128xf32, #tpu.memory_space<vmem>>, vector<8x128xf32>,
    return
  }
  func.func @transform_0(%arg0: i32) -> (i32, i32) {
    %c0_i32 = arith.constant 0 : i32
    %c0_i32_0 = arith.constant 0 : i32
    return %arg0, %c0_i32 : i32, i32
  }
  func.func @transform_1(%arg0: i32) -> (i32, i32) {
    %c0_i32 = arith.constant 0 : i32
    %c0_i32_0 = arith.constant 0 : i32
    return %arg0, %c0_i32 : i32, i32
  }
  func.func @transform_2(%arg0: i32) -> (i32, i32) {
    %c0_i32 = arith.constant 0 : i32
    %c0_i32_0 = arith.constant 0 : i32
    %c0_i32_1 = arith.constant 0 : i32
    return %c0_i32, %c0_i32_0 : i32, i32
  }
  func.func @transform_3(%arg0: i32) -> (i32, i32) {
    %c0_i32 = arith.constant 0 : i32
    %c0_i32_0 = arith.constant 0 : i32
    %c0_i32_1 = arith.constant 0 : i32
    return %c0_i32, %c0_i32_0 : i32, i32
  }
  func.func @transform_4(%arg0: i32) -> (i32, i32) {
    %c0_i32 = arith.constant 0 : i32
    %c0_i32_0 = arith.constant 0 : i32
    %c0_i32_1 = arith.constant 0 : i32
    return %c0_i32, %c0_i32_0 : i32, i32
  }
  func.func @transform_5(%arg0: i32) -> (i32, i32) {
    %c0_i32 = arith.constant 0 : i32
    %c0_i32_0 = arith.constant 0 : i32
    %c0_i32_1 = arith.constant 0 : i32
    return %c0_i32, %c0_i32_0 : i32, i32
  }
  func.func @transform_6(%arg0: i32) -> (i32, i32) {
    %c0_i32 = arith.constant 0 : i32
    %c0_i32_0 = arith.constant 0 : i32
    %c0_i32_1 = arith.constant 0 : i32
    return %c0_i32, %c0_i32_0 : i32, i32
  }
  func.func @transform_7(%arg0: i32) -> (i32, i32) {
    %c0_i32 = arith.constant 0 : i32
    %c0_i32_0 = arith.constant 0 : i32
    return %arg0, %c0_i32 : i32, i32
  }
  func.func @transform_8(%arg0: i32) -> (i32, i32) {
    %c0_i32 = arith.constant 0 : i32
    %c0_i32_0 = arith.constant 0 : i32
    return %arg0, %c0_i32 : i32, i32
  }
}

</mosaic_0001>

<bundles_post_ra>
// kernel: mano_branch_forward.2
= control target key start
LH: loop header
LB: loop body
LE: loop exit
PB: predicated region body
PF: predicated region fallthrough
CT: control target
= control target key end

     0   :  { %12 = vsyncpa [#allocation3], 0  ;;  %s732_s0 = inlined_call_operand.vmem [shape: f32[8,128], index: 0, kind: input, shape index: {}]   ;;  %s733_s1 = inlined_call_operand.vmem [shape: bf16[128,128], index: 1, kind: input, shape index: {}]   ;;  %s734_s2 = inlined_call_operand.vmem [shape: f32[1,128], index: 2, kind: input, shape index: {}]   ;;  %s735_s3 = inlined_call_operand.hbm [shape: bf16[128,128], index: 3, kind: input, shape index: {}]   ;;  %s736_s4 = inlined_call_operand.vmem [shape: f32[1,128], index: 4, kind: input, shape index: {}]   ;;  %s737_s5 = inlined_call_operand.hbm [shape: bf16[128,128], index: 5, kind: input, shape index: {}]   ;;  %s738_s6 = inlined_call_operand.vmem [shape: f32[1,128], index: 6, kind: input, shape index: {}]   ;;  %s739_s7 = inlined_call_operand.vmem [shape: f32[8,128], index: 7, kind: output, shape index: {}]  }
   0x1   :  { %13 = vsyncpa [#allocation5], 0  ;;  %s593_s24 = smov [#allocation2]   ;;  %s545_s28 = scalar_lea.hbm %s735_s3, 1024 }
   0x2   :  { %s25_s25 = sshll.u32 %s593_s24, 4  ;;  %p546_p0 = scmp.ne.s32.totalorder %s735_s3, %s545_s28  ;;  %s26_s25 = int_to_ptr.vmem [resolvable:$true] %s25_s25 }
   0x3   :  { %p549_p1 = scmp.lt.u32.totalorder %s545_s28, %s735_s3 }
   0x5   :  { %p551_p2 = pnand %p549_p1, %p546_p0 }
   0x7   :  { %554 = shalt.err (!%p551_p2)
}
   0x8   :  { %s555_s10 = scalar_lea.vmem %s26_s25, 1024  ;;  %p560_p4 = scmp.lt.s32.totalorder %s26_s25, %s26_s25 }
   0x9   :  { %p556_p3 = scmp.ne.s32.totalorder %s26_s25, %s555_s10  ;;  %p561_p5 = scmp.lt.s32.totalorder %s555_s10, %s555_s10 }
   0xb   :  { %p562_p6 = por %p561_p5, %p560_p4 }
   0xd   :  { %p563_p7 = pnand %p562_p6, %p556_p3 }
   0xf   :  { %566 = shalt.err (!%p563_p7)
}
  0x10   :  { %s594_s11 = smov 64   ;;  %s595_s12 = smov 4  }
  0x11   :  { %31 = dma.hbm_to_vmem [thread:$0]  %s735_s3, 1024, %s26_s25, [#allocation3], %s594_s11, %s594_s11, %s595_s12  }
  0x12   :  { %s596_s15 = smov [#allocation4]   ;;  %s567_s19 = scalar_lea.hbm %s737_s5, 1024 }
  0x13   :  { %s39_s16 = sshll.u32 %s596_s15, 4  ;;  %p568_p8 = scmp.ne.s32.totalorder %s737_s5, %s567_s19  ;;  %s40_s16 = int_to_ptr.vmem [resolvable:$true] %s39_s16 }
  0x14   :  { %p571_p9 = scmp.lt.u32.totalorder %s567_s19, %s737_s5 }
  0x16   :  { %p573_p10 = pnand %p571_p9, %p568_p8 }
  0x18   :  { %576 = shalt.err (!%p573_p10)
}
  0x19   :  { %s577_s24 = scalar_lea.vmem %s40_s16, 1024  ;;  %p582_p12 = scmp.lt.s32.totalorder %s40_s16, %s40_s16 }
  0x1a   :  { %p578_p11 = scmp.ne.s32.totalorder %s40_s16, %s577_s24  ;;  %p583_p13 = scmp.lt.s32.totalorder %s577_s24, %s577_s24 }
  0x1c   :  { %p584_p0 = por %p583_p13, %p582_p12 }
  0x1e   :  { %p585_p1 = pnand %p584_p0, %p578_p11 }
  0x20   :  { %588 = shalt.err (!%p585_p1)
}
  0x21   :  { %45 = dma.hbm_to_vmem [thread:$0]  %s737_s5, 1024, %s40_s16, [#allocation5], %s594_s11, %s594_s11, %s595_s12  }
  0x22   :  { %589 = dma.done.wait [#allocation3], 1024  }
  0x23   :  { %590 = vsyncadd [#allocation3], 4294966272 }
  0x24   :  { %591 = dma.done.wait [#allocation5], 1024  }
  0x25   :  { %592 = vsyncadd [#allocation5], 4294966272  ;;  %v597_v0 = vmov 0.0   ;;  %vm598_vm0 = vmmov 0   ;;  %v521_v1 = vld [vmem:[%s733_s1] sm:$0xff]   ;;  %v522_v2 = vld [vmem:[%s733_s1 + $0x8] sm:$0xff]  }
  0x26   :  { %455 = vmatprep.subr.bf16.mxu0 %v597_v0  ;;  %471 = vmatprep.mubr.msk.bf16.mxu0 %vm598_vm0, %v597_v0  ;;  %v523_v3 = vld [vmem:[%s733_s1 + $0x10] sm:$0xff]   ;;  %v529_v4 = vld [vmem:[#allocation2] sm:$0xff]   ;;  %v524_v5 = vld [vmem:[%s733_s1 + $0x18] sm:$0xff]  }
  0x27   :  { %475 = vmatprep.subr.bf16.mxu1 %v597_v0  ;;  %491 = vmatprep.mubr.msk.bf16.mxu1 %vm598_vm0, %v597_v0  ;;  %v530_v6 = vld [vmem:[#allocation2 + $0x8] sm:$0xff]   ;;  %v525_v7 = vld [vmem:[%s733_s1 + $0x20] sm:$0xff]   ;;  %v531_v8 = vld [vmem:[#allocation2 + $0x10] sm:$0xff]  }
  0x28   :  { %456 = vmatpush3.bf16.msra.mxu0 %v521_v1  ;;  %476 = vmatpush3.bf16.msra.mxu1 %v529_v4  ;;  %v526_v9 = vld [vmem:[%s733_s1 + $0x28] sm:$0xff]   ;;  %v532_v10 = vld [vmem:[#allocation2 + $0x18] sm:$0xff]   ;;  %v527_v11 = vld [vmem:[%s733_s1 + $0x30] sm:$0xff]  }
  0x29   :  { %457 = vmatprep.subr.bf16.mxu0 %v597_v0  ;;  %477 = vmatprep.subr.bf16.mxu1 %v597_v0  ;;  %v533_v12 = vld [vmem:[#allocation2 + $0x20] sm:$0xff]   ;;  %v528_v13 = vld [vmem:[%s733_s1 + $0x38] sm:$0xff]   ;;  %v55_v14 = vld [vmem:[%s732_s0] sm:$0xff] }
  0x2a   :  { %v534_v15 = vld [vmem:[#allocation2 + $0x28] sm:$0xff]   ;;  %v56_v16 = vpack.c.bf16 %v55_v14, %v55_v14  ;;  %v535_v17 = vld [vmem:[#allocation2 + $0x30] sm:$0xff]   ;;  %v536_v18 = vld [vmem:[#allocation2 + $0x38] sm:$0xff]  }
  0x2b   :  { %v537_v19 = vld [vmem:[#allocation4] sm:$0xff]   ;;  %v538_v20 = vld [vmem:[#allocation4 + $0x8] sm:$0xff]   ;;  %v539_v21 = vld [vmem:[#allocation4 + $0x10] sm:$0xff]  }
  0x2c   :  { %458 = vmatpush3.bf16.msra.mxu0 %v522_v2  ;;  %478 = vmatpush3.bf16.msra.mxu1 %v530_v6  ;;  %v540_v22 = vld [vmem:[#allocation4 + $0x18] sm:$0xff]   ;;  %v541_v23 = vld [vmem:[#allocation4 + $0x20] sm:$0xff]   ;;  %v542_v24 = vld [vmem:[#allocation4 + $0x28] sm:$0xff]  }
  0x2d   :  { %459 = vmatprep.subr.bf16.mxu0 %v597_v0  ;;  %479 = vmatprep.subr.bf16.mxu1 %v597_v0  ;;  %v401_v25 = vld [vmem:[%s734_s2] ss:$0 sm:$0xff]  ;;  %v543_v33 = vld [vmem:[#allocation4 + $0x30] sm:$0xff]  }
  0x2e   :  { %v544_v34 = vld [vmem:[#allocation4 + $0x38] sm:$0xff]  }
  0x2f   :  { %v410_v35 = vld [vmem:[%s736_s4] ss:$0 sm:$0xff] }
  0x30   :  { %460 = vmatpush3.bf16.msra.mxu0 %v523_v3  ;;  %480 = vmatpush3.bf16.msra.mxu1 %v531_v8  ;;  %v419_v43 = vld [vmem:[%s738_s6] ss:$0 sm:$0xff] }
  0x31   :  { %461 = vmatprep.subr.bf16.mxu0 %v597_v0  ;;  %481 = vmatprep.subr.bf16.mxu1 %v597_v0 }
  0x34   :  { %462 = vmatpush3.bf16.msra.mxu0 %v524_v5  ;;  %482 = vmatpush3.bf16.msra.mxu1 %v532_v10 }
  0x35   :  { %463 = vmatprep.subr.bf16.mxu0 %v597_v0  ;;  %483 = vmatprep.subr.bf16.mxu1 %v597_v0 }
  0x38   :  { %464 = vmatpush3.bf16.msra.mxu0 %v525_v7  ;;  %484 = vmatpush3.bf16.msra.mxu1 %v533_v12 }
  0x39   :  { %465 = vmatprep.subr.bf16.mxu0 %v597_v0  ;;  %485 = vmatprep.subr.bf16.mxu1 %v597_v0 }
  0x3c   :  { %466 = vmatpush3.bf16.msra.mxu0 %v526_v9  ;;  %486 = vmatpush3.bf16.msra.mxu1 %v534_v15 }
  0x3d   :  { %467 = vmatprep.subr.bf16.mxu0 %v597_v0  ;;  %487 = vmatprep.subr.bf16.mxu1 %v597_v0 }
  0x40   :  { %468 = vmatpush3.bf16.msra.mxu0 %v527_v11  ;;  %488 = vmatpush3.bf16.msra.mxu1 %v535_v17 }
  0x41   :  { %469 = vmatprep.subr.bf16.mxu0 %v597_v0  ;;  %489 = vmatprep.subr.bf16.mxu1 %v597_v0 }
  0x44   :  { %470 = vmatpush3.bf16.msra.mxu0 %v528_v13  ;;  %490 = vmatpush3.bf16.msra.mxu1 %v536_v18 }
  0x45   :  { %495 = vmatprep.subr.bf16.mxu0 %v597_v0 }
  0x47   :  { %472 = vmatmul.mubr.bf16.vlgmr.msra.gmra.mrb[0].mxu0 %v56_v16 }
  0x48   :  { %511 = vmatprep.mubr.msk.bf16.mxu0 %vm598_vm0, %v597_v0  ;;  %496 = vmatpush3.bf16.msra.mxu0 %v537_v19 }
  0x49   :  { %497 = vmatprep.subr.bf16.mxu0 %v597_v0 }
  0x4c   :  { %498 = vmatpush3.bf16.msra.mxu0 %v538_v20 }
  0x4d   :  { %499 = vmatprep.subr.bf16.mxu0 %v597_v0 }
  0x50   :  { %500 = vmatpush3.bf16.msra.mxu0 %v539_v21 }
  0x51   :  { %501 = vmatprep.subr.bf16.mxu0 %v597_v0 }
  0x54   :  { %502 = vmatpush3.bf16.msra.mxu0 %v540_v22 }
  0x55   :  { %503 = vmatprep.subr.bf16.mxu0 %v597_v0 }
  0x58   :  { %504 = vmatpush3.bf16.msra.mxu0 %v541_v23 }
  0x59   :  { %505 = vmatprep.subr.bf16.mxu0 %v597_v0 }
  0x5c   :  { %506 = vmatpush3.bf16.msra.mxu0 %v542_v24 }
  0x5d   :  { %507 = vmatprep.subr.bf16.mxu0 %v597_v0 }
  0x60   :  { %508 = vmatpush3.bf16.msra.mxu0 %v543_v33 }
  0x61   :  { %509 = vmatprep.subr.bf16.mxu0 %v597_v0 }
  0x64   :  { %510 = vmatpush3.bf16.msra.mxu0 %v544_v34 }
 0x11a   :  { %v162_v26 = vpop.f32.mrb[0].mxu0 }
 0x11b   :  { %v163_v27 = vadd.f32 %v401_v25, %v162_v26  ;;  %v473_v28 = vpop.f32.mrb[1].mxu0 }
 0x11c   :  { %v165_v29 = vpop.f32.mrb[2].mxu0 }
 0x11d   :  { %v168_v30 = vmax.f32 %v163_v27, 0.0  ;;  %v474_v31 = vpop.f32.mrb[3].mxu0 }
 0x11f   :  { %v169_v32 = vpack.c.bf16 %v168_v30, %v168_v30 }
 0x121   :  { %492 = vmatmul.mubr.bf16.vlgmr.msra.gmra.mrb[0].mxu1 %v169_v32 }
 0x1f4   :  { %v275_v36 = vpop.f32.mrb[0].mxu1 }
 0x1f5   :  { %v276_v37 = vadd.f32 %v410_v35, %v275_v36  ;;  %v493_v38 = vpop.f32.mrb[1].mxu1 }
 0x1f6   :  { %v278_v39 = vpop.f32.mrb[2].mxu1 }
 0x1f7   :  { %v281_v40 = vmax.f32 %v276_v37, 0.0  ;;  %v494_v41 = vpop.f32.mrb[3].mxu1 }
 0x1f9   :  { %v282_v42 = vpack.c.bf16 %v281_v40, %v281_v40 }
 0x1fb   :  { %512 = vmatmul.mubr.bf16.vlgmr.msra.gmra.mrb[4].mxu0 %v282_v42 }
 0x2ce   :  { %v388_v44 = vpop.f32.mrb[4].mxu0 }
 0x2cf   :  { %v389_v45 = vadd.f32 %v419_v43, %v388_v44  ;;  %v513_v46 = vpop.f32.mrb[5].mxu0 }
 0x2d0   :  { %v391_v47 = vpop.f32.mrb[6].mxu0 }
 0x2d1   :  { %394 = vst [vmem:[%s739_s7] sm:$0xff] %v389_v45  ;;  %v514_v48 = vpop.f32.mrb[7].mxu0 }
 0x2d2   :  { %399 = vsyncpa [#allocation3], 1 }
 0x2d3   :  { %400 = vsyncpa [#allocation5], 1 }

// kernel: mano_branch_forward.3
= control target key start
LH: loop header
LB: loop body
LE: loop exit
PB: predicated region body
PF: predicated region fallthrough
CT: control target
= control target key end

     0   :  { %14 = vsyncpa [#allocation3], 0  ;;  %s4254_s27 = smov [#allocation2]   ;;  %s5574_s0 = inlined_call_operand.vmem [shape: f32[8,128], index: 0, kind: input, shape index: {}]   ;;  %s5575_s1 = inlined_call_operand.vmem [shape: f32[8,144], index: 1, kind: input, shape index: {}]   ;;  %s5576_s2 = inlined_call_operand.vmem [shape: f32[1,144], index: 2, kind: input, shape index: {}]   ;;  %s5577_s3 = inlined_call_operand.vmem [shape: f32[1,2688], index: 3, kind: input, shape index: {}]   ;;  %s5578_s4 = inlined_call_operand.hbm [shape: bf16[154,2688], index: 4, kind: input, shape index: {}]   ;;  %s5579_s5 = inlined_call_operand.vmem [shape: bf16[16,896], index: 5, kind: input, shape index: {}]   ;;  %s5580_s6 = inlined_call_operand.vmem [shape: f32[3,16], index: 6, kind: input, shape index: {}]   ;;  %s5581_s7 = inlined_call_operand.vmem [shape: f32[8,128], index: 7, kind: output, shape index: {0}]   ;;  %s5582_s8 = inlined_call_operand.vmem [shape: f32[8,2688], index: 8, kind: output, shape index: {1}]  }
   0x1   :  { %s28_s28 = sshll.u32 %s4254_s27, 4  ;;  %s4230_s9 = scalar_lea.hbm %s5578_s4, 26880  ;;  %s29_s28 = int_to_ptr.vmem [resolvable:$true] %s28_s28 }
   0x2   :  { %p4231_p0 = scmp.ne.s32.totalorder %s5578_s4, %s4230_s9  ;;  %p4234_p1 = scmp.lt.u32.totalorder %s4230_s9, %s5578_s4 }
   0x4   :  { %p4236_p2 = pnand %p4234_p1, %p4231_p0 }
   0x6   :  { %4239 = shalt.err (!%p4236_p2)
}
   0x7   :  { %s4240_s14 = scalar_lea.vmem %s29_s28, 26880  ;;  %p4245_p4 = scmp.lt.s32.totalorder %s29_s28, %s29_s28 }
   0x8   :  { %p4241_p3 = scmp.ne.s32.totalorder %s29_s28, %s4240_s14  ;;  %p4246_p5 = scmp.lt.s32.totalorder %s4240_s14, %s4240_s14 }
   0xa   :  { %p4247_p6 = por %p4246_p5, %p4245_p4 }
   0xc   :  { %p4248_p7 = pnand %p4247_p6, %p4241_p3 }
   0xe   :  { %4251 = shalt.err (!%p4248_p7)
}
   0xf   :  { %s4255_s15 = smov 1344   ;;  %s4256_s16 = smov 84  }
  0x10   :  { %34 = dma.hbm_to_vmem [thread:$0]  %s5578_s4, 26880, %s29_s28, [#allocation3], %s4255_s15, %s4255_s15, %s4256_s16  }
  0x11   :  { %4252 = dma.done.wait [#allocation3], 26880  }
  0x12   :  { %4253 = vsyncadd [#allocation3], 4294940416  ;;  %v4257_v0 = vmov 64   ;;  %v4258_v1 = vmov 16   ;;  %v4357_v2 = vld [vmem:[%s5575_s1] sm:$0xff]  ;;  %v4259_v3 = vmov 80   ;;  %v48_v23 = vlaneseq }
  0x13   :  { %3885 = vset.pattern.permute.xlu1 %v4257_v0  ;;  %3883 = vset.pattern.permute.xlu0 %v4258_v1  ;;  %v4260_v4 = vmov 32   ;;  %v4367_v5 = vld [vmem:[%s5575_s1 + $0x8] sm:$0xff]  ;;  %v5587_v6 = vmov 112   ;;  %v5589_v7 = vmov 0   ;;  %v4376_v8 = vld [vmem:[%s5574_s0] sm:$0xff]  ;;  %v4263_v9 = vmov 92  }
  0x14   :  { %2076 = vperm.xlu1 %3885, %v4357_v2   ;;  %2064 = vperm.xlu0 %3883, %v4357_v2   ;;  %v4264_v10 = vmov 76   ;;  %s4265_s24 = smov 52   ;;  %v4266_v11 = vmov 48   ;;  %s4267_s25 = smov 37   ;;  %v4268_v12 = vmov 108   ;;  %v4428_v27 = vshrl.u32 %v48_v23, 7 }
  0x15   :  { %s4269_s26 = smov 53   ;;  %s4270_s27 = smov 36   ;;  %v4275_v30 = vmov 96   ;;  %v1986_v33 = vld [vmem:[%s5580_s6] sm:$0x7]  ;;  %vm2011_vm0 = vcmask 7168  }
  0x16   :  { %s4271_s28 = smov 80   ;;  %s4272_s29 = smov 32   ;;  %v4434_v31 = vsub.s32 1, %v4428_v27  ;;  %v4437_v32 = vsub.s32 2, %v4428_v27  ;;  %v4443_v34 = vsub.s32 0, %v4428_v27  ;;  %vm1343_vm1 = vcmask 1044480  }
  0x17   :  { %s4273_s30 = smov 20   ;;  %s4274_s9 = smov 21   ;;  %vm70_vm2 = vcmask 80896   ;;  %vm1339_vm3 = vcmask 211968   ;;  %vm2963_vm4 = vcmask 130048   ;;  %vm3541_vm5 = vcmask 261120  }
  0x18   :  { %3886 = vset.pattern.permute.xlu1 %v4259_v3  ;;  %3884 = vset.pattern.permute.xlu0 %v4260_v4  ;;  %v4453_v38 = vrot.slane %v1986_v33, %v4434_v31  ;;  %v4456_v39 = vrot.slane %v1986_v33, %v4437_v32  ;;  %v4459_v40 = vrot.slane %v1986_v33, %v4443_v34  ;;  %s5583_s6 = smov 76   ;;  %s4277_s12 = smov 92   ;;  %vm3543_vm6 = vcmask 392192  }
  0x19   :  { %2080 = vperm.xlu1 %3886, %v4357_v2   ;;  %2068 = vperm.xlu0 %3884, %v4357_v2   ;;  %s4278_s13 = smov 112   ;;  %s4279_s14 = smov 96  }
  0x1a   :  { %v1999_v43 = vadd.f32 %v4456_v39, %v4453_v38  ;;  %s4280_s15 = smov 108   ;;  %s5585_s16 = smov 16  }
  0x1b   :  { %s4282_s17 = smov 48   ;;  %s4283_s18 = smov 64  }
  0x1c   :  { %s4284_s19 = smov 1   ;;  %s4285_s20 = smov 113  }
  0x1d   :  { %3887 = vset.pattern.permute.xlu1 %v5587_v6  ;;  %3888 = vset.pattern.permute.xlu0 %v5589_v7  ;;  %s4286_s4 = smov 97   ;;  %s4287_s21 = smov 81  }
  0x1e   :  { %2088 = vperm.xlu1 %3887, %v4357_v2   ;;  %2093 = vperm.xlu0 %3888, %v4367_v5   ;;  %s4288_s22 = smov 65   ;;  %s4289_s23 = smov 49  }
  0x1f   :  { %s4290_s10 = smov 33   ;;  %s4291_s11 = smov 17  }
  0x22   :  { %3889 = vset.pattern.permute.xlu1 %v5589_v7  ;;  %3891 = vset.pattern.permute.xlu0 %v4263_v9 }
  0x23   :  { %2060 = vperm.xlu1 %3889, %v4357_v2   ;;  %2021 = vperm.xlu0 %3891, %v4376_v8  }
  0x27   :  { %3890 = vset.pattern.permute.xlu1 %v4264_v10  ;;  %2005 = vrot.lane.b32.xlu0 %v4376_v8, %s4265_s24 }
  0x28   :  { %2001 = vperm.xlu1 %3890, %v4376_v8   ;;  %3893 = vset.pattern.permute.xlu0 %v4266_v11 }
  0x2b   :  { %2028 = vrot.lane.b32.xlu0 %v4376_v8, %s4267_s25 }
  0x2c   :  { %3892 = vset.pattern.permute.xlu1 %v4268_v12 }
  0x2d   :  { %2040 = vperm.xlu1 %3892, %v4376_v8  }
  0x31   :  { %2008 = vrot.lane.b32.xlu1 %v4376_v8, %s4269_s26 }
  0x32   :  { %3896 = vset.pattern.permute.xlu1 %v4263_v9 }
  0x35   :  { %2025 = vrot.lane.b32.xlu1 %v4376_v8, %s4270_s27 }
  0x93   :  { %v4393_v13 = vpop.permute.xlu0 %2064  ;;  %v4395_v14 = vpop.permute.xlu1 %2076 }
  0x94   :  { %v2112_v15 = vmul.f32 %v4393_v13, %v4357_v2  ;;  %v2131_v21 = vmul.f32 %v4395_v14, %v4357_v2 }
  0x96   :  { %2114 = vrot.lane.b32.xlu1 %v2112_v15, %s4271_s28 }
  0x98   :  { %v4400_v16 = vpop.permute.xlu0 %2068  ;;  %v4402_v17 = vpop.permute.xlu1 %2080 }
  0x99   :  { %v2118_v18 = vmul.f32 %v4400_v16, %v4357_v2  ;;  %v2124_v19 = vmul.f32 %v4400_v16, %v4367_v5  ;;  %v2143_v25 = vmul.f32 %v4402_v17, %v4367_v5  ;;  %v2137_v26 = vmul.f32 %v4402_v17, %v4357_v2 }
  0x9b   :  { %2120 = vrot.lane.b32.xlu0 %v2118_v18, %s4272_s29  ;;  %2126 = vrot.lane.b32.xlu1 %v2124_v19, %s4272_s29 }
  0x9d   :  { %v4410_v20 = vpop.permute.xlu1 %2088  ;;  %v4418_v22 = vpop.permute.xlu0 %2093 }
  0x9e   :  { %v2150_v35 = vmul.f32 %v4410_v20, %v4357_v2  ;;  %v2156_v41 = vmul.f32 %v4418_v22, %v4357_v2 }
  0x9f   :  { %2044 = vrot.lane.b32.xlu0 %v4376_v8, %s4273_s30  ;;  %2047 = vrot.lane.b32.xlu1 %v4376_v8, %s4274_s9 }
  0xa2   :  { %v4420_v24 = vpop.permute.xlu1 %2060  ;;  %v2022_v28 = vpop.permute.xlu0 %2021 }
  0xa3   :  { %2072 = vperm.xlu0 %3893, %v4357_v2   ;;  %2133 = vrot.lane.b32.xlu1 %v2131_v21, %s4271_s28  ;;  %v2024_v48 = vmul.f32 %v2022_v28, %v4459_v40  ;;  %v2111_v55 = vmul.f32 %v4420_v24, %v4357_v2 }
  0xa6   :  { %v4450_v37 = vpop.permute.xlu0 %2005 }
  0xa7   :  { %2145 = vrot.lane.b32.xlu0 %v2143_v25, %s4272_s29  ;;  %v2002_v29 = vpop.permute.xlu1 %2001  ;;  %2139 = vrot.lane.b32.xlu1 %v2137_v26, %s4272_s29 }
  0xa8   :  { %3894 = vset.pattern.permute.xlu0 %v4275_v30  ;;  %v2004_v42 = vmul.f32 %v2002_v29, %v4459_v40 }
  0xaa   :  { %v2029_v47 = vpop.permute.xlu0 %2028 }
  0xab   :  { %2084 = vperm.xlu0 %3894, %v4357_v2   ;;  %2234 = vrot.lane.b32.xlu1 %v4357_v2, %s4271_s28 }
  0xac   :  { %v2041_v36 = vpop.permute.xlu1 %2040 }
  0xad   :  { %v2043_v4 = vmul.f32 %v2041_v36, %v4459_v40 }
  0xaf   :  { %2152 = vrot.lane.b32.xlu1 %v2150_v35, %s4271_s28  ;;  %2265 = vrot.lane.b32.xlu0 %v4357_v2, %s4272_s29 }
  0xb0   :  { %v2009_v44 = vpop.permute.xlu1 %2008  ;;  %3895 = vset.pattern.permute.xlu0 %v4264_v10 }
  0xb1   :  { %v2012_v45 = vsel %vm2011_vm0, %v4450_v37, %v2009_v44 }
  0xb2   :  { %v2013_v46 = vmul.f32 %v2012_v45, %v1999_v43 }
  0xb3   :  { %2158 = vrot.lane.b32.xlu1 %v2156_v41, %s4272_s29 }
  0xb4   :  { %v2026_v49 = vpop.permute.xlu1 %2025  ;;  %v2014_v50 = vadd.f32 %v2013_v46, %v2004_v42 }
  0xb5   :  { %v2031_v51 = vsel %vm2011_vm0, %v2026_v49, %v2029_v47 }
  0xb6   :  { %v2032_v52 = vmul.f32 %v2031_v51, %v1999_v43  ;;  %2016 = vrot.lane.b32.xlu0 %v2014_v50, %s5583_s6 }
  0xb8   :  { %v2033_v53 = vadd.f32 %v2032_v52, %v2024_v48 }
  0xba   :  { %2035 = vrot.lane.b32.xlu1 %v2033_v53, %s4277_s12 }
 0x108   :  { %v2115_v54 = vpop.permute.xlu1 %2114 }
 0x109   :  { %v2117_v56 = vadd.f32 %v2115_v54, %v2111_v55 }
 0x10d   :  { %v2121_v57 = vpop.permute.xlu0 %2120  ;;  %v2127_v58 = vpop.permute.xlu1 %2126 }
 0x10e   :  { %v2123_v59 = vadd.f32 %v2121_v57, %v2117_v56  ;;  %v2129_v60 = vadd.f32 %v2127_v58, %v2117_v56 }
 0x110   :  { %v4480_v61 = vsub.f32 %v2123_v59, %v4357_v2  ;;  %v2223_v62 = vsub.f32 %v2129_v60, %v4357_v2 }
 0x111   :  { %v4483_v63 = vpop.permute.xlu0 %2044  ;;  %v2048_v0 = vpop.permute.xlu1 %2047 }
 0x112   :  { %v2050_v1 = vsel %vm2011_vm0, %v4483_v63, %v2048_v0  ;;  %2214 = vrot.lane.b32.xlu1 %v4480_v61, %s4278_s13  ;;  %2225 = vrot.lane.b32.xlu0 %v2223_v62, %s4279_s14 }
 0x113   :  { %v2051_v9 = vmul.f32 %v2050_v1, %v1999_v43  ;;  %v2162_v43 = vmul.f32 %v4418_v22, %v4367_v5 }
 0x115   :  { %v2052_v10 = vadd.f32 %v2051_v9, %v2043_v4  ;;  %v2134_v11 = vpop.permute.xlu1 %2133 }
 0x117   :  { %2054 = vrot.lane.b32.xlu1 %v2052_v10, %s4280_s15 }
 0x119   :  { %v2140_v15 = vpop.permute.xlu1 %2139 }
 0x11d   :  { %v4492_v18 = vpop.permute.xlu1 %2234 }
 0x121   :  { %v2153_v29 = vpop.permute.xlu1 %2152 }
 0x122   :  { %v4494_v19 = vpop.permute.xlu0 %2072 }
 0x123   :  { %v2130_v21 = vmul.f32 %v4494_v19, %v4357_v2 }
 0x125   :  { %v2136_v23 = vadd.f32 %v2134_v11, %v2130_v21  ;;  %v2159_v44 = vpop.permute.xlu1 %2158  ;;  %v2211_v11 = vmul.f32 %v4480_v61, %v4459_v40 }
 0x126   :  { %v2146_v25 = vpop.permute.xlu0 %2145 }
 0x127   :  { %v2142_v26 = vadd.f32 %v2140_v15, %v2136_v23  ;;  %v2148_v28 = vadd.f32 %v2146_v25, %v2136_v23  ;;  %v4567_v23 = vadd.f32 %v2211_v11, %v4357_v2 }
 0x129   :  { %v2254_v33 = vsub.f32 %v2148_v28, %v4492_v18  ;;  %v2237_v35 = vsub.f32 %v2142_v26, %v4492_v18 }
 0x12a   :  { %v4500_v36 = vpop.permute.xlu0 %2084 }
 0x12b   :  { %v2149_v41 = vmul.f32 %v4500_v36, %v4357_v2  ;;  %2256 = vrot.lane.b32.xlu1 %v2254_v33, %s4279_s14  ;;  %2245 = vrot.lane.b32.xlu0 %v2237_v35, %s4278_s13  ;;  %v2238_v59 = vmul.f32 %v2237_v35, %v4459_v40 }
 0x12c   :  { %v2036_v50 = vpop.permute.xlu1 %2035 }
 0x12d   :  { %v2155_v42 = vadd.f32 %v2153_v29, %v2149_v41  ;;  %v4523_v54 = vsub.f32 %v4376_v8, %v2036_v50 }
 0x12e   :  { %v4508_v45 = vpop.permute.xlu0 %2265 }
 0x12f   :  { %2164 = vrot.lane.b32.xlu0 %v2162_v43, %s4272_s29  ;;  %v2161_v46 = vadd.f32 %v2159_v44, %v2155_v42  ;;  %v2169_v58 = vmul.f32 %v4393_v13, %v4523_v54 }
 0x131   :  { %v2268_v47 = vsub.f32 %v2161_v46, %v4508_v45 }
 0x132   :  { %v2017_v48 = vpop.permute.xlu0 %2016 }
 0x133   :  { %2285 = vrot.lane.b32.xlu0 %v4367_v5, %s4272_s29  ;;  %2276 = vrot.lane.b32.xlu1 %v2268_v47, %s4278_s13  ;;  %v4516_v49 = vsub.f32 %v4376_v8, %v2017_v48  ;;  %v2269_v4 = vmul.f32 %v2268_v47, %v4459_v40 }
 0x135   :  { %v2168_v26 = vmul.f32 %v4420_v24, %v4516_v49 }
 0x137   :  { %2098 = vperm.xlu0 %3895, %v4516_v49  }
 0x13b   :  { %3904 = vset.pattern.permute.xlu0 %v4275_v30 }
 0x184   :  { %v2215_v51 = vpop.permute.xlu1 %2214  ;;  %v2226_v53 = vpop.permute.xlu0 %2225 }
 0x185   :  { %v2217_v52 = vmul.f32 %v2215_v51, %v4459_v40  ;;  %v2228_v55 = vmul.f32 %v2226_v53, %v4459_v40  ;;  %v2182_v51 = vmul.f32 %v4494_v19, %v4516_v49 }
 0x187   :  { %2219 = vrot.lane.b32.xlu1 %v2217_v52, %s5585_s16 }
 0x189   :  { %v2055_v56 = vpop.permute.xlu1 %2054 }
 0x18a   :  { %v4527_v57 = vsub.f32 %v4376_v8, %v2055_v56  ;;  %v2183_v8 = vmul.f32 %v4395_v14, %v4523_v54 }
 0x18b   :  { %2230 = vrot.lane.b32.xlu1 %v2228_v55, %s4272_s29 }
 0x18c   :  { %v2175_v30 = vmul.f32 %v4400_v16, %v4527_v57  ;;  %v2203_v21 = vmul.f32 %v4418_v22, %v4527_v57 }
 0x18e   :  { %2177 = vrot.lane.b32.xlu0 %v2175_v30, %s4279_s14 }
 0x18f   :  { %2171 = vrot.lane.b32.xlu1 %v2169_v58, %s4278_s13 }
 0x193   :  { %2240 = vrot.lane.b32.xlu1 %v2238_v59, %s4282_s17 }
 0x197   :  { %2103 = vperm.xlu1 %3896, %v4523_v54  }
 0x19b   :  { %2185 = vrot.lane.b32.xlu1 %v2183_v8, %s4278_s13 }
 0x19c   :  { %3897 = vset.pattern.permute.xlu1 %v4268_v12  ;;  %v2189_v12 = vmul.f32 %v4402_v17, %v4527_v57  ;;  %v2197_v17 = vmul.f32 %v4410_v20, %v4523_v54 }
 0x19d   :  { %v2246_v16 = vpop.permute.xlu0 %2245  ;;  %v2257_v60 = vpop.permute.xlu1 %2256 }
 0x19e   :  { %v2248_v13 = vmul.f32 %v2246_v16, %v4459_v40  ;;  %v2259_v62 = vmul.f32 %v2257_v60, %v4459_v40 }
 0x19f   :  { %2306 = vrot.lane.b32.xlu1 %v4523_v54, %s4278_s13 }
 0x1a0   :  { %2250 = vrot.lane.b32.xlu0 %v2248_v13, %s4283_s18 }
 0x1a1   :  { %v2165_v0 = vpop.permute.xlu0 %2164 }
 0x1a2   :  { %v2167_v10 = vadd.f32 %v2165_v0, %v2155_v42 }
 0x1a4   :  { %2261 = vrot.lane.b32.xlu0 %v2259_v62, %s4271_s28 }
 0x1a5   :  { %v2277_v14 = vpop.permute.xlu1 %2276  ;;  %v2286_v9 = vpop.permute.xlu0 %2285 }
 0x1a6   :  { %v2279_v1 = vmul.f32 %v2277_v14, %v4459_v40  ;;  %v2288_v15 = vsub.f32 %v2167_v10, %v2286_v9 }
 0x1a8   :  { %2191 = vrot.lane.b32.xlu0 %v2189_v12, %s4279_s14  ;;  %2281 = vrot.lane.b32.xlu1 %v2279_v1, %s4278_s13  ;;  %v2196_v1 = vmul.f32 %v4500_v36, %v4516_v49 }
 0x1ac   :  { %2271 = vrot.lane.b32.xlu0 %v2269_v4, %s4279_s14  ;;  %2108 = vperm.xlu1 %3897, %v4527_v57  }
 0x1b0   :  { %2290 = vrot.lane.b32.xlu0 %v2288_v15, %s4279_s14  ;;  %2205 = vrot.lane.b32.xlu1 %v2203_v21, %s4279_s14 }
 0x1b1   :  { %3903 = vset.pattern.permute.xlu1 %v4259_v3 }
 0x1b4   :  { %2199 = vrot.lane.b32.xlu0 %v2197_v17, %s4278_s13  ;;  %2335 = vrot.lane.b32.xlu1 %v4567_v23, %s4284_s19 }
 0x1b6   :  { %v2099_v25 = vpop.permute.xlu0 %2098 }
 0x1b8   :  { %2320 = vrot.lane.b32.xlu0 %v4527_v57, %s4279_s14  ;;  %2433 = vrot.lane.b32.xlu1 %v4357_v2, %s4283_s18 }
 0x1bc   :  { %2429 = vrot.lane.b32.xlu0 %v4357_v2, %s4278_s13  ;;  %2443 = vrot.lane.b32.xlu1 %v4357_v2, %s4279_s14 }
 0x1c0   :  { %2438 = vrot.lane.b32.xlu0 %v4357_v2, %s5585_s16 }
 0x1f9   :  { %v2220_v3 = vpop.permute.xlu1 %2219 }
 0x1fa   :  { %v4583_v20 = vadd.f32 %v2220_v3, %v4357_v2 }
 0x1fc   :  { %2343 = vrot.lane.b32.xlu1 %v4583_v20, %s4285_s20  ;;  %2340 = vrot.lane.b32.xlu0 %v4583_v20, %s4278_s13 }
 0x1fd   :  { %v2231_v22 = vpop.permute.xlu1 %2230 }
 0x1fe   :  { %v4590_v61 = vadd.f32 %v2231_v22, %v4357_v2 }
 0x200   :  { %2351 = vrot.lane.b32.xlu1 %v4590_v61, %s4286_s4  ;;  %2348 = vrot.lane.b32.xlu0 %v4590_v61, %s4279_s14  ;;  %v2178_v33 = vpop.permute.xlu0 %2177 }
 0x201   :  { %v2172_v28 = vpop.permute.xlu1 %2171 }
 0x202   :  { %v2174_v29 = vadd.f32 %v2172_v28, %v2168_v26 }
 0x204   :  { %v2180_v35 = vadd.f32 %v2178_v33, %v2174_v29  ;;  %2447 = vrot.lane.b32.xlu0 %v4357_v2, %s4282_s17 }
 0x205   :  { %v2241_v41 = vpop.permute.xlu1 %2240 }
 0x206   :  { %v2181_v42 = vadd.f32 %v2180_v35, %v2099_v25  ;;  %v4601_v43 = vadd.f32 %v2241_v41, %v4357_v2 }
 0x208   :  { %2356 = vrot.lane.b32.xlu0 %v4601_v43, %s4271_s28  ;;  %v2295_v44 = vsub.f32 %v2181_v42, %v4516_v49 }
 0x20a   :  { %2297 = vrot.lane.b32.xlu1 %v2295_v44, %s4265_s24 }
 0x20e   :  { %2359 = vrot.lane.b32.xlu1 %v4601_v43, %s4287_s21 }
 0x212   :  { %v2251_v24 = vpop.permute.xlu0 %2250 }
 0x213   :  { %v4610_v46 = vadd.f32 %v2251_v24, %v4357_v2 }
 0x215   :  { %2367 = vrot.lane.b32.xlu1 %v4610_v46, %s4288_s22  ;;  %2364 = vrot.lane.b32.xlu0 %v4610_v46, %s4283_s18 }
 0x216   :  { %v2262_v47 = vpop.permute.xlu0 %2261  ;;  %v2104_v48 = vpop.permute.xlu1 %2103 }
 0x217   :  { %v4617_v50 = vadd.f32 %v2262_v47, %v4357_v2 }
 0x219   :  { %2375 = vrot.lane.b32.xlu1 %v4617_v50, %s4289_s23  ;;  %2372 = vrot.lane.b32.xlu0 %v4617_v50, %s4282_s17 }
 0x21a   :  { %v2192_v52 = vpop.permute.xlu0 %2191  ;;  %v2186_v53 = vpop.permute.xlu1 %2185 }
 0x21b   :  { %v2188_v55 = vadd.f32 %v2186_v53, %v2182_v51 }
 0x21d   :  { %v2194_v56 = vadd.f32 %v2192_v52, %v2188_v55 }
 0x21e   :  { %v2272_v30 = vpop.permute.xlu0 %2271  ;;  %v2307_v58 = vpop.permute.xlu1 %2306 }
 0x21f   :  { %v4626_v59 = vadd.f32 %v2272_v30, %v4357_v2  ;;  %v2195_v8 = vadd.f32 %v2194_v56, %v2104_v48 }
 0x221   :  { %v2309_v16 = vsub.f32 %v2195_v8, %v2307_v58  ;;  %2380 = vrot.lane.b32.xlu1 %v4626_v59, %s4272_s29 }
 0x222   :  { %v2291_v13 = vpop.permute.xlu0 %2290  ;;  %v2282_v60 = vpop.permute.xlu1 %2281 }
 0x223   :  { %v2293_v62 = vmul.f32 %v2291_v13, %v4459_v40  ;;  %v4632_v19 = vadd.f32 %v2282_v60, %v4357_v2  ;;  %2311 = vrot.lane.b32.xlu0 %v2309_v16, %s4265_s24 }
 0x225   :  { %2388 = vrot.lane.b32.xlu1 %v4632_v19, %s5585_s16  ;;  %v4638_v0 = vadd.f32 %v2293_v62, %v4367_v5 }
 0x226   :  { %v2200_v14 = vpop.permute.xlu0 %2199 }
 0x227   :  { %2383 = vrot.lane.b32.xlu0 %v4626_v59, %s4290_s10  ;;  %v2202_v12 = vadd.f32 %v2200_v14, %v2196_v1 }
 0x229   :  { %2396 = vrot.lane.b32.xlu1 %v4638_v0, %s4284_s19 }
 0x22a   :  { %v2321_v11 = vpop.permute.xlu0 %2320 }
 0x22b   :  { %2391 = vrot.lane.b32.xlu0 %v4632_v19, %s4291_s11  ;;  %v2109_v2 = vpop.permute.xlu1 %2108 }
 0x22e   :  { %v4649_v17 = vpop.permute.xlu0 %2429 }
 0x22f   :  { %v2206_v4 = vpop.permute.xlu1 %2205 }
 0x230   :  { %v2208_v9 = vadd.f32 %v2206_v4, %v2202_v12 }
 0x232   :  { %v2209_v10 = vadd.f32 %v2208_v9, %v2109_v2  ;;  %v4653_v22 = vpop.permute.xlu0 %2438 }
 0x233   :  { %v2336_v21 = vpop.permute.xlu1 %2335 }
 0x234   :  { %v2323_v15 = vsub.f32 %v2209_v10, %v2321_v11  ;;  %v4659_v36 = vsel %vm2011_vm0, %v4567_v23, %v2336_v21 }
 0x235   :  { %v2432_v35 = vmul.f32 %v4649_v17, %v4659_v36 }
 0x236   :  { %2325 = vrot.lane.b32.xlu0 %v2323_v15, %s4265_s24  ;;  %v4702_v15 = vld [vmem:[%s5575_s1] sm:$0xff] }
 0x237   :  { %v4651_v3 = vpop.permute.xlu1 %2433 }
 0x23b   :  { %v4655_v25 = vpop.permute.xlu1 %2443 }
 0x23c   :  { %v2446_v53 = vmul.f32 %v4655_v25, %v4659_v36 }
 0x26e   :  { %v2341_v26 = vpop.permute.xlu0 %2340  ;;  %v2344_v28 = vpop.permute.xlu1 %2343 }
 0x26f   :  { %v4662_v29 = vsel %vm2011_vm0, %v2341_v26, %v2344_v28 }
 0x270   :  { %v2436_v33 = vmul.f32 %v4651_v3, %v4662_v29 }
 0x272   :  { %v2349_v41 = vpop.permute.xlu0 %2348  ;;  %v2352_v42 = vpop.permute.xlu1 %2351  ;;  %v2437_v24 = vadd.f32 %v2436_v33, %v2432_v35 }
 0x273   :  { %v4669_v44 = vsel %vm2011_vm0, %v2349_v41, %v2352_v42 }
 0x274   :  { %v2441_v47 = vmul.f32 %v4653_v22, %v4669_v44  ;;  %v2452_v56 = vmul.f32 %v4669_v44, %v4367_v5 }
 0x276   :  { %v2442_v48 = vadd.f32 %v2441_v47, %v2437_v24  ;;  %v4673_v51 = vpop.permute.xlu0 %2447 }
 0x277   :  { %v2450_v52 = vmul.f32 %v4673_v51, %v4662_v29 }
 0x278   :  { %v2514_v55 = vsub.f32 %v2442_v48, %v2341_v26 }
 0x279   :  { %v2451_v30 = vadd.f32 %v2450_v52, %v2446_v53  ;;  %v4720_v53 = vld [vmem:[%s5575_s1 + $0x8] sm:$0xff]  ;;  %s5591_s1 = smov 16  }
 0x27a   :  { %v2515_v58 = vmul.f32 %v2514_v55, %v4453_v38  ;;  %v2357_v14 = vpop.permute.xlu0 %2356 }
 0x27b   :  { %v2453_v8 = vadd.f32 %v2452_v56, %v2451_v30 }
 0x27c   :  { %2517 = vrot.lane.b32.xlu1 %v2515_v58, %s5585_s16  ;;  %v2298_v16 = vpop.permute.xlu1 %2297 }
 0x27d   :  { %v2300_v13 = vmul.f32 %v2298_v16, %v4459_v40  ;;  %v2521_v60 = vsub.f32 %v2453_v8, %v2349_v41 }
 0x27f   :  { %2302 = vrot.lane.b32.xlu0 %v2300_v13, %s5583_s6  ;;  %v2522_v62 = vmul.f32 %v2521_v60, %v4453_v38 }
 0x280   :  { %v2360_v2 = vpop.permute.xlu1 %2359 }
 0x281   :  { %2524 = vrot.lane.b32.xlu1 %v2522_v62, %s4272_s29  ;;  %v4688_v5 = vsel %vm2011_vm0, %v2357_v14, %v2360_v2 }
 0x282   :  { %v2454_v21 = vmul.f32 %v4702_v15, %v4688_v5  ;;  %v2459_v26 = vmul.f32 %v4649_v17, %v4688_v5  ;;  %v2464_v28 = vmul.f32 %v4655_v25, %v4688_v5 }
 0x287   :  { %v2365_v1 = vpop.permute.xlu0 %2364  ;;  %v2368_v12 = vpop.permute.xlu1 %2367 }
 0x288   :  { %v4691_v4 = vsel %vm2011_vm0, %v2365_v1, %v2368_v12 }
 0x289   :  { %v2455_v9 = vmul.f32 %v4691_v4, %v4492_v18  ;;  %v2460_v10 = vmul.f32 %v4651_v3, %v4691_v4  ;;  %v2465_v11 = vmul.f32 %v4673_v51, %v4691_v4 }
 0x28b   :  { %v2373_v33 = vpop.permute.xlu0 %2372  ;;  %v2376_v35 = vpop.permute.xlu1 %2375  ;;  %v2456_v41 = vadd.f32 %v2455_v9, %v2454_v21  ;;  %v2461_v42 = vadd.f32 %v2460_v10, %v2459_v26  ;;  %v2466_v47 = vadd.f32 %v2465_v11, %v2464_v28 }
 0x28c   :  { %v4711_v24 = vsel %vm2011_vm0, %v2373_v33, %v2376_v35 }
 0x28d   :  { %v2457_v48 = vmul.f32 %v4711_v24, %v4508_v45  ;;  %v2462_v52 = vmul.f32 %v4653_v22, %v4711_v24  ;;  %v2467_v55 = vmul.f32 %v4720_v53, %v4711_v24 }
 0x28f   :  { %v2458_v56 = vadd.f32 %v2457_v48, %v2456_v41  ;;  %v2463_v30 = vadd.f32 %v2462_v52, %v2461_v42  ;;  %v2468_v58 = vadd.f32 %v2467_v55, %v2466_v47  ;;  %v2425_v48 = vmul.f32 %v4662_v29, %v4492_v18 }
 0x291   :  { %v2535_v8 = vsub.f32 %v2463_v30, %v2365_v1  ;;  %v2528_v16 = vsub.f32 %v2458_v56, %v2357_v14  ;;  %v2542_v2 = vsub.f32 %v2468_v58, %v2373_v33  ;;  %v2424_v58 = vmul.f32 %v4702_v15, %v4659_v36 }
 0x293   :  { %v2381_v13 = vpop.permute.xlu1 %2380  ;;  %v2536_v60 = vmul.f32 %v2535_v8, %v4453_v38  ;;  %v2529_v62 = vmul.f32 %v2528_v16, %v4453_v38  ;;  %v2543_v11 = vmul.f32 %v2542_v2, %v4453_v38  ;;  %v2427_v8 = vmul.f32 %v4669_v44, %v4508_v45 }
 0x295   :  { %v2312_v12 = vpop.permute.xlu0 %2311  ;;  %2538 = vrot.lane.b32.xlu1 %v2536_v60, %s4283_s18  ;;  %2531 = vrot.lane.b32.xlu0 %v2529_v62, %s4282_s17  ;;  %v2426_v62 = vadd.f32 %v2425_v48, %v2424_v58 }
 0x296   :  { %v2314_v9 = vmul.f32 %v2312_v12, %v4459_v40 }
 0x297   :  { %v2389_v10 = vpop.permute.xlu1 %2388 }
 0x299   :  { %v2384_v21 = vpop.permute.xlu0 %2383  ;;  %2545 = vrot.lane.b32.xlu1 %v2543_v11, %s4271_s28  ;;  %2316 = vrot.lane.b32.xlu0 %v2314_v9, %s4277_s12  ;;  %v2428_v9 = vadd.f32 %v2427_v8, %v2426_v62 }
 0x29a   :  { %v4733_v1 = vsel %vm2011_vm0, %v2381_v13, %v2384_v21 }
 0x29b   :  { %v2397_v14 = vpop.permute.xlu1 %2396  ;;  %v2469_v35 = vmul.f32 %v4702_v15, %v4733_v1  ;;  %v2474_v41 = vmul.f32 %v4649_v17, %v4733_v1  ;;  %v2479_v58 = vmul.f32 %v4655_v25, %v4733_v1 }
 0x29c   :  { %v4737_v28 = vsel %vm2011_vm0, %v4638_v0, %v2397_v14 }
 0x29d   :  { %v2392_v26 = vpop.permute.xlu0 %2391  ;;  %v2472_v52 = vmul.f32 %v4737_v28, %v4508_v45  ;;  %v2477_v55 = vmul.f32 %v4653_v22, %v4737_v28  ;;  %v2482_v62 = vmul.f32 %v4720_v53, %v4737_v28 }
 0x29e   :  { %v4740_v33 = vsel %vm2011_vm0, %v2389_v10, %v2392_v26  ;;  %v2511_v26 = vsub.f32 %v2428_v9, %v4567_v23 }
 0x29f   :  { %v2470_v42 = vmul.f32 %v4740_v33, %v4492_v18  ;;  %v2475_v47 = vmul.f32 %v4651_v3, %v4740_v33 }
 0x2a1   :  { %v2471_v56 = vadd.f32 %v2470_v42, %v2469_v35  ;;  %v2476_v30 = vadd.f32 %v2475_v47, %v2474_v41 }
 0x2a3   :  { %v2478_v16 = vadd.f32 %v2477_v55, %v2476_v30  ;;  %v2473_v60 = vadd.f32 %v2472_v52, %v2471_v56 }
 0x2a5   :  { %v2556_v2 = vsub.f32 %v2478_v16, %v2389_v10  ;;  %v2549_v12 = vsub.f32 %v2473_v60, %v2381_v13  ;;  %v2512_v13 = vmul.f32 %v2511_v26, %v4453_v38  ;;  %v3913_v26 = vld [vmem:[#allocation2 + $0xac] ss:$84 sps:$4 sm:$0xff]  }
 0x2a7   :  { %v2557_v11 = vmul.f32 %v2556_v2, %v4453_v38  ;;  %v2550_v21 = vmul.f32 %v2549_v12, %v4453_v38  ;;  %v4775_v10 = vadd.f32 %v2512_v13, %v4567_v23 }
 0x2a8   :  { %v2326_v14 = vpop.permute.xlu0 %2325 }
 0x2a9   :  { %2559 = vrot.lane.b32.xlu1 %v2557_v11, %s4278_s13  ;;  %2552 = vrot.lane.b32.xlu0 %v2550_v21, %s4279_s14  ;;  %v2328_v35 = vmul.f32 %v2326_v14, %v4459_v40  ;;  %v3909_v11 = vld [vmem:[#allocation2 + $0xc] ss:$84 sps:$4 sm:$0xff]   ;;  %v3912_v14 = vld [vmem:[#allocation2 + $0x8] ss:$84 sps:$4 sm:$0xff]  }
 0x2aa   :  { %v3911_v21 = vld [vmem:[#allocation2] ss:$84 sps:$4 sm:$0xff]   ;;  %1448 = vmatprep.subr.bf16.mxu1 %v3909_v11 }
 0x2ab   :  { %1449 = vmatpush1.bf16.msra.mxu1 %v3912_v14  ;;  %v3941_v14 = vld [vmem:[#allocation2 + $0x348] ss:$84 sps:$4 sm:$0xff]  }
 0x2ad   :  { %2484 = vrot.lane.b32.xlu1 %v4516_v49, %s4265_s24  ;;  %2330 = vrot.lane.b32.xlu0 %v2328_v35, %s4280_s15  ;;  %v3915_v35 = vld [vmem:[#allocation2 + $0xb4] ss:$84 sps:$4 sm:$0xff]  }
 0x2ae   :  { %1450 = vmatprep.subr.bf16.mxu1 %v3915_v35 }
 0x2b1   :  { %2493 = vrot.lane.b32.xlu1 %v4527_v57, %s4273_s30  ;;  %2488 = vrot.lane.b32.xlu0 %v4523_v54, %s4270_s27 }
 0x2b5   :  { %2588 = vrot.lane.b32.xlu0 %v4775_v10, %s4284_s19 }
 0x2ee   :  { %v2518_v40 = vpop.permute.xlu1 %2517 }
 0x2ef   :  { %v4787_v47 = vadd.f32 %v2518_v40, %v4583_v20  ;;  %v3917_v40 = vld [vmem:[#allocation2 + $0xa8] ss:$84 sps:$4 sm:$0xff]  }
 0x2f1   :  { %v2303_v41 = vpop.permute.xlu0 %2302 }
 0x2f2   :  { %v4780_v42 = vadd.f32 %v2303_v41, %v4516_v49  ;;  %v3918_v41 = vld [vmem:[#allocation2 + $0xb0] ss:$84 sps:$4 sm:$0xff]  }
 0x2f3   :  { %v2525_v48 = vpop.permute.xlu1 %2524  ;;  %1451 = vmatpush1.bf16.msra.mxu1 %v3918_v41  ;;  %v3943_v41 = vld [vmem:[#allocation2 + $0x3f4] ss:$84 sps:$4 sm:$0xff]  }
 0x2f4   :  { %2401 = vrot.lane.b32.xlu1 %v4780_v42, %s4265_s24  ;;  %2404 = vrot.lane.b32.xlu0 %v4780_v42, %s4269_s26  ;;  %v4794_v23 = vadd.f32 %v2525_v48, %v4590_v61  ;;  %v3919_v48 = vld [vmem:[#allocation2 + $0x154] ss:$84 sps:$4 sm:$0xff]  }
 0x2f8   :  { %2596 = vrot.lane.b32.xlu0 %v4787_v47, %s4285_s20  ;;  %2593 = vrot.lane.b32.xlu1 %v4787_v47, %s4278_s13 }
 0x2fc   :  { %2604 = vrot.lane.b32.xlu0 %v4794_v23, %s4286_s4  ;;  %2601 = vrot.lane.b32.xlu1 %v4794_v23, %s4279_s14  ;;  %s4292_s4 = smov 10  }
 0x307   :  { %v2532_v49 = vpop.permute.xlu0 %2531  ;;  %v2539_v55 = vpop.permute.xlu1 %2538 }
 0x308   :  { %v4808_v61 = vadd.f32 %v2532_v49, %v4601_v43  ;;  %v4815_v56 = vadd.f32 %v2539_v55, %v4610_v46  ;;  %v2480_v43 = vmul.f32 %v4673_v51, %v4740_v33  ;;  %v3921_v49 = vld [vmem:[#allocation2 + $0x15c] ss:$84 sps:$4 sm:$0xff]   ;;  %v3924_v55 = vld [vmem:[#allocation2 + $0x158] ss:$84 sps:$4 sm:$0xff]  }
 0x309   :  { %1452 = vmatprep.subr.bf16.mxu1 %v3921_v49  ;;  %v3947_v49 = vld [vmem:[#allocation2 + $0x3f0] ss:$84 sps:$4 sm:$0xff]  }
 0x30a   :  { %v2481_v8 = vadd.f32 %v2480_v43, %v2479_v58  ;;  %1453 = vmatpush1.bf16.msra.mxu1 %v3924_v55  ;;  %v3929_v43 = vld [vmem:[#allocation2 + $0x1f8] ss:$84 sps:$4 sm:$0xff]   ;;  %v3930_v58 = vld [vmem:[#allocation2 + $0x200] ss:$84 sps:$4 sm:$0xff]  }
 0x30b   :  { %v2317_v52 = vpop.permute.xlu0 %2316  ;;  %v3948_v55 = vld [vmem:[#allocation2 + $0x3f8] ss:$84 sps:$4 sm:$0xff]  }
 0x30c   :  { %v4801_v20 = vadd.f32 %v2317_v52, %v4523_v54  ;;  %v2546_v54 = vpop.permute.xlu1 %2545  ;;  %v2483_v2 = vadd.f32 %v2482_v62, %v2481_v8  ;;  %v3923_v52 = vld [vmem:[#allocation2 + $0x150] ss:$84 sps:$4 sm:$0xff]   ;;  %v3933_v8 = vld [vmem:[#allocation2 + $0x2ac] ss:$84 sps:$4 sm:$0xff]   ;;  %v3936_v62 = vld [vmem:[#allocation2 + $0x2a8] ss:$84 sps:$4 sm:$0xff]  }
 0x30d   :  { %v4824_v30 = vadd.f32 %v2546_v54, %v4617_v50  ;;  %v3927_v54 = vld [vmem:[#allocation2 + $0x204] ss:$84 sps:$4 sm:$0xff]  }
 0x30e   :  { %2412 = vrot.lane.b32.xlu0 %v4801_v20, %s4267_s25  ;;  %2409 = vrot.lane.b32.xlu1 %v4801_v20, %s4270_s27 }
 0x30f   :  { %1454 = vmatprep.subr.bf16.mxu1 %v3927_v54 }
 0x310   :  { %1455 = vmatpush1.bf16.msra.mxu1 %v3930_v58 }
 0x311   :  { %1456 = vmatprep.subr.bf16.mxu1 %v3933_v8  ;;  %v3954_v8 = vld [vmem:[#allocation2 + $0x4a0] ss:$84 sps:$4 sm:$0xff]  }
 0x312   :  { %2612 = vrot.lane.b32.xlu0 %v4808_v61, %s4287_s21  ;;  %2609 = vrot.lane.b32.xlu1 %v4808_v61, %s4271_s28 }
 0x314   :  { %1457 = vmatpush1.bf16.msra.mxu1 %v3936_v62 }
 0x316   :  { %2620 = vrot.lane.b32.xlu0 %v4815_v56, %s4288_s22  ;;  %2617 = vrot.lane.b32.xlu1 %v4815_v56, %s4283_s18 }
 0x31a   :  { %2628 = vrot.lane.b32.xlu0 %v4824_v30, %s4289_s23  ;;  %2625 = vrot.lane.b32.xlu1 %v4824_v30, %s4282_s17  ;;  %s4293_s23 = smov 110  }
 0x31b   :  { %v2553_v46 = vpop.permute.xlu0 %2552  ;;  %v2560_v60 = vpop.permute.xlu1 %2559 }
 0x31c   :  { %v4833_v16 = vadd.f32 %v2553_v46, %v4626_v59  ;;  %v4840_v12 = vadd.f32 %v2560_v60, %v4632_v19  ;;  %v2563_v59 = vsub.f32 %v2483_v2, %v4638_v0  ;;  %v3931_v46 = vld [vmem:[#allocation2 + $0x2a4] ss:$84 sps:$4 sm:$0xff]   ;;  %v3935_v60 = vld [vmem:[#allocation2 + $0x2a0] ss:$84 sps:$4 sm:$0xff]  }
 0x31d   :  { %v3939_v2 = vld [vmem:[#allocation2 + $0x354] ss:$84 sps:$4 sm:$0xff]  }
 0x31e   :  { %2636 = vrot.lane.b32.xlu0 %v4833_v16, %s4290_s10  ;;  %v2564_v19 = vmul.f32 %v2563_v59, %v4453_v38  ;;  %1458 = vmatprep.subr.bf16.mxu1 %v3939_v2 }
 0x31f   :  { %v2331_v50 = vpop.permute.xlu0 %2330  ;;  %v4862_v59 = vpop.permute.xlu1 %2484 }
 0x320   :  { %v4843_v9 = vadd.f32 %v2331_v50, %v4527_v57  ;;  %v3907_v57 = vld [vmem:[#allocation2 + $0x4] ss:$84 sps:$4 sm:$0xff]   ;;  %v4858_v13 = vadd.f32 %v2564_v19, %v4638_v0  ;;  %v3925_v0 = vld [vmem:[#allocation2 + $0x1fc] ss:$84 sps:$4 sm:$0xff]   ;;  %v3937_v50 = vld [vmem:[#allocation2 + $0x34c] ss:$84 sps:$4 sm:$0xff]   ;;  %v2487_v11 = vmul.f32 %v4862_v59, %v4659_v36 }
 0x321   :  { %1407 = vmatprep.subr.bf16.mxu0 %v3907_v57 }
 0x322   :  { %2417 = vrot.lane.b32.xlu1 %v4843_v9, %s4273_s30  ;;  %2644 = vrot.lane.b32.xlu0 %v4840_v12, %s4291_s11  ;;  %s4296_s11 = smov 12  }
 0x323   :  { %1408 = vmatpush1.bf16.msra.mxu0 %v3911_v21  ;;  %v4864_v19 = vpop.permute.xlu0 %2488  ;;  %v4870_v21 = vpop.permute.xlu1 %2493 }
 0x324   :  { %1409 = vmatprep.subr.bf16.mxu0 %v3913_v26  ;;  %v2491_v57 = vmul.f32 %v4864_v19, %v4662_v29  ;;  %v3942_v26 = vld [vmem:[#allocation2 + $0x350] ss:$84 sps:$4 sm:$0xff]  }
 0x325   :  { %1459 = vmatpush1.bf16.msra.mxu1 %v3942_v26  ;;  %v3951_v29 = vld [vmem:[#allocation2 + $0x4a4] ss:$84 sps:$4 sm:$0xff]  }
 0x326   :  { %2633 = vrot.lane.b32.xlu1 %v4833_v16, %s4272_s29  ;;  %2420 = vrot.lane.b32.xlu0 %v4843_v9, %s4274_s9 }
 0x327   :  { %1410 = vmatpush1.bf16.msra.mxu0 %v3917_v40  ;;  %v2589_v35 = vpop.permute.xlu0 %2588  ;;  %v2492_v40 = vadd.f32 %v2491_v57, %v2487_v11  ;;  %v46_v57 = vld [vmem:[%s5576_s2] sm:$0x3]  ;;  %s5592_s2 = smov 76  }
 0x328   :  { %1411 = vmatprep.subr.bf16.mxu0 %v3919_v48  ;;  %v3945_v48 = vld [vmem:[#allocation2 + $0x3fc] ss:$84 sps:$4 sm:$0xff]  }
 0x329   :  { %1460 = vmatprep.subr.bf16.mxu1 %v3945_v48 }
 0x32a   :  { %2641 = vrot.lane.b32.xlu1 %v4840_v12, %s5591_s1  ;;  %1461 = vmatpush1.bf16.msra.mxu1 %v3948_v55 }
 0x32b   :  { %1412 = vmatpush1.bf16.msra.mxu0 %v3923_v52  ;;  %v2496_v52 = vmul.f32 %v4870_v21, %v4669_v44  ;;  %1462 = vmatprep.subr.bf16.mxu1 %v3951_v29 }
 0x32c   :  { %1413 = vmatprep.subr.bf16.mxu0 %v3925_v0  ;;  %v3949_v0 = vld [vmem:[#allocation2 + $0x49c] ss:$84 sps:$4 sm:$0xff]  }
 0x32d   :  { %v2497_v54 = vadd.f32 %v2496_v52, %v2492_v40  ;;  %v3957_v52 = vld [vmem:[#allocation2 + $0x54c] ss:$84 sps:$4 sm:$0xff]  }
 0x32e   :  { %2649 = vrot.lane.b32.xlu1 %v4858_v13, %s4284_s19  ;;  %1463 = vmatpush1.bf16.msra.mxu1 %v3954_v8 }
 0x32f   :  { %1414 = vmatpush1.bf16.msra.mxu0 %v3929_v43  ;;  %1464 = vmatprep.subr.bf16.mxu1 %v3957_v52 }
 0x330   :  { %1415 = vmatprep.subr.bf16.mxu0 %v3931_v46  ;;  %v3953_v46 = vld [vmem:[#allocation2 + $0x498] ss:$84 sps:$4 sm:$0xff]  }
 0x333   :  { %1416 = vmatpush1.bf16.msra.mxu0 %v3935_v60  ;;  %v2591_v60 = vsel %vm2011_vm0, %v4775_v10, %v2589_v35 }
 0x334   :  { %1417 = vmatprep.subr.bf16.mxu0 %v3937_v50  ;;  %v2677_v11 = vmul.f32 %v4702_v15, %v2591_v60  ;;  %v2687_v55 = vmul.f32 %v2591_v60, %v4655_v25 }
 0x337   :  { %1418 = vmatpush1.bf16.msra.mxu0 %v3941_v14  ;;  %v2682_v14 = vmul.f32 %v2591_v60, %v4649_v17 }
 0x338   :  { %1419 = vmatprep.subr.bf16.mxu0 %v3943_v41 }
 0x33b   :  { %1420 = vmatpush1.bf16.msra.mxu0 %v3947_v49  ;;  %v3955_v49 = vld [vmem:[#allocation2 + $0x544] ss:$84 sps:$4 sm:$0xff]  }
 0x33c   :  { %1421 = vmatprep.subr.bf16.mxu0 %v3949_v0  ;;  %v2722_v0 = vmul.f32 %v2591_v60, %v4862_v59  ;;  %v3961_v60 = vld [vmem:[#allocation2 + $0x5ec] ss:$84 sps:$4 sm:$0x1f]  }
 0x33f   :  { %1422 = vmatpush1.bf16.msra.mxu0 %v3953_v46 }
 0x340   :  { %1423 = vmatprep.subr.bf16.mxu0 %v3955_v49 }
 0x366   :  { %v2405_v36 = vpop.permute.xlu0 %2404  ;;  %v2402_v43 = vpop.permute.xlu1 %2401 }
 0x367   :  { %v2407_v58 = vsel %vm2011_vm0, %v2402_v43, %v2405_v36  ;;  %v51_v36 = vrot.slane %v46_v57, %v4443_v34 }
 0x368   :  { %v2498_v62 = vadd.f32 %v2497_v54, %v2407_v58  ;;  %v3959_v54 = vld [vmem:[#allocation2 + $0x540] ss:$84 sps:$4 sm:$0xff]  }
 0x369   :  { %1424 = vmatpush1.bf16.msra.mxu0 %v3959_v54 }
 0x36a   :  { %v2566_v44 = vsub.f32 %v2498_v62, %v2402_v43  ;;  %v2597_v50 = vpop.permute.xlu0 %2596  ;;  %v2594_v2 = vpop.permute.xlu1 %2593  ;;  %v3960_v43 = vld [vmem:[#allocation2 + $0x548] ss:$84 sps:$4 sm:$0xff]   ;;  %3765 = vmatprep.subr.msk.bf16.mxu0 %vm1343_vm1, %v3961_v60 }
 0x36b   :  { %v2599_v26 = vsel %vm2011_vm0, %v2594_v2, %v2597_v50  ;;  %1465 = vmatpush1.bf16.msra.mxu1 %v3960_v43  ;;  %v58_v43 = vsub.f32 %v4702_v15, %v51_v36  ;;  %v2499_v36 = vmul.f32 %v4862_v59, %v4688_v5 }
 0x36c   :  { %v2567_v35 = vmul.f32 %v2566_v44, %v4453_v38  ;;  %v2678_v40 = vmul.f32 %v2599_v26, %v4492_v18  ;;  %v2683_v41 = vmul.f32 %v2599_v26, %v4651_v3  ;;  %v2688_v48 = vmul.f32 %v2599_v26, %v4673_v51 }
 0x36d   :  { %v2723_v29 = vmul.f32 %v2599_v26, %v4864_v19  ;;  %v55_v44 = vrot.slane %v46_v57, %v4434_v31  ;;  %v3965_v57 = vld [vmem:[#allocation2 + $0x5e8] ss:$84 sps:$4 sm:$0x1f]  }
 0x36e   :  { %v2679_v58 = vadd.f32 %v2678_v40, %v2677_v11  ;;  %v2684_v46 = vadd.f32 %v2683_v41, %v2682_v14  ;;  %v2605_v8 = vpop.permute.xlu0 %2604  ;;  %2569 = vrot.lane.b32.xlu0 %v2567_v35, %s5592_s2  ;;  %v2602_v62 = vpop.permute.xlu1 %2601  ;;  %v2689_v50 = vadd.f32 %v2688_v48, %v2687_v55  ;;  %v3963_v40 = vld [vmem:[#allocation2 + $0x5f4] ss:$84 sps:$4 sm:$0x1f]   ;;  %v3966_v41 = vld [vmem:[#allocation2 + $0x5f0] ss:$84 sps:$4 sm:$0x1f]  }
 0x36f   :  { %v2607_v6 = vsel %vm2011_vm0, %v2602_v62, %v2605_v8  ;;  %v2724_v26 = vadd.f32 %v2723_v29, %v2722_v0  ;;  %3767 = vmatprep.subr.msk.bf16.mxu1 %vm1343_vm1, %v3963_v40  ;;  %v1345_v55 = vsel %vm1343_vm1, %v3965_v57, 0  ;;  %v1351_v0 = vsel %vm1343_vm1, %v3966_v41, 0 }
 0x370   :  { %v2680_v7 = vmul.f32 %v2607_v6, %v4508_v45  ;;  %v2685_v11 = vmul.f32 %v2607_v6, %v4653_v22  ;;  %v2690_v14 = vmul.f32 %v4720_v53, %v2607_v6  ;;  %v2725_v35 = vmul.f32 %v2607_v6, %v4870_v21  ;;  %1426 = vmatpush1.bf16.msra.mxu0 %v1345_v55 }
 0x371   :  { %v59_v8 = vsub.f32 %v4720_v53, %v55_v44  ;;  %1467 = vmatpush1.bf16.msra.mxu1 %v1351_v0 }
 0x372   :  { %v4899_v48 = vadd.f32 %v2680_v7, %v2679_v58  ;;  %v2686_v49 = vadd.f32 %v2685_v11, %v2684_v46  ;;  %v2691_v52 = vadd.f32 %v2690_v14, %v2689_v50  ;;  %v4904_v29 = vadd.f32 %v2725_v35, %v2724_v26  ;;  %v3969_v7 = vld [vmem:[#allocation2 + $0x14] ss:$84 sps:$4 sm:$0xff]   ;;  %v3972_v58 = vld [vmem:[#allocation2 + $0x1c] ss:$84 sps:$4 sm:$0xff]  }
 0x373   :  { %1489 = vmatprep.subr.bf16.mxu0 %v3969_v7  ;;  %1530 = vmatprep.subr.bf16.mxu1 %v3972_v58  ;;  %v3898_v60 = vpack.i.bf16 %v59_v8, %v58_v43  ;;  %v2502_v26 = vmul.f32 %v4870_v21, %v4711_v24 }
 0x374   :  { %v2750_v6 = vsub.f32 %v2691_v52, %v2602_v62  ;;  %v2743_v54 = vsub.f32 %v2686_v49, %v2594_v2  ;;  %v2500_v2 = vmul.f32 %v4864_v19, %v4691_v4  ;;  %v4919_v62 = vld [vmem:[%s5574_s0] sm:$0xff]  ;;  %s4294_s0 = smov 100  }
 0x376   :  { %v2751_v46 = vmul.f32 %v2750_v6, %v4456_v39  ;;  %v2744_v50 = vmul.f32 %v2743_v54, %v4456_v39  ;;  %v2501_v44 = vadd.f32 %v2500_v2, %v2499_v36 }
 0x378   :  { %2753 = vrot.lane.b32.xlu0 %v2751_v46, %s4272_s29  ;;  %2746 = vrot.lane.b32.xlu1 %v2744_v50, %s5591_s1  ;;  %v2503_v14 = vadd.f32 %v2502_v26, %v2501_v44 }
 0x37c   :  { %3899 = vrot.lane.b32.xlu1 %v3898_v60, %s4292_s4  ;;  %61 = vrot.lane.b32.xlu0 %v4919_v62, %s4293_s23 }
 0x380   :  { %v2413_v11 = vpop.permute.xlu0 %2412  ;;  %v2410_v4 = vpop.permute.xlu1 %2409 }
 0x381   :  { %v2415_v35 = vsel %vm2011_vm0, %v2410_v4, %v2413_v11 }
 0x382   :  { %v2504_v5 = vadd.f32 %v2503_v14, %v2415_v35 }
 0x384   :  { %v2573_v40 = vsub.f32 %v2504_v5, %v2410_v4  ;;  %v2613_v57 = vpop.permute.xlu0 %2612  ;;  %v4925_v41 = vpop.permute.xlu1 %2609 }
 0x385   :  { %v2615_v52 = vsel %vm2011_vm0, %v4925_v41, %v2613_v57  ;;  %v2506_v57 = vmul.f32 %v4864_v19, %v4740_v33 }
 0x386   :  { %v2574_v49 = vmul.f32 %v2573_v40, %v4453_v38  ;;  %v2692_v24 = vmul.f32 %v4702_v15, %v2615_v52  ;;  %v2728_v6 = vmul.f32 %v2615_v52, %v4862_v59  ;;  %v2697_v46 = vmul.f32 %v2615_v52, %v4649_v17 }
 0x387   :  { %v2702_v50 = vmul.f32 %v2615_v52, %v4655_v25 }
 0x388   :  { %v2621_v55 = vpop.permute.xlu0 %2620  ;;  %2576 = vrot.lane.b32.xlu1 %v2574_v49, %s4277_s12  ;;  %v2618_v0 = vpop.permute.xlu1 %2617 }
 0x389   :  { %v2623_v54 = vsel %vm2011_vm0, %v2618_v0, %v2621_v55 }
 0x38a   :  { %v2693_v43 = vmul.f32 %v2623_v54, %v4492_v18  ;;  %v2698_v8 = vmul.f32 %v2623_v54, %v4651_v3  ;;  %v2703_v7 = vmul.f32 %v2623_v54, %v4673_v51  ;;  %v2729_v58 = vmul.f32 %v2623_v54, %v4864_v19 }
 0x38c   :  { %v2694_v60 = vadd.f32 %v2693_v43, %v2692_v24  ;;  %v2629_v2 = vpop.permute.xlu0 %2628  ;;  %v2626_v36 = vpop.permute.xlu1 %2625  ;;  %v2730_v44 = vadd.f32 %v2729_v58, %v2728_v6  ;;  %v2699_v26 = vadd.f32 %v2698_v8, %v2697_v46  ;;  %v2704_v11 = vadd.f32 %v2703_v7, %v2702_v50 }
 0x38d   :  { %v2631_v14 = vsel %vm2011_vm0, %v2626_v36, %v2629_v2  ;;  %v2505_v8 = vmul.f32 %v4862_v59, %v4733_v1 }
 0x38e   :  { %v2695_v4 = vmul.f32 %v2631_v14, %v4508_v45  ;;  %v2700_v35 = vmul.f32 %v2631_v14, %v4653_v22  ;;  %v2705_v5 = vmul.f32 %v4720_v53, %v2631_v14  ;;  %v2731_v40 = vmul.f32 %v2631_v14, %v4870_v21 }
 0x390   :  { %v4947_v49 = vadd.f32 %v2695_v4, %v2694_v60  ;;  %v2701_v52 = vadd.f32 %v2700_v35, %v2699_v26  ;;  %v2706_v55 = vadd.f32 %v2705_v5, %v2704_v11  ;;  %v2637_v24 = vpop.permute.xlu0 %2636  ;;  %v4949_v6 = vadd.f32 %v2731_v40, %v2730_v44 }
 0x391   :  { %v2507_v60 = vadd.f32 %v2506_v57, %v2505_v8 }
 0x392   :  { %v2771_v54 = vsub.f32 %v2706_v55, %v2626_v36  ;;  %v2764_v43 = vsub.f32 %v2701_v52, %v2618_v0  ;;  %v2757_v7 = vsub.f32 %v4947_v49, %v4925_v41  ;;  %v2508_v0 = vmul.f32 %v4870_v21, %v4737_v28  ;;  %v4005_v41 = vld [vmem:[#allocation2 + $0x404] ss:$84 sps:$4 sm:$0xff]   ;;  %v4008_v49 = vld [vmem:[#allocation2 + $0x40c] ss:$84 sps:$4 sm:$0xff]  }
 0x394   :  { %v2772_v58 = vmul.f32 %v2771_v54, %v4456_v39  ;;  %v2645_v46 = vpop.permute.xlu0 %2644  ;;  %v2418_v50 = vpop.permute.xlu1 %2417  ;;  %v2765_v33 = vmul.f32 %v2764_v43, %v4456_v39  ;;  %v2509_v36 = vadd.f32 %v2508_v0, %v2507_v60 }
 0x396   :  { %2774 = vrot.lane.b32.xlu1 %v2772_v58, %s4271_s28  ;;  %2767 = vrot.lane.b32.xlu0 %v2765_v33, %s4283_s18 }
 0x398   :  { %v2421_v2 = vpop.permute.xlu0 %2420  ;;  %v4961_v1 = vpop.permute.xlu1 %2633 }
 0x399   :  { %v2423_v44 = vsel %vm2011_vm0, %v2418_v50, %v2421_v2  ;;  %v2639_v11 = vsel %vm2011_vm0, %v4961_v1, %v2637_v24 }
 0x39a   :  { %v2510_v26 = vadd.f32 %v2509_v36, %v2423_v44  ;;  %2834 = vrot.lane.b32.xlu0 %v4919_v62, %s4294_s0  ;;  %v2707_v35 = vmul.f32 %v4702_v15, %v2639_v11  ;;  %v2717_v5 = vmul.f32 %v2639_v11, %v4655_v25  ;;  %v2712_v24 = vmul.f32 %v2639_v11, %v4649_v17 }
 0x39b   :  { %v2734_v62 = vmul.f32 %v2639_v11, %v4862_v59 }
 0x39c   :  { %v2580_v14 = vsub.f32 %v2510_v26, %v2418_v50  ;;  %v2642_v4 = vpop.permute.xlu1 %2641 }
 0x39d   :  { %v2647_v28 = vsel %vm2011_vm0, %v2642_v4, %v2645_v46 }
 0x39e   :  { %v2581_v40 = vmul.f32 %v2580_v14, %v4453_v38  ;;  %v2708_v57 = vmul.f32 %v2647_v28, %v4492_v18  ;;  %v2713_v52 = vmul.f32 %v2647_v28, %v4651_v3  ;;  %v2718_v55 = vmul.f32 %v2647_v28, %v4673_v51 }
 0x39f   :  { %v2735_v54 = vmul.f32 %v2647_v28, %v4864_v19  ;;  %v3967_v28 = vld [vmem:[#allocation2 + $0x10] ss:$84 sps:$4 sm:$0xff]  }
 0x3a0   :  { %v2709_v43 = vadd.f32 %v2708_v57, %v2707_v35  ;;  %v2719_v15 = vadd.f32 %v2718_v55, %v2717_v5  ;;  %2583 = vrot.lane.b32.xlu1 %v2581_v40, %s4280_s15  ;;  %v2650_v25 = vpop.permute.xlu1 %2649  ;;  %v2714_v8 = vadd.f32 %v2713_v52, %v2712_v24  ;;  %v3970_v40 = vld [vmem:[#allocation2 + $0x18] ss:$84 sps:$4 sm:$0xff]   ;;  %v3975_v57 = vld [vmem:[#allocation2 + $0xbc] ss:$84 sps:$4 sm:$0xff]   ;;  %v3976_v24 = vld [vmem:[#allocation2 + $0xc0] ss:$84 sps:$4 sm:$0xff]  }
 0x3a1   :  { %v2652_v38 = vsel %vm2011_vm0, %v4858_v13, %v2650_v25  ;;  %v2736_v18 = vadd.f32 %v2735_v54, %v2734_v62  ;;  %v3978_v52 = vld [vmem:[#allocation2 + $0xc4] ss:$84 sps:$4 sm:$0xff]   ;;  %v3984_v54 = vld [vmem:[#allocation2 + $0x16c] ss:$84 sps:$4 sm:$0xff]   ;;  %v3982_v25 = vld [vmem:[#allocation2 + $0x168] ss:$84 sps:$4 sm:$0xff]  }
 0x3a2   :  { %v2710_v3 = vmul.f32 %v2652_v38, %v4508_v45  ;;  %v2715_v51 = vmul.f32 %v2652_v38, %v4653_v22  ;;  %v2720_v17 = vmul.f32 %v4720_v53, %v2652_v38  ;;  %v2737_v59 = vmul.f32 %v2652_v38, %v4870_v21  ;;  %v3973_v55 = vld [vmem:[#allocation2 + $0xb8] ss:$84 sps:$4 sm:$0xff]  }
 0x3a3   :  { %v3981_v62 = vld [vmem:[#allocation2 + $0x164] ss:$84 sps:$4 sm:$0xff]   ;;  %v3987_v38 = vld [vmem:[#allocation2 + $0x20c] ss:$84 sps:$4 sm:$0xff]  }
 0x3a4   :  { %v4984_v58 = vadd.f32 %v2710_v3, %v2709_v43  ;;  %v2716_v19 = vadd.f32 %v2715_v51, %v2714_v8  ;;  %v4986_v46 = vadd.f32 %v2720_v17, %v2719_v15  ;;  %v4988_v50 = vadd.f32 %v2737_v59, %v2736_v18  ;;  %v3979_v15 = vld [vmem:[#allocation2 + $0x160] ss:$84 sps:$4 sm:$0xff]   ;;  %v3985_v3 = vld [vmem:[#allocation2 + $0x208] ss:$84 sps:$4 sm:$0xff]   ;;  %v3988_v51 = vld [vmem:[#allocation2 + $0x210] ss:$84 sps:$4 sm:$0xff]  }
 0x3a5   :  { %v3990_v18 = vld [vmem:[#allocation2 + $0x214] ss:$84 sps:$4 sm:$0xff]   ;;  %v3996_v59 = vld [vmem:[#allocation2 + $0x2bc] ss:$84 sps:$4 sm:$0xff]  }
 0x3a6   :  { %v2785_v33 = vsub.f32 %v2716_v19, %v2642_v4  ;;  %v2778_v60 = vsub.f32 %v4984_v58, %v4961_v1  ;;  %v3993_v17 = vld [vmem:[#allocation2 + $0x2b4] ss:$84 sps:$4 sm:$0xff]   ;;  %v3991_v19 = vld [vmem:[#allocation2 + $0x2b0] ss:$84 sps:$4 sm:$0xff]   ;;  %v4035_v58 = vld [vmem:[#allocation2 + $0xcc] ss:$84 sps:$4 sm:$0xff]  }
 0x3a8   :  { %v2786_v0 = vmul.f32 %v2785_v33, %v4456_v39  ;;  %v3994_v33 = vld [vmem:[#allocation2 + $0x2b8] ss:$84 sps:$4 sm:$0xff]  }
 0x3aa   :  { %2788 = vrot.lane.b32.xlu0 %v2786_v0, %s4278_s13  ;;  %v3999_v0 = vld [vmem:[#allocation2 + $0x35c] ss:$84 sps:$4 sm:$0xff]  }
 0x3e0   :  { %v2570_v45 = vpop.permute.xlu0 %2569 }
 0x3e1   :  { %v4995_v22 = vadd.f32 %v2570_v45, %v4780_v42  ;;  %v4002_v45 = vld [vmem:[#allocation2 + $0x364] ss:$84 sps:$4 sm:$0xff]  }
 0x3e3   :  { %2654 = vrot.lane.b32.xlu1 %v4995_v22, %s4265_s24  ;;  %2657 = vrot.lane.b32.xlu0 %v4995_v22, %s4269_s26 }
 0x3ea   :  { %v2754_v53 = vpop.permute.xlu0 %2753  ;;  %v2747_v21 = vpop.permute.xlu1 %2746 }
 0x3eb   :  { %v5002_v2 = vadd.f32 %v2754_v53, %v4794_v23  ;;  %v5005_v36 = vadd.f32 %v2747_v21, %v4787_v47  ;;  %v3997_v53 = vld [vmem:[#allocation2 + $0x358] ss:$84 sps:$4 sm:$0xff]   ;;  %v4000_v21 = vld [vmem:[#allocation2 + $0x360] ss:$84 sps:$4 sm:$0xff]  }
 0x3ed   :  { %v2823_v44 = vmul.f32 %v5002_v2, %v4450_v37  ;;  %v2817_v42 = vmul.f32 %v5005_v36, %v4450_v37 }
 0x3ee   :  { %v3900_v26 = vpop.permute.xlu1 %3899  ;;  %v62_v11 = vpop.permute.xlu0 %61 }
 0x3ef   :  { %v3902_v14 = vunpack.i.h.bf16 %v3900_v26  ;;  %v3901_v4 = vunpack.i.l.bf16 %v3900_v26  ;;  %2825 = vrot.lane.b32.xlu0 %v2823_v44, %s4279_s14  ;;  %2819 = vrot.lane.b32.xlu1 %v2817_v42, %s4278_s13  ;;  %v4003_v42 = vld [vmem:[#allocation2 + $0x400] ss:$84 sps:$4 sm:$0xff]   ;;  %v4006_v26 = vld [vmem:[#allocation2 + $0x408] ss:$84 sps:$4 sm:$0xff]  }
 0x3f1   :  { %v71_v23 = vsel %vm70_vm2, %v3901_v4, %v3902_v14  ;;  %v74_v35 = vsel %vm70_vm2, %v62_v11, %v3901_v4 }
 0x3f2   :  { %v5013_v47 = vpack.c.bf16 %v74_v35, %v74_v35  ;;  %v5015_v5 = vpack.c.bf16 %v71_v23, %v71_v23  ;;  %v4011_v23 = vld [vmem:[#allocation2 + $0x4ac] ss:$84 sps:$4 sm:$0xff]   ;;  %v4014_v35 = vld [vmem:[#allocation2 + $0x4b4] ss:$84 sps:$4 sm:$0xff]  }
 0x3f4   :  { %3766 = vmatprep.mubr.msk.bf16.mxu0 %vm1339_vm3, %v5015_v5  ;;  %3768 = vmatprep.mubr.msk.bf16.mxu1 %vm1339_vm3, %v5015_v5 }
 0x3f5   :  { %1440 = vmatmul.mubr.bf16.vlgmr.msra.gmra.mrb[0].mxu0 %v5013_v47  ;;  %1481 = vmatmul.mubr.bf16.vlgmr.msra.gmra.mrb[0].mxu1 %v5013_v47 }
 0x3f6   :  { %1490 = vmatpush1.bf16.msra.mxu0 %v3967_v28  ;;  %1531 = vmatpush1.bf16.msra.mxu1 %v3970_v40 }
 0x3f7   :  { %1491 = vmatprep.subr.bf16.mxu0 %v3975_v57  ;;  %1532 = vmatprep.subr.bf16.mxu1 %v3978_v52  ;;  %v4009_v57 = vld [vmem:[#allocation2 + $0x4a8] ss:$84 sps:$4 sm:$0xff]  }
 0x3f8   :  { %3770 = vmatprep.mubr.msk.bf16.mxu0 %vm1339_vm3, %v5015_v5  ;;  %3772 = vmatprep.mubr.msk.bf16.mxu1 %vm1339_vm3, %v5015_v5  ;;  %v4020_v52 = vld [vmem:[#allocation2 + $0x55c] ss:$84 sps:$4 sm:$0xff]  }
 0x3fa   :  { %1492 = vmatpush1.bf16.msra.mxu0 %v3973_v55  ;;  %1533 = vmatpush1.bf16.msra.mxu1 %v3976_v24  ;;  %v2577_v43 = vpop.permute.xlu1 %2576  ;;  %v2792_v55 = vsub.f32 %v4986_v46, %v4858_v13  ;;  %v4015_v24 = vld [vmem:[#allocation2 + $0x550] ss:$84 sps:$4 sm:$0xff]  }
 0x3fb   :  { %v5028_v8 = vadd.f32 %v2577_v43, %v4801_v20  ;;  %1493 = vmatprep.subr.bf16.mxu0 %v3981_v62  ;;  %1534 = vmatprep.subr.bf16.mxu1 %v3984_v54  ;;  %v2758_v20 = vmul.f32 %v2757_v7, %v4456_v39  ;;  %v4018_v62 = vld [vmem:[#allocation2 + $0x558] ss:$84 sps:$4 sm:$0xff]   ;;  %v4021_v43 = vld [vmem:[#allocation2 + $0x5fc] ss:$84 sps:$4 sm:$0x1f]  }
 0x3fd   :  { %2665 = vrot.lane.b32.xlu0 %v5028_v8, %s4267_s25  ;;  %2662 = vrot.lane.b32.xlu1 %v5028_v8, %s4270_s27  ;;  %s4295_s25 = smov 44  }
 0x3fe   :  { %1494 = vmatpush1.bf16.msra.mxu0 %v3979_v15  ;;  %1535 = vmatpush1.bf16.msra.mxu1 %v3982_v25  ;;  %v4023_v15 = vld [vmem:[#allocation2 + $0x604] ss:$84 sps:$4 sm:$0x1f]  }
 0x3ff   :  { %1495 = vmatprep.subr.bf16.mxu0 %v3987_v38  ;;  %1536 = vmatprep.subr.bf16.mxu1 %v3990_v18  ;;  %v4025_v38 = vld [vmem:[#allocation2 + $0x5f8] ss:$84 sps:$4 sm:$0x1f]   ;;  %v4026_v18 = vld [vmem:[#allocation2 + $0x600] ss:$84 sps:$4 sm:$0x1f]  }
 0x400   :  { %v1357_v46 = vsel %vm1343_vm1, %v4025_v38, 0  ;;  %v4074_v38 = vld [vmem:[#allocation2 + $0x4c4] ss:$84 sps:$4 sm:$0xff]  }
 0x401   :  { %2760 = vrot.lane.b32.xlu1 %v2758_v20, %s4282_s17  ;;  %v4029_v20 = vld [vmem:[#allocation2 + $0x24] ss:$84 sps:$4 sm:$0xff]  }
 0x402   :  { %1496 = vmatpush1.bf16.msra.mxu0 %v3985_v3  ;;  %1537 = vmatpush1.bf16.msra.mxu1 %v3988_v51  ;;  %v2793_v3 = vmul.f32 %v2792_v55, %v4456_v39  ;;  %v1363_v51 = vsel %vm1343_vm1, %v4026_v18, 0  ;;  %v4060_v55 = vld [vmem:[#allocation2 + $0x370] ss:$84 sps:$4 sm:$0xff]   ;;  %v4069_v18 = vld [vmem:[#allocation2 + $0x4b8] ss:$84 sps:$4 sm:$0xff]  }
 0x403   :  { %1497 = vmatprep.subr.bf16.mxu0 %v3993_v17  ;;  %1538 = vmatprep.subr.bf16.mxu1 %v3996_v59  ;;  %v4032_v17 = vld [vmem:[#allocation2 + $0x2c] ss:$84 sps:$4 sm:$0xff]  }
 0x404   :  { %v5072_v59 = vadd.f32 %v2793_v3, %v4858_v13  ;;  %v4038_v13 = vld [vmem:[#allocation2 + $0xd4] ss:$84 sps:$4 sm:$0xff]  }
 0x405   :  { %v4072_v3 = vld [vmem:[#allocation2 + $0x4c0] ss:$84 sps:$4 sm:$0xff]  }
 0x406   :  { %1498 = vmatpush1.bf16.msra.mxu0 %v3991_v19  ;;  %1539 = vmatpush1.bf16.msra.mxu1 %v3994_v33  ;;  %v4027_v19 = vld [vmem:[#allocation2 + $0x20] ss:$84 sps:$4 sm:$0xff]   ;;  %v4030_v33 = vld [vmem:[#allocation2 + $0x28] ss:$84 sps:$4 sm:$0xff]   ;;  %v2862_v1 = vmul.f32 %v5072_v59, %v4483_v63 }
 0x407   :  { %1499 = vmatprep.subr.bf16.mxu0 %v3999_v0  ;;  %1540 = vmatprep.subr.bf16.mxu1 %v4002_v45  ;;  %v4033_v45 = vld [vmem:[#allocation2 + $0xc8] ss:$84 sps:$4 sm:$0xff]  }
 0x408   :  { %v2768_v7 = vpop.permute.xlu0 %2767  ;;  %v2775_v44 = vpop.permute.xlu1 %2774 }
 0x409   :  { %v5040_v11 = vadd.f32 %v2768_v7, %v4815_v56  ;;  %v5043_v14 = vadd.f32 %v2775_v44, %v4824_v30  ;;  %v4012_v56 = vld [vmem:[#allocation2 + $0x4b0] ss:$84 sps:$4 sm:$0xff]   ;;  %v4017_v30 = vld [vmem:[#allocation2 + $0x554] ss:$84 sps:$4 sm:$0xff]   ;;  %v4042_v7 = vld [vmem:[#allocation2 + $0x178] ss:$84 sps:$4 sm:$0xff]  }
 0x40a   :  { %1500 = vmatpush1.bf16.msra.mxu0 %v3997_v53  ;;  %1541 = vmatpush1.bf16.msra.mxu1 %v4000_v21  ;;  %v4036_v21 = vld [vmem:[#allocation2 + $0xd0] ss:$84 sps:$4 sm:$0xff]  }
 0x40b   :  { %1501 = vmatprep.subr.bf16.mxu0 %v4005_v41  ;;  %1542 = vmatprep.subr.bf16.mxu1 %v4008_v49  ;;  %v4041_v41 = vld [vmem:[#allocation2 + $0x174] ss:$84 sps:$4 sm:$0xff]   ;;  %v4039_v49 = vld [vmem:[#allocation2 + $0x170] ss:$84 sps:$4 sm:$0xff]  }
 0x40c   :  { %v5045_v4 = vpop.permute.xlu0 %2834  ;;  %v4047_v44 = vld [vmem:[#allocation2 + $0x21c] ss:$84 sps:$4 sm:$0xff]  }
 0x40d   :  { %v2838_v28 = vmul.f32 %v5045_v4, %v5040_v11  ;;  %v2844_v40 = vmul.f32 %v5045_v4, %v5043_v14 }
 0x40e   :  { %1502 = vmatpush1.bf16.msra.mxu0 %v4003_v42  ;;  %1543 = vmatpush1.bf16.msra.mxu1 %v4006_v26  ;;  %v4050_v42 = vld [vmem:[#allocation2 + $0x224] ss:$84 sps:$4 sm:$0xff]  }
 0x40f   :  { %2840 = vrot.lane.b32.xlu0 %v2838_v28, %s4278_s13  ;;  %2846 = vrot.lane.b32.xlu1 %v2844_v40, %s4279_s14  ;;  %v4045_v26 = vld [vmem:[#allocation2 + $0x218] ss:$84 sps:$4 sm:$0xff]   ;;  %v4051_v40 = vld [vmem:[#allocation2 + $0x2c0] ss:$84 sps:$4 sm:$0xff]  }
 0x410   :  { %1503 = vmatprep.subr.bf16.mxu0 %v4011_v23  ;;  %1544 = vmatprep.subr.bf16.mxu1 %v4014_v35  ;;  %v4048_v23 = vld [vmem:[#allocation2 + $0x220] ss:$84 sps:$4 sm:$0xff]   ;;  %v4053_v35 = vld [vmem:[#allocation2 + $0x2c4] ss:$84 sps:$4 sm:$0xff]  }
 0x411   :  { %v4056_v28 = vld [vmem:[#allocation2 + $0x2cc] ss:$84 sps:$4 sm:$0xff]  }
 0x412   :  { %1504 = vmatpush1.bf16.msra.mxu0 %v4009_v57  ;;  %1545 = vmatpush1.bf16.msra.mxu1 %v4012_v56  ;;  %v2584_v54 = vpop.permute.xlu1 %2583  ;;  %v4054_v57 = vld [vmem:[#allocation2 + $0x2c8] ss:$84 sps:$4 sm:$0xff]   ;;  %v4059_v56 = vld [vmem:[#allocation2 + $0x36c] ss:$84 sps:$4 sm:$0xff]  }
 0x413   :  { %v5056_v25 = vadd.f32 %v2584_v54, %v4843_v9  ;;  %1505 = vmatprep.subr.bf16.mxu0 %v4017_v30  ;;  %1546 = vmatprep.subr.bf16.mxu1 %v4020_v52  ;;  %v2779_v9 = vmul.f32 %v2778_v60, %v4456_v39  ;;  %v4062_v30 = vld [vmem:[#allocation2 + $0x374] ss:$84 sps:$4 sm:$0xff]   ;;  %v4063_v54 = vld [vmem:[#allocation2 + $0x410] ss:$84 sps:$4 sm:$0xff]  }
 0x414   :  { %v4057_v52 = vld [vmem:[#allocation2 + $0x368] ss:$84 sps:$4 sm:$0xff]  }
 0x415   :  { %2673 = vrot.lane.b32.xlu1 %v5056_v25, %s4274_s9  ;;  %2670 = vrot.lane.b32.xlu0 %v5056_v25, %s4273_s30 }
 0x416   :  { %1506 = vmatpush1.bf16.msra.mxu0 %v4015_v24  ;;  %1547 = vmatpush1.bf16.msra.mxu1 %v4018_v62  ;;  %v4065_v24 = vld [vmem:[#allocation2 + $0x414] ss:$84 sps:$4 sm:$0xff]   ;;  %v4068_v62 = vld [vmem:[#allocation2 + $0x41c] ss:$84 sps:$4 sm:$0xff]  }
 0x417   :  { %3769 = vmatprep.subr.msk.bf16.mxu0 %vm1343_vm1, %v4021_v43  ;;  %3771 = vmatprep.subr.msk.bf16.mxu1 %vm1343_vm1, %v4023_v15  ;;  %v4066_v43 = vld [vmem:[#allocation2 + $0x418] ss:$84 sps:$4 sm:$0xff]   ;;  %v4071_v15 = vld [vmem:[#allocation2 + $0x4bc] ss:$84 sps:$4 sm:$0xff]  }
 0x419   :  { %2781 = vrot.lane.b32.xlu0 %v2779_v9, %s4279_s14  ;;  %v4077_v9 = vld [vmem:[#allocation2 + $0x564] ss:$84 sps:$4 sm:$0xff]  }
 0x41a   :  { %1508 = vmatpush1.bf16.msra.mxu0 %v1357_v46  ;;  %1549 = vmatpush1.bf16.msra.mxu1 %v1363_v51  ;;  %v4080_v46 = vld [vmem:[#allocation2 + $0x56c] ss:$84 sps:$4 sm:$0xff]  }
 0x41b   :  { %1571 = vmatprep.subr.bf16.mxu0 %v4029_v20  ;;  %1612 = vmatprep.subr.bf16.mxu1 %v4032_v17  ;;  %v4075_v51 = vld [vmem:[#allocation2 + $0x560] ss:$84 sps:$4 sm:$0xff]   ;;  %v4078_v20 = vld [vmem:[#allocation2 + $0x568] ss:$84 sps:$4 sm:$0xff]  }
 0x41c   :  { %v2789_v0 = vpop.permute.xlu0 %2788  ;;  %v4081_v17 = vld [vmem:[#allocation2 + $0x60c] ss:$84 sps:$4 sm:$0x1f]  }
 0x41d   :  { %v5078_v60 = vadd.f32 %v2789_v0, %v4840_v12  ;;  %1522 = vmatmul.mubr.bf16.vlgmr.msra.gmra.mrb[4].mxu0 %v5013_v47  ;;  %1563 = vmatmul.mubr.bf16.vlgmr.msra.gmra.mrb[4].mxu1 %v5013_v47  ;;  %v4044_v12 = vld [vmem:[#allocation2 + $0x17c] ss:$84 sps:$4 sm:$0xff]  }
 0x41e   :  { %2864 = vrot.lane.b32.xlu0 %v2862_v1, %s4279_s14  ;;  %1572 = vmatpush1.bf16.msra.mxu0 %v4027_v19  ;;  %v4085_v19 = vld [vmem:[#allocation2 + $0x608] ss:$84 sps:$4 sm:$0x1f]   ;;  %v4086_v0 = vld [vmem:[#allocation2 + $0x610] ss:$84 sps:$4 sm:$0x1f]  }
 0x41f   :  { %v2856_v53 = vmul.f32 %v5078_v60, %v4483_v63  ;;  %3774 = vmatprep.mubr.msk.bf16.mxu0 %vm1339_vm3, %v5015_v5  ;;  %1613 = vmatpush1.bf16.msra.mxu1 %v4030_v33  ;;  %v4083_v33 = vld [vmem:[#allocation2 + $0x614] ss:$84 sps:$4 sm:$0x1f]   ;;  %v1369_v1 = vsel %vm1343_vm1, %v4085_v19, 0 }
 0x420   :  { %3776 = vmatprep.mubr.msk.bf16.mxu1 %vm1339_vm3, %v5015_v5  ;;  %1573 = vmatprep.subr.bf16.mxu0 %v4035_v58  ;;  %v4089_v58 = vld [vmem:[#allocation2 + $0x34] ss:$84 sps:$4 sm:$0xff]  }
 0x421   :  { %1614 = vmatprep.subr.bf16.mxu1 %v4038_v13  ;;  %2858 = vrot.lane.b32.xlu1 %v2856_v53, %s4278_s13  ;;  %v1375_v13 = vsel %vm1343_vm1, %v4086_v0, 0  ;;  %v4087_v53 = vld [vmem:[#allocation2 + $0x30] ss:$84 sps:$4 sm:$0xff]   ;;  %v4123_v19 = vld [vmem:[#allocation2 + $0x420] ss:$84 sps:$4 sm:$0xff]  }
 0x422   :  { %1574 = vmatpush1.bf16.msra.mxu0 %v4033_v45  ;;  %v4092_v45 = vld [vmem:[#allocation2 + $0x3c] ss:$84 sps:$4 sm:$0xff]   ;;  %v4131_v0 = vld [vmem:[#allocation2 + $0x4cc] ss:$84 sps:$4 sm:$0xff]  }
 0x423   :  { %1615 = vmatpush1.bf16.msra.mxu1 %v4036_v21  ;;  %1575 = vmatprep.subr.bf16.mxu0 %v4041_v41  ;;  %v4090_v21 = vld [vmem:[#allocation2 + $0x38] ss:$84 sps:$4 sm:$0xff]   ;;  %v4095_v41 = vld [vmem:[#allocation2 + $0xdc] ss:$84 sps:$4 sm:$0xff]  }
 0x424   :  { %1616 = vmatprep.subr.bf16.mxu1 %v4044_v12  ;;  %v4098_v12 = vld [vmem:[#allocation2 + $0xe4] ss:$84 sps:$4 sm:$0xff]  }
 0x426   :  { %1576 = vmatpush1.bf16.msra.mxu0 %v4039_v49  ;;  %v4093_v49 = vld [vmem:[#allocation2 + $0xd8] ss:$84 sps:$4 sm:$0xff]  }
 0x427   :  { %1617 = vmatpush1.bf16.msra.mxu1 %v4042_v7  ;;  %1577 = vmatprep.subr.bf16.mxu0 %v4047_v44  ;;  %v4096_v7 = vld [vmem:[#allocation2 + $0xe0] ss:$84 sps:$4 sm:$0xff]   ;;  %v4101_v44 = vld [vmem:[#allocation2 + $0x184] ss:$84 sps:$4 sm:$0xff]  }
 0x428   :  { %1618 = vmatprep.subr.bf16.mxu1 %v4050_v42  ;;  %v4104_v42 = vld [vmem:[#allocation2 + $0x18c] ss:$84 sps:$4 sm:$0xff]  }
 0x42a   :  { %1578 = vmatpush1.bf16.msra.mxu0 %v4045_v26  ;;  %v4099_v26 = vld [vmem:[#allocation2 + $0x180] ss:$84 sps:$4 sm:$0xff]  }
 0x42b   :  { %1619 = vmatpush1.bf16.msra.mxu1 %v4048_v23  ;;  %1579 = vmatprep.subr.bf16.mxu0 %v4053_v35  ;;  %v4102_v23 = vld [vmem:[#allocation2 + $0x188] ss:$84 sps:$4 sm:$0xff]   ;;  %v4107_v35 = vld [vmem:[#allocation2 + $0x22c] ss:$84 sps:$4 sm:$0xff]  }
 0x42c   :  { %1620 = vmatprep.subr.bf16.mxu1 %v4056_v28  ;;  %v4110_v28 = vld [vmem:[#allocation2 + $0x234] ss:$84 sps:$4 sm:$0xff]  }
 0x42e   :  { %1580 = vmatpush1.bf16.msra.mxu0 %v4051_v40  ;;  %v4105_v40 = vld [vmem:[#allocation2 + $0x228] ss:$84 sps:$4 sm:$0xff]  }
 0x42f   :  { %1621 = vmatpush1.bf16.msra.mxu1 %v4054_v57  ;;  %1581 = vmatprep.subr.bf16.mxu0 %v4059_v56  ;;  %v4108_v57 = vld [vmem:[#allocation2 + $0x230] ss:$84 sps:$4 sm:$0xff]   ;;  %v4113_v56 = vld [vmem:[#allocation2 + $0x2d4] ss:$84 sps:$4 sm:$0xff]  }
 0x430   :  { %1622 = vmatprep.subr.bf16.mxu1 %v4062_v30  ;;  %v4116_v30 = vld [vmem:[#allocation2 + $0x2dc] ss:$84 sps:$4 sm:$0xff]  }
 0x432   :  { %1582 = vmatpush1.bf16.msra.mxu0 %v4057_v52  ;;  %v4111_v52 = vld [vmem:[#allocation2 + $0x2d0] ss:$84 sps:$4 sm:$0xff]  }
 0x433   :  { %1623 = vmatpush1.bf16.msra.mxu1 %v4060_v55  ;;  %1583 = vmatprep.subr.bf16.mxu0 %v4065_v24  ;;  %v4114_v55 = vld [vmem:[#allocation2 + $0x2d8] ss:$84 sps:$4 sm:$0xff]   ;;  %v4119_v24 = vld [vmem:[#allocation2 + $0x37c] ss:$84 sps:$4 sm:$0xff]  }
 0x434   :  { %1624 = vmatprep.subr.bf16.mxu1 %v4068_v62  ;;  %v4122_v62 = vld [vmem:[#allocation2 + $0x384] ss:$84 sps:$4 sm:$0xff]  }
 0x436   :  { %1584 = vmatpush1.bf16.msra.mxu0 %v4063_v54  ;;  %v2740_v54 = vsub.f32 %v4899_v48, %v4775_v10 }
 0x437   :  { %1625 = vmatpush1.bf16.msra.mxu1 %v4066_v43  ;;  %1585 = vmatprep.subr.bf16.mxu0 %v4071_v15 }
 0x438   :  { %1626 = vmatprep.subr.bf16.mxu1 %v4074_v38 }
 0x43a   :  { %1586 = vmatpush1.bf16.msra.mxu0 %v4069_v18  ;;  %v4117_v18 = vld [vmem:[#allocation2 + $0x378] ss:$84 sps:$4 sm:$0xff]  }
 0x43b   :  { %1627 = vmatpush1.bf16.msra.mxu1 %v4072_v3  ;;  %1587 = vmatprep.subr.bf16.mxu0 %v4077_v9  ;;  %v4120_v9 = vld [vmem:[#allocation2 + $0x380] ss:$84 sps:$4 sm:$0xff]  }
 0x43c   :  { %1628 = vmatprep.subr.bf16.mxu1 %v4080_v46  ;;  %v4125_v46 = vld [vmem:[#allocation2 + $0x424] ss:$84 sps:$4 sm:$0xff]  }
 0x43e   :  { %1588 = vmatpush1.bf16.msra.mxu0 %v4075_v51  ;;  %v4128_v51 = vld [vmem:[#allocation2 + $0x42c] ss:$84 sps:$4 sm:$0xff]  }
 0x43f   :  { %1629 = vmatpush1.bf16.msra.mxu1 %v4078_v20  ;;  %3773 = vmatprep.subr.msk.bf16.mxu0 %vm1343_vm1, %v4081_v17  ;;  %v2741_v20 = vmul.f32 %v2740_v54, %v4456_v39 }
 0x440   :  { %3775 = vmatprep.subr.msk.bf16.mxu1 %vm1343_vm1, %v4083_v33  ;;  %v4126_v33 = vld [vmem:[#allocation2 + $0x428] ss:$84 sps:$4 sm:$0xff]  }
 0x442   :  { %1590 = vmatpush1.bf16.msra.mxu0 %v1369_v1  ;;  %v4134_v1 = vld [vmem:[#allocation2 + $0x4d4] ss:$84 sps:$4 sm:$0xff]  }
 0x443   :  { %1631 = vmatpush1.bf16.msra.mxu1 %v1375_v13  ;;  %1653 = vmatprep.subr.bf16.mxu0 %v4089_v58  ;;  %v4129_v58 = vld [vmem:[#allocation2 + $0x4c8] ss:$84 sps:$4 sm:$0xff]   ;;  %v4132_v13 = vld [vmem:[#allocation2 + $0x4d0] ss:$84 sps:$4 sm:$0xff]  }
 0x444   :  { %1694 = vmatprep.subr.bf16.mxu1 %v4092_v45  ;;  %v4137_v45 = vld [vmem:[#allocation2 + $0x574] ss:$84 sps:$4 sm:$0xff]  }
 0x445   :  { %1604 = vmatmul.mubr.bf16.vlgmr.msra.gmra.mrb[8].mxu0 %v5013_v47 }
 0x446   :  { %1645 = vmatmul.mubr.bf16.vlgmr.msra.gmra.mrb[8].mxu1 %v5013_v47  ;;  %1654 = vmatpush1.bf16.msra.mxu0 %v4087_v53 }
 0x447   :  { %3778 = vmatprep.mubr.msk.bf16.mxu0 %vm1339_vm3, %v5015_v5  ;;  %1695 = vmatpush1.bf16.msra.mxu1 %v4090_v21  ;;  %v4140_v21 = vld [vmem:[#allocation2 + $0x57c] ss:$84 sps:$4 sm:$0xff]  }
 0x448   :  { %3780 = vmatprep.mubr.msk.bf16.mxu1 %vm1339_vm3, %v5015_v5  ;;  %1655 = vmatprep.subr.bf16.mxu0 %v4095_v41 }
 0x449   :  { %1696 = vmatprep.subr.bf16.mxu1 %v4098_v12 }
 0x44a   :  { %1656 = vmatpush1.bf16.msra.mxu0 %v4093_v49  ;;  %v4135_v49 = vld [vmem:[#allocation2 + $0x570] ss:$84 sps:$4 sm:$0xff]  }
 0x44b   :  { %1697 = vmatpush1.bf16.msra.mxu1 %v4096_v7  ;;  %1657 = vmatprep.subr.bf16.mxu0 %v4101_v44  ;;  %v4138_v7 = vld [vmem:[#allocation2 + $0x578] ss:$84 sps:$4 sm:$0xff]   ;;  %v4141_v44 = vld [vmem:[#allocation2 + $0x61c] ss:$84 sps:$4 sm:$0x1f]  }
 0x44c   :  { %1698 = vmatprep.subr.bf16.mxu1 %v4104_v42  ;;  %v4145_v42 = vld [vmem:[#allocation2 + $0x618] ss:$84 sps:$4 sm:$0x1f]  }
 0x44e   :  { %1658 = vmatpush1.bf16.msra.mxu0 %v4099_v26 }
 0x44f   :  { %1699 = vmatpush1.bf16.msra.mxu1 %v4102_v23  ;;  %1659 = vmatprep.subr.bf16.mxu0 %v4107_v35  ;;  %v4143_v23 = vld [vmem:[#allocation2 + $0x624] ss:$84 sps:$4 sm:$0x1f]   ;;  %v4146_v35 = vld [vmem:[#allocation2 + $0x620] ss:$84 sps:$4 sm:$0x1f]  }
 0x450   :  { %1700 = vmatprep.subr.bf16.mxu1 %v4110_v28  ;;  %v4149_v28 = vld [vmem:[#allocation2 + $0x44] ss:$84 sps:$4 sm:$0xff]  }
 0x452   :  { %1660 = vmatpush1.bf16.msra.mxu0 %v4105_v40  ;;  %v1387_v40 = vsel %vm1343_vm1, %v4146_v35, 0  ;;  %v4191_v35 = vld [vmem:[#allocation2 + $0x4dc] ss:$84 sps:$4 sm:$0xff]  }
 0x453   :  { %1701 = vmatpush1.bf16.msra.mxu1 %v4108_v57  ;;  %1661 = vmatprep.subr.bf16.mxu0 %v4113_v56  ;;  %v4152_v57 = vld [vmem:[#allocation2 + $0x4c] ss:$84 sps:$4 sm:$0xff]  }
 0x454   :  { %1702 = vmatprep.subr.bf16.mxu1 %v4116_v30  ;;  %v4147_v56 = vld [vmem:[#allocation2 + $0x40] ss:$84 sps:$4 sm:$0xff]   ;;  %v4150_v30 = vld [vmem:[#allocation2 + $0x48] ss:$84 sps:$4 sm:$0xff]  }
 0x455   :  { %v2658_v43 = vpop.permute.xlu0 %2657  ;;  %v2655_v15 = vpop.permute.xlu1 %2654 }
 0x456   :  { %v2660_v38 = vsel %vm2011_vm0, %v2655_v15, %v2658_v43  ;;  %1662 = vmatpush1.bf16.msra.mxu0 %v4111_v52  ;;  %v4155_v52 = vld [vmem:[#allocation2 + $0xec] ss:$84 sps:$4 sm:$0xff]   ;;  %v4156_v43 = vld [vmem:[#allocation2 + $0xf0] ss:$84 sps:$4 sm:$0xff]  }
 0x457   :  { %v2727_v3 = vadd.f32 %v4904_v29, %v2660_v38  ;;  %1703 = vmatpush1.bf16.msra.mxu1 %v4114_v55  ;;  %1663 = vmatprep.subr.bf16.mxu0 %v4119_v24  ;;  %v5107_v29 = vadd.f32 %v2741_v20, %v4775_v10  ;;  %v4158_v55 = vld [vmem:[#allocation2 + $0xf4] ss:$84 sps:$4 sm:$0xff]   ;;  %v4167_v20 = vld [vmem:[#allocation2 + $0x23c] ss:$84 sps:$4 sm:$0xff]  }
 0x458   :  { %1704 = vmatprep.subr.bf16.mxu1 %v4122_v62  ;;  %v4153_v24 = vld [vmem:[#allocation2 + $0xe8] ss:$84 sps:$4 sm:$0xff]  }
 0x459   :  { %v2795_v17 = vsub.f32 %v2727_v3, %v2655_v15  ;;  %v2816_v53 = vmul.f32 %v5107_v29, %v4450_v37  ;;  %v1381_v37 = vsel %vm1343_vm1, %v4145_v42, 0  ;;  %v4161_v15 = vld [vmem:[#allocation2 + $0x194] ss:$84 sps:$4 sm:$0xff]  }
 0x45a   :  { %1664 = vmatpush1.bf16.msra.mxu0 %v4117_v18  ;;  %v4164_v18 = vld [vmem:[#allocation2 + $0x19c] ss:$84 sps:$4 sm:$0xff]  }
 0x45b   :  { %v2796_v48 = vmul.f32 %v2795_v17, %v4456_v39  ;;  %1705 = vmatpush1.bf16.msra.mxu1 %v4120_v9  ;;  %1665 = vmatprep.subr.bf16.mxu0 %v4125_v46  ;;  %v4159_v9 = vld [vmem:[#allocation2 + $0x190] ss:$84 sps:$4 sm:$0xff]  }
 0x45c   :  { %1706 = vmatprep.subr.bf16.mxu1 %v4128_v51  ;;  %v4162_v51 = vld [vmem:[#allocation2 + $0x198] ss:$84 sps:$4 sm:$0xff]  }
 0x45d   :  { %2798 = vrot.lane.b32.xlu1 %v2796_v48, %s5592_s2  ;;  %v4170_v17 = vld [vmem:[#allocation2 + $0x244] ss:$84 sps:$4 sm:$0xff]  }
 0x45e   :  { %1666 = vmatpush1.bf16.msra.mxu0 %v4123_v19  ;;  %v4165_v48 = vld [vmem:[#allocation2 + $0x238] ss:$84 sps:$4 sm:$0xff]  }
 0x45f   :  { %1707 = vmatpush1.bf16.msra.mxu1 %v4126_v33  ;;  %1667 = vmatprep.subr.bf16.mxu0 %v4131_v0  ;;  %v4168_v33 = vld [vmem:[#allocation2 + $0x240] ss:$84 sps:$4 sm:$0xff]   ;;  %v4173_v0 = vld [vmem:[#allocation2 + $0x2e4] ss:$84 sps:$4 sm:$0xff]  }
 0x460   :  { %1708 = vmatprep.subr.bf16.mxu1 %v4134_v1 }
 0x461   :  { %v2820_v41 = vpop.permute.xlu1 %2819  ;;  %v2826_v10 = vpop.permute.xlu0 %2825 }
 0x462   :  { %v2822_v12 = vadd.f32 %v2820_v41, %v2816_v53  ;;  %1668 = vmatpush1.bf16.msra.mxu0 %v4129_v58  ;;  %v4171_v58 = vld [vmem:[#allocation2 + $0x2e0] ss:$84 sps:$4 sm:$0xff]   ;;  %v4177_v41 = vld [vmem:[#allocation2 + $0x388] ss:$84 sps:$4 sm:$0xff]  }
 0x463   :  { %1709 = vmatpush1.bf16.msra.mxu1 %v4132_v13  ;;  %1669 = vmatprep.subr.bf16.mxu0 %v4137_v45  ;;  %v4174_v13 = vld [vmem:[#allocation2 + $0x2e8] ss:$84 sps:$4 sm:$0xff]   ;;  %v4179_v45 = vld [vmem:[#allocation2 + $0x38c] ss:$84 sps:$4 sm:$0xff]  }
 0x464   :  { %v2828_v26 = vadd.f32 %v2826_v10, %v2822_v12  ;;  %1710 = vmatprep.subr.bf16.mxu1 %v4140_v21  ;;  %v4182_v21 = vld [vmem:[#allocation2 + $0x394] ss:$84 sps:$4 sm:$0xff]   ;;  %v4180_v12 = vld [vmem:[#allocation2 + $0x390] ss:$84 sps:$4 sm:$0xff]  }
 0x465   :  { %v4188_v10 = vld [vmem:[#allocation2 + $0x43c] ss:$84 sps:$4 sm:$0xff]  }
 0x466   :  { %1670 = vmatpush1.bf16.msra.mxu0 %v4135_v49  ;;  %2830 = vrot.lane.b32.xlu0 %v2828_v26, %s5592_s2  ;;  %v4185_v49 = vld [vmem:[#allocation2 + $0x434] ss:$84 sps:$4 sm:$0xff]   ;;  %v4183_v26 = vld [vmem:[#allocation2 + $0x430] ss:$84 sps:$4 sm:$0xff]  }
 0x467   :  { %1711 = vmatpush1.bf16.msra.mxu1 %v4138_v7  ;;  %3777 = vmatprep.subr.msk.bf16.mxu0 %vm1343_vm1, %v4141_v44 }
 0x468   :  { %3779 = vmatprep.subr.msk.bf16.mxu1 %vm1343_vm1, %v4143_v23 }
 0x46a   :  { %1672 = vmatpush1.bf16.msra.mxu0 %v1381_v37 }
 0x46b   :  { %1713 = vmatpush1.bf16.msra.mxu1 %v1387_v40  ;;  %1735 = vmatprep.subr.bf16.mxu0 %v4149_v28  ;;  %v4194_v28 = vld [vmem:[#allocation2 + $0x4e4] ss:$84 sps:$4 sm:$0xff]  }
 0x46c   :  { %1776 = vmatprep.subr.bf16.mxu1 %v4152_v57  ;;  %v4189_v40 = vld [vmem:[#allocation2 + $0x4d8] ss:$84 sps:$4 sm:$0xff]  }
 0x46d   :  { %1686 = vmatmul.mubr.bf16.vlgmr.msra.gmra.mrb[12].mxu0 %v5013_v47 }
 0x46e   :  { %1727 = vmatmul.mubr.bf16.vlgmr.msra.gmra.mrb[12].mxu1 %v5013_v47  ;;  %1736 = vmatpush1.bf16.msra.mxu0 %v4147_v56  ;;  %v4192_v56 = vld [vmem:[#allocation2 + $0x4e0] ss:$84 sps:$4 sm:$0xff]  }
 0x46f   :  { %3782 = vmatprep.mubr.msk.bf16.mxu0 %vm1339_vm3, %v5015_v5  ;;  %1777 = vmatpush1.bf16.msra.mxu1 %v4150_v30  ;;  %v2666_v62 = vpop.permute.xlu0 %2665  ;;  %v2663_v54 = vpop.permute.xlu1 %2662  ;;  %v4197_v30 = vld [vmem:[#allocation2 + $0x584] ss:$84 sps:$4 sm:$0xff]  }
 0x470   :  { %3784 = vmatprep.mubr.msk.bf16.mxu1 %vm1339_vm3, %v5015_v5  ;;  %v2668_v38 = vsel %vm2011_vm0, %v2663_v54, %v2666_v62  ;;  %1737 = vmatprep.subr.bf16.mxu0 %v4155_v52  ;;  %v4195_v62 = vld [vmem:[#allocation2 + $0x580] ss:$84 sps:$4 sm:$0xff]  }
 0x471   :  { %v2733_v3 = vadd.f32 %v4949_v6, %v2668_v38  ;;  %1778 = vmatprep.subr.bf16.mxu1 %v4158_v55  ;;  %v4176_v6 = vld [vmem:[#allocation2 + $0x2ec] ss:$84 sps:$4 sm:$0xff]  }
 0x472   :  { %1738 = vmatpush1.bf16.msra.mxu0 %v4153_v24  ;;  %v4200_v55 = vld [vmem:[#allocation2 + $0x58c] ss:$84 sps:$4 sm:$0xff]  }
 0x473   :  { %v2802_v46 = vsub.f32 %v2733_v3, %v2663_v54  ;;  %1779 = vmatpush1.bf16.msra.mxu1 %v4156_v43  ;;  %1739 = vmatprep.subr.bf16.mxu0 %v4161_v15  ;;  %v2761_v1 = vpop.permute.xlu1 %2760  ;;  %v4198_v54 = vld [vmem:[#allocation2 + $0x588] ss:$84 sps:$4 sm:$0xff]   ;;  %v4201_v38 = vld [vmem:[#allocation2 + $0x62c] ss:$84 sps:$4 sm:$0x1f]  }
 0x474   :  { %1780 = vmatprep.subr.bf16.mxu1 %v4164_v18  ;;  %v5128_v53 = vadd.f32 %v2761_v1, %v4808_v61  ;;  %v4186_v61 = vld [vmem:[#allocation2 + $0x438] ss:$84 sps:$4 sm:$0xff]   ;;  %v4205_v18 = vld [vmem:[#allocation2 + $0x628] ss:$84 sps:$4 sm:$0x1f]  }
 0x475   :  { %v2803_v19 = vmul.f32 %v2802_v46, %v4456_v39  ;;  %v4203_v3 = vld [vmem:[#allocation2 + $0x634] ss:$84 sps:$4 sm:$0x1f]  }
 0x476   :  { %1740 = vmatpush1.bf16.msra.mxu0 %v4159_v9  ;;  %v2837_v7 = vmul.f32 %v5045_v4, %v5128_v53  ;;  %v4206_v9 = vld [vmem:[#allocation2 + $0x630] ss:$84 sps:$4 sm:$0x1f]  }
 0x477   :  { %1781 = vmatpush1.bf16.msra.mxu1 %v4162_v51  ;;  %2805 = vrot.lane.b32.xlu1 %v2803_v19, %s4277_s12 }
 0x478   :  { %1741 = vmatprep.subr.bf16.mxu0 %v4167_v20  ;;  %1782 = vmatprep.subr.bf16.mxu1 %v4170_v17  ;;  %v1399_v20 = vsel %vm1343_vm1, %v4206_v9, 0  ;;  %v4219_v17 = vld [vmem:[%s5579_s5 + $0x4] ss:$28 sps:$4 sm:$0xff]  }
 0x47a   :  { %1742 = vmatpush1.bf16.msra.mxu0 %v4165_v48 }
 0x47b   :  { %1783 = vmatpush1.bf16.msra.mxu1 %v4168_v33  ;;  %1743 = vmatprep.subr.bf16.mxu0 %v4173_v0  ;;  %v5593_v33 = vmov 0   ;;  %v4217_v0 = vld [vmem:[%s5579_s5] ss:$28 sps:$4 sm:$0xff]  }
 0x47c   :  { %1784 = vmatprep.subr.bf16.mxu1 %v4176_v6 }
 0x47e   :  { %1744 = vmatpush1.bf16.msra.mxu0 %v4171_v58  ;;  %v4209_v58 = vld [vmem:[#allocation2 + $0x1a0] ss:$84 sps:$4 sm:$0xff]  }
 0x47f   :  { %1785 = vmatpush1.bf16.msra.mxu1 %v4174_v13  ;;  %1745 = vmatprep.subr.bf16.mxu0 %v4179_v45  ;;  %v4211_v13 = vld [vmem:[#allocation2 + $0x2f0] ss:$84 sps:$4 sm:$0xff]   ;;  %v4212_v45 = vld [vmem:[#allocation2 + $0x398] ss:$84 sps:$4 sm:$0xff]  }
 0x480   :  { %1786 = vmatprep.subr.bf16.mxu1 %v4182_v21  ;;  %v4214_v21 = vld [vmem:[#allocation2 + $0x4e8] ss:$84 sps:$4 sm:$0xff]  }
 0x481   :  { %v2841_v44 = vpop.permute.xlu0 %2840  ;;  %v2847_v23 = vpop.permute.xlu1 %2846 }
 0x482   :  { %v2843_v42 = vadd.f32 %v2841_v44, %v2837_v7  ;;  %1746 = vmatpush1.bf16.msra.mxu0 %v4177_v41  ;;  %v4216_v41 = vld [vmem:[#allocation2 + $0x638] ss:$84 sps:$4 sm:$0x1f]  }
 0x483   :  { %1787 = vmatpush1.bf16.msra.mxu1 %v4180_v12  ;;  %1747 = vmatprep.subr.bf16.mxu0 %v4185_v49  ;;  %v4220_v12 = vld [vmem:[%s5579_s5 + $0x8] ss:$28 sps:$4 sm:$0xff]  }
 0x484   :  { %v2849_v37 = vadd.f32 %v2847_v23, %v2843_v42  ;;  %1788 = vmatprep.subr.bf16.mxu1 %v4188_v10 }
 0x486   :  { %1748 = vmatpush1.bf16.msra.mxu0 %v4183_v26  ;;  %2851 = vrot.lane.b32.xlu0 %v2849_v37, %s4295_s25 }
 0x487   :  { %1789 = vmatpush1.bf16.msra.mxu1 %v4186_v61  ;;  %v2671_v57 = vpop.permute.xlu0 %2670  ;;  %v2674_v4 = vpop.permute.xlu1 %2673  ;;  %1749 = vmatprep.subr.bf16.mxu0 %v4191_v35 }
 0x488   :  { %v2676_v52 = vsel %vm2011_vm0, %v2671_v57, %v2674_v4  ;;  %1790 = vmatprep.subr.bf16.mxu1 %v4194_v28  ;;  %v5203_v4 = vld [vmem:[%s5577_s3] sm:$0xff] }
 0x489   :  { %v2739_v24 = vadd.f32 %v4988_v50, %v2676_v52  ;;  %v1393_v50 = vsel %vm1343_vm1, %v4205_v18, 0 }
 0x48a   :  { %1750 = vmatpush1.bf16.msra.mxu0 %v4189_v40  ;;  %v5197_v40 = vsub.s32 4, %v4428_v27 }
 0x48b   :  { %v2809_v43 = vsub.f32 %v2739_v24, %v2671_v57  ;;  %1791 = vmatpush1.bf16.msra.mxu1 %v4192_v56  ;;  %v2782_v15 = vpop.permute.xlu0 %2781  ;;  %1751 = vmatprep.subr.bf16.mxu0 %v4197_v30  ;;  %v1882_v57 = vsub.s32 5, %v4428_v27 }
 0x48c   :  { %1792 = vmatprep.subr.bf16.mxu1 %v4200_v55  ;;  %v2784_v51 = vadd.f32 %v2782_v15, %v4833_v16  ;;  %v4207_v16 = vld [vmem:[#allocation2 + $0x50] ss:$84 sps:$4 sm:$0xff]  }
 0x48d   :  { %v2810_v46 = vmul.f32 %v2809_v43, %v4456_v39  ;;  %v1883_v56 = vrot.slane %v5203_v4, %v1882_v57 }
 0x48e   :  { %1752 = vmatpush1.bf16.msra.mxu0 %v4195_v62  ;;  %v2855_v39 = vmul.f32 %v2784_v51, %v4483_v63  ;;  %v4208_v63 = vld [vmem:[#allocation2 + $0xf8] ss:$84 sps:$4 sm:$0xff]  }
 0x48f   :  { %1793 = vmatpush1.bf16.msra.mxu1 %v4198_v54  ;;  %2812 = vrot.lane.b32.xlu1 %v2810_v46, %s4280_s15 }
 0x490   :  { %3781 = vmatprep.subr.msk.bf16.mxu0 %vm1343_vm1, %v4201_v38  ;;  %3783 = vmatprep.subr.msk.bf16.mxu1 %vm1343_vm1, %v4203_v3  ;;  %v2865_v6 = vpop.permute.xlu0 %2864 }
 0x492   :  { %1754 = vmatpush1.bf16.msra.mxu0 %v1393_v50 }
 0x493   :  { %1795 = vmatpush1.bf16.msra.mxu1 %v1399_v20  ;;  %2874 = vrot.lane.b32.xlu1 %v5005_v36, %s4278_s13  ;;  %v2859_v19 = vpop.permute.xlu1 %2858  ;;  %v4222_v36 = vld [vmem:[%s5579_s5 + $0xc] ss:$28 sps:$4 sm:$0xff]  }
 0x494   :  { %v2861_v48 = vadd.f32 %v2859_v19, %v2855_v39  ;;  %1817 = vmatprep.subr.bf16.mxu0 %v5593_v33  ;;  %2982 = vmatprep.subr.bf16.mxu1 %v4219_v17  ;;  %v5594_v39 = vmov 112   ;;  %v5255_v19 = vsub.s32 3, %v4428_v27 }
 0x495   :  { %1768 = vmatmul.mubr.bf16.vlgmr.msra.gmra.mrb[16].mxu0 %v5013_v47 }
 0x496   :  { %v2867_v1 = vadd.f32 %v2865_v6, %v2861_v48  ;;  %1809 = vmatmul.mubr.bf16.vlgmr.msra.gmra.mrb[16].mxu1 %v5013_v47  ;;  %1818 = vmatpush1.bf16.msra.mxu0 %v4207_v16  ;;  %v5252_v16 = vld [vmem:[%s5577_s3 + $0x8] sm:$0xff] }
 0x497   :  { %3785 = vmatprep.mubr.msk.bf16.mxu0 %vm1339_vm3, %v5015_v5  ;;  %1819 = vmatprep.subr.bf16.mxu0 %v5593_v33  ;;  %v4210_v5 = vld [vmem:[#allocation2 + $0x248] ss:$84 sps:$4 sm:$0xff]   ;;  %v1907_v48 = vrot.slane %v5252_v16, %v5255_v19 }
 0x498   :  { %2869 = vrot.lane.b32.xlu0 %v2867_v1, %s4296_s11  ;;  %2983 = vmatpush1.bf16.msra.mxu1 %v4217_v0 }
 0x499   :  { %3014 = vmatprep.mubr.bf16.mxu1 %v5593_v33  ;;  %3838 = vmatprep.subr.bf16.mxu1 %v4222_v36 }
 0x49a   :  { %1820 = vmatpush1.bf16.msra.mxu0 %v4208_v63 }
 0x49b   :  { %1821 = vmatprep.subr.bf16.mxu0 %v5593_v33 }
 0x49c   :  { %2878 = vrot.lane.b32.xlu0 %v5002_v2, %s4279_s14  ;;  %v4213_v2 = vld [vmem:[#allocation2 + $0x440] ss:$84 sps:$4 sm:$0xff]  }
 0x49e   :  { %1822 = vmatpush1.bf16.msra.mxu0 %v4209_v58 }
 0x49f   :  { %1823 = vmatprep.subr.bf16.mxu0 %v5593_v33 }
 0x4a0   :  { %2886 = vrot.lane.b32.xlu0 %v5128_v53, %s4271_s28  ;;  %v4215_v53 = vld [vmem:[#allocation2 + $0x590] ss:$84 sps:$4 sm:$0xff]  }
 0x4a2   :  { %1824 = vmatpush1.bf16.msra.mxu0 %v4210_v5 }
 0x4a3   :  { %1825 = vmatprep.subr.bf16.mxu0 %v5593_v33 }
 0x4a4   :  { %2894 = vrot.lane.b32.xlu0 %v5043_v14, %s4282_s17  ;;  %v1405_v14 = vsel %vm1343_vm1, %v4216_v41, 0 }
 0x4a6   :  { %1826 = vmatpush1.bf16.msra.mxu0 %v4211_v13 }
 0x4a7   :  { %1827 = vmatprep.subr.bf16.mxu0 %v5593_v33 }
 0x4a8   :  { %2902 = vrot.lane.b32.xlu0 %v2784_v51, %s4272_s29  ;;  %v4223_v51 = vld [vmem:[%s5579_s5 + $0x18] ss:$28 sps:$4 sm:$0xff]  }
 0x4aa   :  { %1828 = vmatpush1.bf16.msra.mxu0 %v4212_v45 }
 0x4ab   :  { %1829 = vmatprep.subr.bf16.mxu0 %v5593_v33 }
 0x4ae   :  { %1830 = vmatpush1.bf16.msra.mxu0 %v4213_v2  ;;  %v1911_v2 = vrot.slane %v5252_v16, %v5197_v40 }
 0x4af   :  { %1831 = vmatprep.subr.bf16.mxu0 %v5593_v33 }
 0x4b2   :  { %1832 = vmatpush1.bf16.msra.mxu0 %v4214_v21 }
 0x4b3   :  { %1833 = vmatprep.subr.bf16.mxu0 %v5593_v33 }
 0x4b6   :  { %1834 = vmatpush1.bf16.msra.mxu0 %v4215_v53 }
 0x4b7   :  { %1835 = vmatprep.subr.bf16.mxu0 %v5593_v33 }
 0x4ba   :  { %1836 = vmatpush1.bf16.msra.mxu0 %v1405_v14 }
 0x4bb   :  { %3075 = vmatprep.subr.bf16.mxu0 %v4222_v36 }
 0x4bd   :  { %1850 = vmatmul.mubr.bf16.vlgmr.msra.gmra.mrb[20].mxu0 %v5013_v47 }
 0x4be   :  { %3076 = vmatpush1.bf16.msra.mxu0 %v4220_v12  ;;  %3107 = vmatprep.mubr.bf16.mxu0 %v5593_v33 }
 0x4bf   :  { %3824 = vmatprep.subr.bf16.mxu0 %v4223_v51 }
 0x4c8   :  { %v5181_v49 = vpop.f32.mrb[0].mxu0  ;;  %v5183_v7 = vpop.f32.mrb[0].mxu1 }
 0x4c9   :  { %v5185_v10 = vpop.f32.mrb[1].mxu0  ;;  %v5187_v44 = vpop.f32.mrb[1].mxu1 }
 0x4ca   :  { %v1445_v42 = vpop.f32.mrb[2].mxu0  ;;  %v1486_v26 = vpop.f32.mrb[2].mxu1 }
 0x4cb   :  { %v1446_v23 = vpop.f32.mrb[3].mxu0  ;;  %v1487_v61 = vpop.f32.mrb[3].mxu1 }
 0x4cf   :  { %v2799_v35 = vpop.permute.xlu1 %2798 }
 0x4d0   :  { %v5190_v37 = vadd.f32 %v2799_v35, %v4995_v22  ;;  %v1879_v22 = vrot.slane %v5203_v4, %v5197_v40 }
 0x4d8   :  { %v2831_v47 = vpop.permute.xlu0 %2830 }
 0x4d9   :  { %v2833_v28 = vsub.f32 %v5190_v37, %v2831_v47 }
 0x4db   :  { %2882 = vrot.lane.b32.xlu1 %v2833_v28, %s4265_s24 }
 0x4df   :  { %2890 = vrot.lane.b32.xlu1 %v5040_v11, %s4283_s18 }
 0x4e9   :  { %v2806_v18 = vpop.permute.xlu1 %2805 }
 0x4ea   :  { %v5219_v3 = vadd.f32 %v2806_v18, %v5028_v8 }
 0x4f0   :  { %v1523_v30 = vpop.f32.mrb[4].mxu0  ;;  %v5210_v52 = vpop.f32.mrb[4].mxu1 }
 0x4f1   :  { %v5212_v11 = vadd.f32 %v1879_v22, %v1523_v30  ;;  %v1525_v55 = vpop.f32.mrb[5].mxu0  ;;  %v5214_v24 = vpop.f32.mrb[5].mxu1 }
 0x4f2   :  { %v5216_v62 = vadd.f32 %v1883_v56, %v1525_v55  ;;  %v1527_v54 = vpop.f32.mrb[6].mxu0  ;;  %v1568_v43 = vpop.f32.mrb[6].mxu1  ;;  %v5293_v55 = vld [vmem:[%s5577_s3 + $0x10] sm:$0x1f] }
 0x4f3   :  { %v1528_v15 = vpop.f32.mrb[7].mxu0  ;;  %v1569_v38 = vpop.f32.mrb[7].mxu1  ;;  %v1935_v54 = vrot.slane %v5293_v55, %v4437_v32  ;;  %v1939_v43 = vrot.slane %v5293_v55, %v5255_v19 }
 0x4f8   :  { %v2852_v9 = vpop.permute.xlu0 %2851 }
 0x4f9   :  { %v2854_v46 = vsub.f32 %v5219_v3, %v2852_v9 }
 0x4fb   :  { %2898 = vrot.lane.b32.xlu1 %v2854_v46, %s4270_s27 }
 0x4ff   :  { %2906 = vrot.lane.b32.xlu1 %v5078_v60, %s5591_s1  ;;  %v4226_v60 = vld [vmem:[%s5579_s5 + $0x14] ss:$28 sps:$4 sm:$0xff]  }
 0x501   :  { %v2813_v50 = vpop.permute.xlu1 %2812 }
 0x502   :  { %v5230_v8 = vadd.f32 %v2813_v50, %v5056_v25 }
 0x503   :  { %3386 = vperm.xlu1 %3903, %v5190_v37  }
 0x505   :  { %v2875_v20 = vpop.permute.xlu1 %2874 }
 0x506   :  { %v5233_v17 = vpack.c.bf16 %v2875_v20, %v5107_v29 }
 0x507   :  { %3905 = vset.pattern.permute.xlu1 %v5594_v39 }
 0x508   :  { %3508 = vperm.xlu1 %3905, %v5230_v8   ;;  %3793 = vmatmul.mubr.msk.bf16.vlgmr.msra.gmra.mrb[20].mxu1 %vm2963_vm4, %v5233_v17 }
 0x509   :  { %3799 = vmatmul.mubr.msk.bf16.vlgmr.msra.gmra.mrb[24].mxu0 %vm2963_vm4, %v5233_v17  ;;  %3024 = vmatprep.mubr.bf16.mxu1 %v5593_v33 }
 0x50a   :  { %v2870_v25 = vpop.permute.xlu0 %2869  ;;  %3117 = vmatprep.mubr.bf16.mxu0 %v5593_v33  ;;  %3839 = vmatpush1.bf16.msra.mxu1 %v4220_v12 }
 0x50b   :  { %v2872_v29 = vsub.f32 %v5230_v8, %v2870_v25  ;;  %3825 = vmatpush3.bf16.msra.mxu0 %v4223_v51  ;;  %3168 = vmatprep.subr.bf16.mxu1 %v4226_v60 }
 0x50d   :  { %2910 = vrot.lane.b32.xlu0 %v2872_v29, %s4273_s30 }
 0x50e   :  { %v2879_v35 = vpop.permute.xlu0 %2878 }
 0x511   :  { %3447 = vperm.xlu0 %3904, %v5219_v3  }
 0x512   :  { %v2887_v56 = vpop.permute.xlu0 %2886 }
 0x515   :  { %3906 = vset.pattern.permute.xlu0 %v5594_v39 }
 0x516   :  { %v2895_v25 = vpop.permute.xlu0 %2894 }
 0x518   :  { %v5260_v0 = vpop.f32.mrb[8].mxu0 }
 0x519   :  { %v5262_v6 = vpop.f32.mrb[8].mxu1  ;;  %v5264_v1 = vpop.f32.mrb[9].mxu0 }
 0x51a   :  { %v1648_v63 = vpop.f32.mrb[9].mxu1  ;;  %v1609_v36 = vpop.f32.mrb[10].mxu0 }
 0x51b   :  { %v5266_v58 = vadd.f32 %v1907_v48, %v1648_v63  ;;  %v1650_v5 = vpop.f32.mrb[10].mxu1  ;;  %v1610_v13 = vpop.f32.mrb[11].mxu0 }
 0x51c   :  { %v1651_v45 = vpop.f32.mrb[11].mxu1  ;;  %v2903_v36 = vpop.permute.xlu0 %2902 }
 0x540   :  { %v1687_v21 = vpop.f32.mrb[12].mxu0 }
 0x541   :  { %v5270_v53 = vadd.f32 %v1911_v2, %v1687_v21  ;;  %v5272_v41 = vpop.f32.mrb[12].mxu1  ;;  %v5274_v14 = vpop.f32.mrb[13].mxu0 }
 0x542   :  { %v5276_v12 = vpop.f32.mrb[13].mxu1  ;;  %v1691_v42 = vpop.f32.mrb[14].mxu0 }
 0x543   :  { %v1732_v26 = vpop.f32.mrb[14].mxu1  ;;  %v1692_v23 = vpop.f32.mrb[15].mxu0 }
 0x544   :  { %v1733_v61 = vpop.f32.mrb[15].mxu1 }
 0x54d   :  { %v2883_v47 = vpop.permute.xlu1 %2882 }
 0x54e   :  { %v5278_v28 = vpack.c.bf16 %v2883_v47, %v2879_v35 }
 0x550   :  { %3794 = vmatmul.mubr.msk.bf16.gmra.mrb[24].mxu1 %vm2963_vm4, %v5278_v28  ;;  %3800 = vmatmul.mubr.msk.bf16.gmra.mrb[28].mxu0 %vm2963_vm4, %v5278_v28 }
 0x551   :  { %3034 = vmatprep.mubr.bf16.mxu1 %v5593_v33  ;;  %3127 = vmatprep.mubr.bf16.mxu0 %v5593_v33  ;;  %v2891_v22 = vpop.permute.xlu1 %2890 }
 0x552   :  { %v2915_v30 = vpack.c.bf16 %v2891_v22, %v2887_v56  ;;  %v1867_v22 = vrot.slane %v5203_v4, %v4434_v31  ;;  %v1875_v56 = vrot.slane %v5203_v4, %v5255_v19 }
 0x558   :  { %3795 = vmatmul.mubr.msk.bf16.gmra.mrb[28].mxu1 %vm2963_vm4, %v2915_v30  ;;  %3801 = vmatmul.mubr.msk.bf16.gmra.mrb[32].mxu0 %vm2963_vm4, %v2915_v30 }
 0x559   :  { %3044 = vmatprep.mubr.bf16.mxu1 %v5593_v33  ;;  %3137 = vmatprep.mubr.bf16.mxu0 %v5593_v33 }
 0x568   :  { %v5299_v15 = vpop.f32.mrb[16].mxu0 }
 0x569   :  { %v1810_v38 = vpop.f32.mrb[16].mxu1  ;;  %v5301_v18 = vpop.f32.mrb[17].mxu0 }
 0x56a   :  { %v5303_v9 = vadd.f32 %v1935_v54, %v1810_v38  ;;  %v1812_v46 = vpop.f32.mrb[17].mxu1  ;;  %v1773_v51 = vpop.f32.mrb[18].mxu0  ;;  %v1899_v54 = vrot.slane %v5252_v16, %v4434_v31  ;;  %v1903_v38 = vrot.slane %v5252_v16, %v4437_v32 }
 0x56b   :  { %v5305_v50 = vadd.f32 %v1939_v43, %v1812_v46  ;;  %v1814_v20 = vpop.f32.mrb[18].mxu1  ;;  %v1774_v39 = vpop.f32.mrb[19].mxu0  ;;  %v5383_v51 = vadd.f32 %v1867_v22, %v5185_v10 }
 0x56c   :  { %v1815_v60 = vpop.f32.mrb[19].mxu1  ;;  %v5386_v20 = vadd.f32 %v1875_v56, %v5187_v44  ;;  %v1886_v56 = vsub.s32 6, %v4428_v27 }
 0x56d   :  { %v2899_v29 = vpop.permute.xlu1 %2898 }
 0x56e   :  { %v2916_v48 = vpack.c.bf16 %v2899_v29, %v2895_v25 }
 0x570   :  { %3796 = vmatmul.mubr.msk.bf16.gmra.mrb[32].mxu1 %vm2963_vm4, %v2916_v48  ;;  %3802 = vmatmul.mubr.msk.bf16.gmra.mrb[36].mxu0 %vm2963_vm4, %v2916_v48 }
 0x571   :  { %3054 = vmatprep.mubr.bf16.mxu1 %v5593_v33  ;;  %3147 = vmatprep.mubr.bf16.mxu0 %v5593_v33  ;;  %v2907_v63 = vpop.permute.xlu1 %2906 }
 0x572   :  { %v2917_v5 = vpack.c.bf16 %v2907_v63, %v2903_v36  ;;  %v5401_v63 = vadd.f32 %v1903_v38, %v5262_v6  ;;  %v1931_v38 = vrot.slane %v5293_v55, %v4434_v31 }
 0x578   :  { %3797 = vmatmul.mubr.msk.bf16.gmra.mrb[36].mxu1 %vm2963_vm4, %v2917_v5  ;;  %3803 = vmatmul.mubr.msk.bf16.gmra.mrb[40].mxu0 %vm2963_vm4, %v2917_v5 }
 0x579   :  { %3826 = vmatprep.mubr.msk.bf16.mxu0 %vm2963_vm4, %v5233_v17  ;;  %3064 = vmatprep.mubr.bf16.mxu1 %v5593_v33 }
 0x57f   :  { %v2911_v13 = vpop.permute.xlu0 %2910 }
 0x580   :  { %v2918_v45 = vpack.c.bf16 %v2911_v13, %v5072_v59  ;;  %3827 = vmatmul.mubr.msk.bf16.vlgmr.msra.gmra.mrb[44].mxu0 %vm2963_vm4, %v5278_v28  ;;  %v4224_v59 = vld [vmem:[%s5579_s5 + $0x10] ss:$28 sps:$4 sm:$0xff]  }
 0x581   :  { %3830 = vmatprep.mubr.msk.bf16.mxu0 %vm2963_vm4, %v2915_v30 }
 0x582   :  { %v5320_v2 = vpop.permute.xlu1 %3386  ;;  %3798 = vmatmul.mubr.msk.bf16.gmra.mrb[40].mxu1 %vm2963_vm4, %v2918_v45 }
 0x583   :  { %v3525_v21 = vsub.f32 %v5190_v37, %v5320_v2  ;;  %3157 = vmatprep.mubr.bf16.mxu1 %v5593_v33 }
 0x585   :  { %3529 = vrot.lane.b32.xlu1 %v3525_v21, %s4265_s24 }
 0x587   :  { %v5327_v42 = vpop.permute.xlu1 %3508 }
 0x588   :  { %3831 = vmatmul.mubr.msk.bf16.gmra.mrb[48].mxu0 %vm2963_vm4, %v2916_v48  ;;  %v3527_v26 = vsub.f32 %v5230_v8, %v5327_v42 }
 0x589   :  { %3834 = vmatprep.mubr.msk.bf16.mxu0 %vm2963_vm4, %v2917_v5 }
 0x58a   :  { %3537 = vrot.lane.b32.xlu1 %v3527_v26, %s4265_s24  ;;  %3804 = vmatmul.mubr.msk.bf16.vlgmr.msra.gmra.mrb[44].mxu1 %vm2963_vm4, %v2918_v45 }
 0x58b   :  { %3169 = vmatpush1.bf16.msra.mxu1 %v4224_v59  ;;  %3200 = vmatprep.mubr.bf16.mxu1 %v5593_v33 }
 0x590   :  { %v5339_v37 = vpop.f32.mrb[20].mxu0  ;;  %v5341_v23 = vpop.permute.xlu0 %3447  ;;  %3835 = vmatmul.mubr.msk.bf16.gmra.mrb[52].mxu0 %vm2963_vm4, %v2918_v45 }
 0x591   :  { %v1853_v61 = vpop.f32.mrb[21].mxu0  ;;  %v3526_v35 = vsub.f32 %v5219_v3, %v5341_v23  ;;  %v1890_v3 = vsub.s32 7, %v4428_v27 }
 0x592   :  { %v1854_v8 = vpop.f32.mrb[22].mxu0  ;;  %3805 = vmatmul.mubr.msk.bf16.vlgmr.msra.gmra.mrb[48].mxu1 %vm2963_vm4, %v5233_v17  ;;  %v1863_v17 = vrot.slane %v5203_v4, %v4443_v34 }
 0x593   :  { %v1855_v47 = vpop.f32.mrb[23].mxu0  ;;  %3533 = vrot.lane.b32.xlu0 %v3526_v35, %s4265_s24  ;;  %3210 = vmatprep.mubr.bf16.mxu1 %v5593_v33 }
 0x594   :  { %v5375_v43 = vadd.f32 %v1863_v17, %v5181_v49 }
 0x59a   :  { %3806 = vmatmul.mubr.msk.bf16.gmra.mrb[52].mxu1 %vm2963_vm4, %v5278_v28  ;;  %v1871_v28 = vrot.slane %v5203_v4, %v4437_v32  ;;  %v5396_v32 = vadd.f32 %v1899_v54, %v5264_v1  ;;  %v1923_v54 = vrot.slane %v5252_v16, %v1890_v3 }
 0x59b   :  { %3220 = vmatprep.mubr.bf16.mxu1 %v5593_v33 }
 0x59c   :  { %v5380_v46 = vadd.f32 %v1871_v28, %v5183_v7 }
 0x5a2   :  { %3807 = vmatmul.mubr.msk.bf16.gmra.mrb[56].mxu1 %vm2963_vm4, %v2915_v30  ;;  %v1891_v30 = vrot.slane %v5203_v4, %v1890_v3 }
 0x5a3   :  { %3230 = vmatprep.mubr.bf16.mxu1 %v5593_v33 }
 0x5a4   :  { %v5389_v39 = vadd.f32 %v1891_v30, %v5214_v24  ;;  %v1919_v30 = vrot.slane %v5252_v16, %v1886_v56 }
 0x5aa   :  { %3808 = vmatmul.mubr.msk.bf16.gmra.mrb[60].mxu1 %vm2963_vm4, %v2916_v48 }
 0x5ab   :  { %3240 = vmatprep.mubr.bf16.mxu1 %v5593_v33 }
 0x5b2   :  { %3809 = vmatmul.mubr.msk.bf16.gmra.mrb[64].mxu1 %vm2963_vm4, %v2917_v5 }
 0x5b3   :  { %3250 = vmatprep.mubr.bf16.mxu1 %v5593_v33  ;;  %v1895_v33 = vrot.slane %v5252_v16, %v4443_v34 }
 0x5b5   :  { %v5393_v29 = vadd.f32 %v1895_v33, %v5260_v0  ;;  %v1927_v33 = vrot.slane %v5293_v55, %v4443_v34 }
 0x5ba   :  { %3810 = vmatmul.mubr.msk.bf16.gmra.mrb[68].mxu1 %vm2963_vm4, %v2918_v45 }
 0x5db   :  { %v3016_v19 = vpop.f32.mrb[20].mxu1 }
 0x5dc   :  { %v3342_v60 = vmul.f32 %v3016_v19, %v5375_v43  ;;  %v3109_v49 = vpop.f32.mrb[24].mxu0  ;;  %v3018_v25 = vpop.f32.mrb[21].mxu1  ;;  %v5422_v19 = vadd.f32 %v1919_v30, %v5272_v41 }
 0x5dd   :  { %v3344_v7 = vmul.f32 %v3109_v49, %v5380_v46  ;;  %v3343_v10 = vmul.f32 %v3018_v25, %v5383_v51  ;;  %v3111_v48 = vpop.f32.mrb[25].mxu0  ;;  %v3020_v44 = vpop.f32.mrb[22].mxu1  ;;  %v5428_v49 = vadd.f32 %v1923_v54, %v5276_v12  ;;  %v5431_v25 = vadd.f32 %v1931_v38, %v5301_v18 }
 0x5de   :  { %v3345_v24 = vmul.f32 %v3111_v48, %v5386_v20  ;;  %v3349_v36 = vmul.f32 %v3020_v44, %v5389_v39  ;;  %v3113_v5 = vpop.f32.mrb[26].mxu0  ;;  %v3022_v13 = vpop.f32.mrb[23].mxu1 }
 0x5df   :  { %v3351_v0 = vmul.f32 %v3113_v5, %v5396_v32  ;;  %v3350_v1 = vmul.f32 %v3022_v13, %v5393_v29  ;;  %v3115_v45 = vpop.f32.mrb[27].mxu0 }
 0x5e0   :  { %v3356_v21 = vadd.f32 %v3349_v36, %v3342_v60  ;;  %v3352_v59 = vmul.f32 %v3115_v45, %v5401_v63  ;;  %v5425_v60 = vadd.f32 %v1927_v33, %v5299_v15 }
 0x5e1   :  { %v3358_v26 = vadd.f32 %v3351_v0, %v3344_v7  ;;  %v3357_v61 = vadd.f32 %v3350_v1, %v3343_v10 }
 0x5e2   :  { %v3359_v35 = vadd.f32 %v3352_v59, %v3345_v24 }
 0x5f7   :  { %v3530_v8 = vpop.permute.xlu1 %3529 }
 0x5fc   :  { %v3538_v47 = vpop.permute.xlu1 %3537 }
 0x605   :  { %v3534_v6 = vpop.permute.xlu0 %3533 }
 0x606   :  { %v3540_v17 = vsel %vm2963_vm4, %v3530_v8, %v3534_v6 }
 0x607   :  { %v3542_v28 = vsel %vm3541_vm5, %v3540_v17, %v3538_v47 }
 0x608   :  { %v3544_v22 = vsel %vm3543_vm6, %v3542_v28, 0.0 }
 0x609   :  { %3545 = vst [vmem:[%s5581_s7] sm:$0xff] %v3544_v22 }
 0x623   :  { %v3026_v7 = vpop.f32.mrb[24].mxu1  ;;  %v3119_v10 = vpop.f32.mrb[28].mxu0 }
 0x624   :  { %v3363_v34 = vmul.f32 %v3026_v7, %v5422_v19  ;;  %v3365_v3 = vmul.f32 %v3119_v10, %v5425_v60  ;;  %v3028_v48 = vpop.f32.mrb[25].mxu1  ;;  %v3121_v31 = vpop.f32.mrb[29].mxu0 }
 0x625   :  { %v3364_v41 = vmul.f32 %v3028_v48, %v5428_v49  ;;  %v3366_v44 = vmul.f32 %v3121_v31, %v5431_v25  ;;  %v3030_v15 = vpop.f32.mrb[26].mxu1  ;;  %v3123_v24 = vpop.f32.mrb[30].mxu0 }
 0x626   :  { %v3370_v36 = vadd.f32 %v3363_v34, %v3356_v21  ;;  %v3372_v12 = vadd.f32 %v3365_v3, %v3358_v26  ;;  %v3032_v5 = vpop.f32.mrb[27].mxu1  ;;  %v3125_v13 = vpop.f32.mrb[31].mxu0 }
 0x627   :  { %v3371_v18 = vadd.f32 %v3364_v41, %v3357_v61  ;;  %v3373_v0 = vadd.f32 %v3366_v44, %v3359_v35 }
 0x628   :  { %v3377_v1 = vadd.f32 %v3370_v36, %v3030_v15  ;;  %v3379_v45 = vadd.f32 %v3372_v12, %v3123_v24 }
 0x629   :  { %v3378_v59 = vadd.f32 %v3371_v18, %v3032_v5  ;;  %v3380_v8 = vadd.f32 %v3373_v0, %v3125_v13 }
 0x62a   :  { %v3389_v6 = vsub.f32 %v3377_v1, %v5320_v2  ;;  %v3391_v47 = vsub.f32 %v3379_v45, %v5320_v2 }
 0x62b   :  { %v3390_v17 = vsub.f32 %v3378_v59, %v5320_v2  ;;  %v3392_v28 = vsub.f32 %v3380_v8, %v5320_v2  ;;  %v3036_v22 = vpop.f32.mrb[28].mxu1  ;;  %v3129_v30 = vpop.f32.mrb[32].mxu0 }
 0x62c   :  { %3396 = vst [vmem:[%s5582_s8] sm:$0xff] %v3389_v6  ;;  %3398 = vst [vmem:[%s5582_s8 + $0x10] sm:$0xff] %v3391_v47  ;;  %v3403_v21 = vmul.f32 %v3036_v22, %v5375_v43  ;;  %v3405_v26 = vmul.f32 %v3129_v30, %v5380_v46  ;;  %v3038_v61 = vpop.f32.mrb[29].mxu1  ;;  %v3131_v35 = vpop.f32.mrb[33].mxu0 }
 0x62d   :  { %3397 = vst [vmem:[%s5582_s8 + $0x8] sm:$0xff] %v3390_v17  ;;  %3399 = vst [vmem:[%s5582_s8 + $0x18] sm:$0xff] %v3392_v28  ;;  %v3404_v33 = vmul.f32 %v3038_v61, %v5383_v51  ;;  %v3406_v54 = vmul.f32 %v3131_v35, %v5386_v20  ;;  %v3040_v38 = vpop.f32.mrb[30].mxu1  ;;  %v3133_v7 = vpop.f32.mrb[34].mxu0 }
 0x62e   :  { %v3410_v10 = vmul.f32 %v3040_v38, %v5389_v39  ;;  %v3412_v34 = vmul.f32 %v3133_v7, %v5396_v32  ;;  %v3042_v3 = vpop.f32.mrb[31].mxu1  ;;  %v3135_v48 = vpop.f32.mrb[35].mxu0 }
 0x62f   :  { %v3411_v31 = vmul.f32 %v3042_v3, %v5393_v29  ;;  %v3413_v41 = vmul.f32 %v3135_v48, %v5401_v63 }
 0x630   :  { %v3417_v44 = vadd.f32 %v3410_v10, %v3403_v21  ;;  %v3419_v15 = vadd.f32 %v3412_v34, %v3405_v26 }
 0x631   :  { %v3418_v24 = vadd.f32 %v3411_v31, %v3404_v33  ;;  %v3420_v36 = vadd.f32 %v3413_v41, %v3406_v54 }
 0x643   :  { %v3046_v12 = vpop.f32.mrb[32].mxu1  ;;  %v3139_v5 = vpop.f32.mrb[36].mxu0 }
 0x644   :  { %v3424_v13 = vmul.f32 %v3046_v12, %v5422_v19  ;;  %v3426_v18 = vmul.f32 %v3139_v5, %v5425_v60  ;;  %v3048_v0 = vpop.f32.mrb[33].mxu1  ;;  %v3141_v1 = vpop.f32.mrb[37].mxu0 }
 0x645   :  { %v3425_v45 = vmul.f32 %v3048_v0, %v5428_v49  ;;  %v3427_v59 = vmul.f32 %v3141_v1, %v5431_v25  ;;  %v3050_v8 = vpop.f32.mrb[34].mxu1  ;;  %v3143_v6 = vpop.f32.mrb[38].mxu0  ;;  %v1887_v0 = vrot.slane %v5203_v4, %v1886_v56 }
 0x646   :  { %v3431_v47 = vadd.f32 %v3424_v13, %v3417_v44  ;;  %v3433_v17 = vadd.f32 %v3426_v18, %v3419_v15  ;;  %v3052_v28 = vpop.f32.mrb[35].mxu1  ;;  %v3145_v22 = vpop.f32.mrb[39].mxu0 }
 0x647   :  { %v3432_v30 = vadd.f32 %v3425_v45, %v3418_v24  ;;  %v3434_v21 = vadd.f32 %v3427_v59, %v3420_v36  ;;  %v1971_v59 = vadd.f32 %v1887_v0, %v5210_v52 }
 0x648   :  { %v3438_v26 = vadd.f32 %v3431_v47, %v3050_v8  ;;  %v3440_v61 = vadd.f32 %v3433_v17, %v3143_v6 }
 0x649   :  { %v3439_v35 = vadd.f32 %v3432_v30, %v3052_v28  ;;  %v3441_v33 = vadd.f32 %v3434_v21, %v3145_v22 }
 0x64a   :  { %v3450_v54 = vsub.f32 %v3438_v26, %v5341_v23  ;;  %v3452_v38 = vsub.f32 %v3440_v61, %v5341_v23 }
 0x64b   :  { %v3451_v7 = vsub.f32 %v3439_v35, %v5341_v23  ;;  %v3453_v10 = vsub.f32 %v3441_v33, %v5341_v23  ;;  %v3056_v34 = vpop.f32.mrb[36].mxu1  ;;  %v3149_v3 = vpop.f32.mrb[40].mxu0 }
 0x64c   :  { %3457 = vst [vmem:[%s5582_s8 + $0x38] sm:$0xff] %v3450_v54  ;;  %3459 = vst [vmem:[%s5582_s8 + $0x48] sm:$0xff] %v3452_v38  ;;  %v3464_v48 = vmul.f32 %v3056_v34, %v5375_v43  ;;  %v3466_v31 = vmul.f32 %v3149_v3, %v5380_v46  ;;  %v3058_v41 = vpop.f32.mrb[37].mxu1  ;;  %v3151_v44 = vpop.f32.mrb[41].mxu0  ;;  %v1943_v43 = vrot.slane %v5293_v55, %v5197_v40 }
 0x64d   :  { %3458 = vst [vmem:[%s5582_s8 + $0x40] sm:$0xff] %v3451_v7  ;;  %3460 = vst [vmem:[%s5582_s8 + $0x50] sm:$0xff] %v3453_v10  ;;  %v3465_v15 = vmul.f32 %v3058_v41, %v5383_v51  ;;  %v3467_v24 = vmul.f32 %v3151_v44, %v5386_v20  ;;  %v3060_v36 = vpop.f32.mrb[38].mxu1  ;;  %v3153_v12 = vpop.f32.mrb[42].mxu0  ;;  %v1915_v40 = vrot.slane %v5252_v16, %v1882_v57 }
 0x64e   :  { %v3471_v46 = vmul.f32 %v3060_v36, %v5389_v39  ;;  %v3473_v5 = vmul.f32 %v3153_v12, %v5396_v32  ;;  %v3062_v13 = vpop.f32.mrb[39].mxu1  ;;  %v3155_v18 = vpop.f32.mrb[43].mxu0  ;;  %v1985_v32 = vadd.f32 %v1943_v43, %v5339_v37 }
 0x64f   :  { %v3472_v1 = vmul.f32 %v3062_v13, %v5393_v29  ;;  %v3474_v51 = vmul.f32 %v3155_v18, %v5401_v63  ;;  %v1978_v4 = vadd.f32 %v1915_v40, %v5274_v14 }
 0x650   :  { %v3478_v20 = vadd.f32 %v3471_v46, %v3464_v48  ;;  %v3480_v45 = vadd.f32 %v3473_v5, %v3466_v31 }
 0x651   :  { %v3479_v55 = vadd.f32 %v3472_v1, %v3465_v15  ;;  %v3481_v39 = vadd.f32 %v3474_v51, %v3467_v24 }
 0x653   :  { %v3828_v8 = vpop.f32.mrb[44].mxu0 }
 0x654   :  { %v3369_v6 = vmul.f32 %v3828_v8, %v1985_v32  ;;  %v3295_v47 = vpop.f32.mrb[45].mxu0 }
 0x655   :  { %v3348_v29 = vmul.f32 %v3295_v47, %v1971_v59  ;;  %v3066_v56 = vpop.f32.mrb[40].mxu1  ;;  %v3829_v63 = vpop.f32.mrb[46].mxu0 }
 0x656   :  { %v3485_v17 = vmul.f32 %v3066_v56, %v5422_v19  ;;  %v3068_v28 = vpop.f32.mrb[41].mxu1  ;;  %v3298_v27 = vpop.f32.mrb[47].mxu0 }
 0x657   :  { %v3486_v57 = vmul.f32 %v3068_v28, %v5428_v49  ;;  %v3355_v16 = vmul.f32 %v3298_v27, %v1978_v4  ;;  %v3070_v22 = vpop.f32.mrb[42].mxu1 }
 0x658   :  { %v3492_v30 = vadd.f32 %v3485_v17, %v3478_v20  ;;  %v3072_v37 = vpop.f32.mrb[43].mxu1 }
 0x659   :  { %v3362_v21 = vadd.f32 %v3355_v16, %v3348_v29  ;;  %v3493_v52 = vadd.f32 %v3486_v57, %v3479_v55 }
 0x65a   :  { %v3499_v26 = vadd.f32 %v3492_v30, %v3070_v22 }
 0x65b   :  { %v3376_v61 = vadd.f32 %v3369_v6, %v3362_v21  ;;  %v3500_v35 = vadd.f32 %v3493_v52, %v3072_v37  ;;  %v3832_v33 = vpop.f32.mrb[48].mxu0 }
 0x65c   :  { %v3511_v14 = vsub.f32 %v3499_v26, %v5327_v42  ;;  %v3430_v54 = vmul.f32 %v3832_v33, %v1985_v32  ;;  %v3311_v38 = vpop.f32.mrb[49].mxu0 }
 0x65d   :  { %v3383_v7 = vadd.f32 %v3829_v63, %v3376_v61  ;;  %v3512_v19 = vsub.f32 %v3500_v35, %v5327_v42  ;;  %v3409_v10 = vmul.f32 %v3311_v38, %v1971_v59  ;;  %v3159_v34 = vpop.f32.mrb[44].mxu1  ;;  %v3833_v49 = vpop.f32.mrb[50].mxu0 }
 0x65e   :  { %3518 = vst [vmem:[%s5582_s8 + $0x70] sm:$0xff] %v3511_v14  ;;  %v3487_v3 = vmul.f32 %v3159_v34, %v5425_v60  ;;  %v3161_v48 = vpop.f32.mrb[45].mxu1  ;;  %v3314_v31 = vpop.f32.mrb[51].mxu0 }
 0x65f   :  { %v3395_v41 = vsub.f32 %v3383_v7, %v5320_v2  ;;  %3519 = vst [vmem:[%s5582_s8 + $0x78] sm:$0xff] %v3512_v19  ;;  %v3488_v44 = vmul.f32 %v3161_v48, %v5431_v25  ;;  %v3416_v15 = vmul.f32 %v3314_v31, %v1978_v4  ;;  %v3163_v24 = vpop.f32.mrb[46].mxu1 }
 0x660   :  { %v3494_v36 = vadd.f32 %v3487_v3, %v3480_v45  ;;  %v3165_v12 = vpop.f32.mrb[47].mxu1 }
 0x661   :  { %3402 = vst [vmem:[%s5582_s8 + $0x30] sm:$0xff] %v3395_v41  ;;  %v3423_v43 = vadd.f32 %v3416_v15, %v3409_v10  ;;  %v3495_v60 = vadd.f32 %v3488_v44, %v3481_v39 }
 0x662   :  { %v3501_v46 = vadd.f32 %v3494_v36, %v3163_v24 }
 0x663   :  { %v3437_v5 = vadd.f32 %v3430_v54, %v3423_v43  ;;  %v3502_v13 = vadd.f32 %v3495_v60, %v3165_v12  ;;  %v3836_v18 = vpop.f32.mrb[52].mxu0 }
 0x664   :  { %v3513_v0 = vsub.f32 %v3501_v46, %v5327_v42  ;;  %v3491_v1 = vmul.f32 %v3836_v18, %v1985_v32  ;;  %v3327_v51 = vpop.f32.mrb[53].mxu0 }
 0x665   :  { %v3444_v20 = vadd.f32 %v3833_v49, %v3437_v5  ;;  %v3514_v25 = vsub.f32 %v3502_v13, %v5327_v42  ;;  %v3470_v40 = vmul.f32 %v3327_v51, %v1971_v59  ;;  %v3202_v45 = vpop.f32.mrb[48].mxu1  ;;  %v3837_v55 = vpop.f32.mrb[54].mxu0 }
 0x666   :  { %3520 = vst [vmem:[%s5582_s8 + $0x80] sm:$0xff] %v3513_v0  ;;  %v3346_v39 = vmul.f32 %v3202_v45, %v5212_v11  ;;  %v3204_v8 = vpop.f32.mrb[49].mxu1  ;;  %v3330_v6 = vpop.f32.mrb[55].mxu0 }
 0x667   :  { %v3456_v47 = vsub.f32 %v3444_v20, %v5341_v23  ;;  %3521 = vst [vmem:[%s5582_s8 + $0x88] sm:$0xff] %v3514_v25  ;;  %v3347_v32 = vmul.f32 %v3204_v8, %v5216_v62  ;;  %v3477_v29 = vmul.f32 %v3330_v6, %v1978_v4  ;;  %v3206_v59 = vpop.f32.mrb[50].mxu1 }
 0x668   :  { %v3353_v56 = vmul.f32 %v3206_v59, %v5266_v58  ;;  %v3208_v63 = vpop.f32.mrb[51].mxu1 }
 0x669   :  { %3463 = vst [vmem:[%s5582_s8 + $0x68] sm:$0xff] %v3456_v47  ;;  %v3484_v17 = vadd.f32 %v3477_v29, %v3470_v40  ;;  %v3354_v28 = vmul.f32 %v3208_v63, %v5270_v53 }
 0x66a   :  { %v3360_v27 = vadd.f32 %v3353_v56, %v3346_v39 }
 0x66b   :  { %v3498_v57 = vadd.f32 %v3491_v1, %v3484_v17  ;;  %v3361_v16 = vadd.f32 %v3354_v28, %v3347_v32 }
 0x66d   :  { %v3505_v22 = vadd.f32 %v3837_v55, %v3498_v57  ;;  %v3212_v30 = vpop.f32.mrb[52].mxu1 }
 0x66e   :  { %v3367_v37 = vmul.f32 %v3212_v30, %v5303_v9  ;;  %v3214_v21 = vpop.f32.mrb[53].mxu1 }
 0x66f   :  { %v3517_v4 = vsub.f32 %v3505_v22, %v5327_v42  ;;  %v3368_v52 = vmul.f32 %v3214_v21, %v5305_v50  ;;  %v3216_v26 = vpop.f32.mrb[54].mxu1 }
 0x670   :  { %v3374_v61 = vadd.f32 %v3367_v37, %v3360_v27  ;;  %v3218_v35 = vpop.f32.mrb[55].mxu1 }
 0x671   :  { %3524 = vst [vmem:[%s5582_s8 + $0xa0] sm:$0xff] %v3517_v4  ;;  %v3375_v33 = vadd.f32 %v3368_v52, %v3361_v16 }
 0x672   :  { %v3381_v14 = vadd.f32 %v3374_v61, %v3216_v26 }
 0x673   :  { %v3382_v54 = vadd.f32 %v3375_v33, %v3218_v35 }
 0x674   :  { %v3393_v38 = vsub.f32 %v3381_v14, %v5320_v2 }
 0x675   :  { %v3394_v7 = vsub.f32 %v3382_v54, %v5320_v2  ;;  %v3222_v19 = vpop.f32.mrb[56].mxu1 }
 0x676   :  { %3400 = vst [vmem:[%s5582_s8 + $0x20] sm:$0xff] %v3393_v38  ;;  %v3407_v10 = vmul.f32 %v3222_v19, %v5212_v11  ;;  %v3224_v34 = vpop.f32.mrb[57].mxu1 }
 0x677   :  { %3401 = vst [vmem:[%s5582_s8 + $0x28] sm:$0xff] %v3394_v7  ;;  %v3408_v49 = vmul.f32 %v3224_v34, %v5216_v62  ;;  %v3226_v3 = vpop.f32.mrb[58].mxu1 }
 0x678   :  { %v3414_v48 = vmul.f32 %v3226_v3, %v5266_v58  ;;  %v3228_v31 = vpop.f32.mrb[59].mxu1 }
 0x679   :  { %v3415_v2 = vmul.f32 %v3228_v31, %v5270_v53 }
 0x67a   :  { %v3421_v41 = vadd.f32 %v3414_v48, %v3407_v10 }
 0x67b   :  { %v3422_v44 = vadd.f32 %v3415_v2, %v3408_v49 }
 0x67d   :  { %v3232_v15 = vpop.f32.mrb[60].mxu1 }
 0x67e   :  { %v3428_v24 = vmul.f32 %v3232_v15, %v5303_v9  ;;  %v3234_v36 = vpop.f32.mrb[61].mxu1 }
 0x67f   :  { %v3429_v12 = vmul.f32 %v3234_v36, %v5305_v50  ;;  %v3236_v43 = vpop.f32.mrb[62].mxu1 }
 0x680   :  { %v3435_v60 = vadd.f32 %v3428_v24, %v3421_v41  ;;  %v3238_v46 = vpop.f32.mrb[63].mxu1 }
 0x681   :  { %v3436_v5 = vadd.f32 %v3429_v12, %v3422_v44 }
 0x682   :  { %v3442_v13 = vadd.f32 %v3435_v60, %v3236_v43 }
 0x683   :  { %v3443_v18 = vadd.f32 %v3436_v5, %v3238_v46 }
 0x684   :  { %v3454_v0 = vsub.f32 %v3442_v13, %v5341_v23 }
 0x685   :  { %v3455_v1 = vsub.f32 %v3443_v18, %v5341_v23  ;;  %v3242_v51 = vpop.f32.mrb[64].mxu1 }
 0x686   :  { %3461 = vst [vmem:[%s5582_s8 + $0x58] sm:$0xff] %v3454_v0  ;;  %v3468_v20 = vmul.f32 %v3242_v51, %v5212_v11  ;;  %v3244_v25 = vpop.f32.mrb[65].mxu1 }
 0x687   :  { %3462 = vst [vmem:[%s5582_s8 + $0x60] sm:$0xff] %v3455_v1  ;;  %v3469_v40 = vmul.f32 %v3244_v25, %v5216_v62  ;;  %v3246_v45 = vpop.f32.mrb[66].mxu1 }
 0x688   :  { %v3475_v55 = vmul.f32 %v3246_v45, %v5266_v58  ;;  %v3248_v39 = vpop.f32.mrb[67].mxu1 }
 0x689   :  { %v3476_v23 = vmul.f32 %v3248_v39, %v5270_v53 }
 0x68a   :  { %v3482_v8 = vadd.f32 %v3475_v55, %v3468_v20 }
 0x68b   :  { %v3483_v6 = vadd.f32 %v3476_v23, %v3469_v40 }
 0x68d   :  { %v3252_v47 = vpop.f32.mrb[68].mxu1 }
 0x68e   :  { %v3489_v32 = vmul.f32 %v3252_v47, %v5303_v9  ;;  %v3254_v29 = vpop.f32.mrb[69].mxu1 }
 0x68f   :  { %v3490_v11 = vmul.f32 %v3254_v29, %v5305_v50  ;;  %v3256_v59 = vpop.f32.mrb[70].mxu1 }
 0x690   :  { %v3496_v56 = vadd.f32 %v3489_v32, %v3482_v8  ;;  %v3258_v63 = vpop.f32.mrb[71].mxu1 }
 0x691   :  { %v3497_v17 = vadd.f32 %v3490_v11, %v3483_v6 }
 0x692   :  { %v3503_v28 = vadd.f32 %v3496_v56, %v3256_v59 }
 0x693   :  { %v3504_v62 = vadd.f32 %v3497_v17, %v3258_v63 }
 0x694   :  { %v3515_v27 = vsub.f32 %v3503_v28, %v5327_v42 }
 0x695   :  { %v3516_v58 = vsub.f32 %v3504_v62, %v5327_v42 }
 0x696   :  { %3522 = vst [vmem:[%s5582_s8 + $0x90] sm:$0xff] %v3515_v27 }
 0x697   :  { %3523 = vst [vmem:[%s5582_s8 + $0x98] sm:$0xff] %v3516_v58 }
 0x698   :  { %3554 = vsyncpa [#allocation3], 1 }

</bundles_post_ra>
